<compile_context>
chip_gen: v7x
topology: tpu7x:2x2x1
jax: 0.10.0
libtpu: 0.0.40
codegen_flags: <defaults>
</compile_context>

<pallas_src>
import numpy as np
import jax
import jax.numpy as jnp
from jax import lax
from jax.experimental import pallas as pl
from jax.experimental.pallas import tpu as pltpu


# --------------------------- fused forward kernel ---------------------------
def _lenet_kernel(x_ref, w1_ref, b1_ref, w2_ref, b2_ref,
                  fw1_ref, fb1_ref, fw2_ref, fb2_ref, fw3_ref, fb3_ref,
                  o_ref, acc1_ref, acc2_ref):
    """One batch tile (TB samples) per grid step.

    x_ref : (32, TB, 96)   input rows on the leading axis, batch on sublanes,
                            lane = 3*w + c  (lane-dense W*C packing).
    Row index of every conv GEMM is  oh*TB + b  (output row major, batch minor).
    """
    tb = o_ref.shape[0]

    # ---- conv1 (5x5, 3->6, valid) as 5 row-tap block-Toeplitz GEMMs --------
    # tap r: input rows r..r+27 (a leading-dim slice = whole-vreg selection),
    # reshaped to (28*TB, 96) -- layout preserving since TB % 8 == 0.
    for r in range(5):
        win = x_ref[r:r + 28].reshape(28 * tb, 96)
        tap = jnp.dot(win, w1_ref[r], preferred_element_type=jnp.float32)
        if r == 0:
            acc1_ref[...] = tap
        else:
            acc1_ref[...] += tap
    y1 = jnp.maximum(acc1_ref[...] + b1_ref[...], 0.0)        # (28*TB, 168)

    # ---- fused 2x2 maxpool: H = row-parity halves, W = lane halves ---------
    # columns are packed  col = 84*(ow%2) + 6*(ow//2) + oc,  so W-pool is one
    # wide lane-slice max; rows are oh*TB+b so H-pool is a sublane-half max.
    y1 = y1.reshape(14, 2 * tb, 168)
    y1 = jnp.maximum(y1[:, :tb, :], y1[:, tb:, :])             # (14, TB, 168)
    a1 = jnp.maximum(y1[:, :, :84], y1[:, :, 84:])             # (14, TB, 84)

    # ---- conv2 (5x5, 6->16, valid), same scheme -----------------------------
    for r in range(5):
        win = a1[r:r + 10].reshape(10 * tb, 84)
        tap = jnp.dot(win, w2_ref[r], preferred_element_type=jnp.float32)
        if r == 0:
            acc2_ref[...] = tap
        else:
            acc2_ref[...] += tap
    y2 = jnp.maximum(acc2_ref[...] + b2_ref[...], 0.0)         # (10*TB, 160)

    y2 = y2.reshape(5, 2 * tb, 160)
    y2 = jnp.maximum(y2[:, :tb, :], y2[:, tb:, :])             # (5, TB, 160)
    a2 = jnp.maximum(y2[:, :, :80], y2[:, :, 80:])             # (5, TB, 80)

    # ---- fc1 (flatten folded into 5 accumulated GEMMs), fc2, fc3 -----------
    h = jnp.dot(a2[0], fw1_ref[0], preferred_element_type=jnp.float32)
    for i in range(1, 5):
        h = h + jnp.dot(a2[i], fw1_ref[i], preferred_element_type=jnp.float32)
    h = jnp.maximum(h + fb1_ref[...], 0.0)                     # (TB, 120)
    h = jnp.maximum(jnp.dot(h, fw2_ref[...],
                            preferred_element_type=jnp.float32) + fb2_ref[...],
                    0.0)                                       # (TB, 84)
    o_ref[...] = (jnp.dot(h, fw3_ref[...],
                          preferred_element_type=jnp.float32) + fb3_ref[...])


# ------------------------- host-side weight repacking -----------------------
def _conv_row_matrix(w, w_in, ow_out):
    """(OC, C, KH, KW) conv weight -> (KH, W_in*C, OW*OC) block-Toeplitz slabs.

    Row index  = C*w + c  over the full input row (lane-dense W*C layout).
    Col index  = half*(ow % 2) + OC*(ow // 2) + oc,  half = OC*ceil(OW/2),
    i.e. ow-parity major, so the 2x2 W-pool is max(cols[:half], cols[half:]).
    """
    oc_n, c_n, kh, kw = w.shape
    half = oc_n * ((ow_out + 1) // 2)
    wn = np.asarray(w, np.float32)
    m = np.zeros((kh, w_in * c_n, 2 * half), np.float32)
    for r in range(kh):
        for ow in range(ow_out):
            col0 = half * (ow % 2) + oc_n * (ow // 2)
            for k in range(kw):
                row0 = c_n * (ow + k)
                m[r, row0:row0 + c_n, col0:col0 + oc_n] = wn[:, :, r, k].T
    return jnp.asarray(m)


def prepare_params(params):
    """One-time repack of PyTorch-layout params into kernel layouts."""
    # fc1: torch flatten order is (c, h, w); kernel order is (h, 16*w + c).
    fw1 = jnp.transpose(jnp.reshape(params["fc1_w"], (120, 16, 5, 5)),
                        (2, 3, 1, 0)).reshape(5, 80, 120)
    return {
        "w1": _conv_row_matrix(params["conv1_w"], w_in=32, ow_out=28),  # (5,96,168)
        "b1": jnp.tile(params["conv1_b"], 28).reshape(1, 168),
        "w2": _conv_row_matrix(params["conv2_w"], w_in=14, ow_out=10),  # (5,84,160)
        "b2": jnp.tile(params["conv2_b"], 10).reshape(1, 160),
        "fw1": fw1,                                   # (5, 80, 120)
        "fb1": params["fc1_b"].reshape(1, 120),
        "fw2": params["fc2_w"].T,                     # (120, 84)
        "fb2": params["fc2_b"].reshape(1, 84),
        "fw3": params["fc3_w"].T,                     # (84, 10)
        "fb3": params["fc3_b"].reshape(1, 10),
    }


def _const_spec(shape):
    nd = len(shape)
    return pl.BlockSpec(shape, lambda b: (0,) * nd)


def net_forward(x_nchw, p, tb=None):
    """x_nchw: (N, 3, 32, 32) float32 -> (N, 10) logits."""
    n = x_nchw.shape[0]
    if tb is None:
        tb = 8 if n <= 32 else 32            # TB=32 fits every generation's VMEM
    n_pad = ((n + tb - 1) // tb) * tb

    # Lane-dense input packing: (N,3,32,32) -> (H=32, N_pad, W*C=96).
    x = jnp.transpose(x_nchw, (0, 2, 3, 1)).reshape(n, 32, 96)
    if n_pad != n:
        x = jnp.pad(x, ((0, n_pad - n), (0, 0), (0, 0)))
    x = jnp.transpose(x, (1, 0, 2))                            # (32, N_pad, 96)

    out = pl.pallas_call(
        _lenet_kernel,
        out_shape=jax.ShapeDtypeStruct((n_pad, 10), jnp.float32),
        grid_spec=pltpu.PrefetchScalarGridSpec(
            num_scalar_prefetch=0,
            grid=(n_pad // tb,),
            in_specs=[
                pl.BlockSpec((32, tb, 96), lambda b: (0, b, 0)),
                _const_spec(p["w1"].shape), _const_spec(p["b1"].shape),
                _const_spec(p["w2"].shape), _const_spec(p["b2"].shape),
                _const_spec(p["fw1"].shape), _const_spec(p["fb1"].shape),
                _const_spec(p["fw2"].shape), _const_spec(p["fb2"].shape),
                _const_spec(p["fw3"].shape), _const_spec(p["fb3"].shape),
            ],
            out_specs=pl.BlockSpec((tb, 10), lambda b: (b, 0)),
            scratch_shapes=[pltpu.VMEM((28 * tb, 168), jnp.float32),   # conv1 acc
                            pltpu.VMEM((10 * tb, 160), jnp.float32)],  # conv2 acc
        ),
        compiler_params=pltpu.CompilerParams(
            dimension_semantics=("parallel",)),
    )(x, p["w1"], p["b1"], p["w2"], p["b2"],
      p["fw1"], p["fb1"], p["fw2"], p["fb2"], p["fw3"], p["fb3"])
    return out[:n]


# ------------------------------- parameters ---------------------------------
def init_params(key):
    ks = jax.random.split(key, 10)

    def uinit(k, shape, fan_in):
        bound = 1.0 / jnp.sqrt(jnp.float32(fan_in))
        return jax.random.uniform(k, shape, jnp.float32, -bound, bound)

    return {
        "conv1_w": uinit(ks[0], (6, 3, 5, 5), 3 * 5 * 5),
        "conv1_b": uinit(ks[1], (6,), 3 * 5 * 5),
        "conv2_w": uinit(ks[2], (16, 6, 5, 5), 6 * 5 * 5),
        "conv2_b": uinit(ks[3], (16,), 6 * 5 * 5),
        "fc1_w": uinit(ks[4], (120, 400), 400),
        "fc1_b": uinit(ks[5], (120,), 400),
        "fc2_w": uinit(ks[6], (84, 120), 120),
        "fc2_b": uinit(ks[7], (84,), 120),
        "fc3_w": uinit(ks[8], (10, 84), 84),
        "fc3_b": uinit(ks[9], (10,), 84),
    }


# ------------------------- pure-JAX reference (check) -----------------------
def reference_forward(x, params):
    hp = lax.Precision.HIGHEST
    y = lax.conv_general_dilated(x, params["conv1_w"], (1, 1), "VALID",
                                 dimension_numbers=("NCHW", "OIHW", "NCHW"),
                                 precision=hp)
    y = jnp.maximum(y + params["conv1_b"][None, :, None, None], 0.0)
    y = lax.reduce_window(y, -jnp.inf, lax.max, (1, 1, 2, 2), (1, 1, 2, 2), "VALID")
    y = lax.conv_general_dilated(y, params["conv2_w"], (1, 1), "VALID",
                                 dimension_numbers=("NCHW", "OIHW", "NCHW"),
                                 precision=hp)
    y = jnp.maximum(y + params["conv2_b"][None, :, None, None], 0.0)
    y = lax.reduce_window(y, -jnp.inf, lax.max, (1, 1, 2, 2), (1, 1, 2, 2), "VALID")
    y = y.reshape(y.shape[0], -1)
    y = jnp.maximum(jnp.dot(y, params["fc1_w"].T, precision=hp) + params["fc1_b"], 0.0)
    y = jnp.maximum(jnp.dot(y, params["fc2_w"].T, precision=hp) + params["fc2_b"], 0.0)
    return jnp.dot(y, params["fc3_w"].T, precision=hp) + params["fc3_b"]


if __name__ == "__main__":
    key = jax.random.PRNGKey(0)
    k_x, k_p = jax.random.split(key)
    # CIFAR-10 sized input (the .view(-1, 16*5*5) requires 3x32x32 inputs);
    # batch=16 with TB=8 gives a 2-step grid (exercises batching + megacore).
    x = jax.random.normal(k_x, (16, 3, 32, 32), jnp.float32)
    params = init_params(k_p)
    prepped = prepare_params(params)          # one-time repack, outside hot path

    fwd = jax.jit(net_forward)
    out = jax.block_until_ready(fwd(x, prepped))
    assert out.shape == (16, 10) and out.dtype == jnp.float32

    ref = reference_forward(x, params)
    if not bool(jnp.allclose(out, ref, rtol=2e-2, atol=2e-2)):
        max_err = float(jnp.max(jnp.abs(out - ref)))
        raise SystemExit(f"mismatch vs pure-JAX reference: max abs err {max_err}")
    print("KERNEL_OK")
</pallas_src>

<mosaic_0001>
module attributes {stable_mosaic.version = 11 : i64} {
  func.func @_lenet_kernel(%arg0: i32, %arg1: memref<32x8x96xf32, #tpu.memory_space<vmem>>, %arg2: memref<5x96x168xf32, #tpu.memory_space<vmem>>, %arg3: memref<1x168xf32, #tpu.memory_space<vmem>>, %arg4: memref<5x84x160xf32, #tpu.memory_space<vmem>>, %arg5: memref<1x160xf32, #tpu.memory_space<vmem>>, %arg6: memref<5x80x120xf32, #tpu.memory_space<vmem>>, %arg7: memref<1x120xf32, #tpu.memory_space<vmem>>, %arg8: memref<120x84xf32, #tpu.memory_space<vmem>>, %arg9: memref<1x84xf32, #tpu.memory_space<vmem>>, %arg10: memref<84x10xf32, #tpu.memory_space<vmem>>, %arg11: memref<1x10xf32, #tpu.memory_space<vmem>>, %arg12: memref<8x10xf32, #tpu.memory_space<vmem>>, %arg13: memref<224x168xf32, #tpu.memory_space<vmem>>, %arg14: memref<80x160xf32, #tpu.memory_space<vmem>>) attributes {dimension_semantics = [#tpu.dimension_semantics<parallel>], iteration_bounds = array<i64: 2>, scalar_prefetch = 0 : i64, scratch_operands = 2 : i64, tpu.core_type = #tpu.core_type<tc>, window_params = [{transform_indices = @transform_0, window_bounds = array<i64: 32, 8, 96>}, {pipeline_mode = #tpu.pipeline_mode<synchronous>, transform_indices = @transform_1, window_bounds = array<i64: 5, 96, 168>}, {pipeline_mode = #tpu.pipeline_mode<synchronous>, transform_indices = @transform_2, window_bounds = array<i64: 1, 168>}, {pipeline_mode = #tpu.pipeline_mode<synchronous>, transform_indices = @transform_3, window_bounds = array<i64: 5, 84, 160>}, {pipeline_mode = #tpu.pipeline_mode<synchronous>, transform_indices = @transform_4, window_bounds = array<i64: 1, 160>}, {pipeline_mode = #tpu.pipeline_mode<synchronous>, transform_indices = @transform_5, window_bounds = array<i64: 5, 80, 120>}, {pipeline_mode = #tpu.pipeline_mode<synchronous>, transform_indices = @transform_6, window_bounds = array<i64: 1, 120>}, {pipeline_mode = #tpu.pipeline_mode<synchronous>, transform_indices = @transform_7, window_bounds = array<i64: 120, 84>}, {pipeline_mode = #tpu.pipeline_mode<synchronous>, transform_indices = @transform_8, window_bounds = array<i64: 1, 84>}, {pipeline_mode = #tpu.pipeline_mode<synchronous>, transform_indices = @transform_9, window_bounds = array<i64: 84, 10>}, {pipeline_mode = #tpu.pipeline_mode<synchronous>, transform_indices = @transform_10, window_bounds = array<i64: 1, 10>}, {transform_indices = @transform_11, window_bounds = array<i64: 8, 10>}]} {
    %c0 = arith.constant 0 : index
    %c0_0 = arith.constant 0 : index
    %c0_1 = arith.constant 0 : index
    %0 = vector.load %arg1[%c0, %c0_0, %c0_1] : memref<32x8x96xf32, #tpu.memory_space<vmem>>, vector<28x8x96xf32>
    %1 = vector.shape_cast %0 : vector<28x8x96xf32> to vector<224x96xf32>
    %c0_2 = arith.constant 0 : index
    %c0_3 = arith.constant 0 : index
    %c0_4 = arith.constant 0 : index
    %2 = vector.load %arg2[%c0_2, %c0_3, %c0_4] : memref<5x96x168xf32, #tpu.memory_space<vmem>>, vector<1x96x168xf32>
    %3 = vector.shape_cast %2 : vector<1x96x168xf32> to vector<96x168xf32>
    %cst = arith.constant dense<0.000000e+00> : vector<224x168xf32>
    %4 = tpu.matmul %1, %3, %cst {dimension_numbers = #tpu.dot_dimension_numbers<[1], [0], [0], [1], [0, 0, 1, 1], [], []>} : vector<224x96xf32>, vector<96x168xf32>, vector<224x168xf32> -> vector<224x168xf32>
    %c0_5 = arith.constant 0 : index
    %c0_6 = arith.constant 0 : index
    %5 = vector.load %arg13[%c0_5, %c0_6] : memref<224x168xf32, #tpu.memory_space<vmem>>, vector<224x168xf32>
    tpu.vector_store %arg13[%c0_5, %c0_6], %4 {strides = array<i32>} : memref<224x168xf32, #tpu.memory_space<vmem>>, vector<224x168xf32>,
    %c1 = arith.constant 1 : index
    %c0_7 = arith.constant 0 : index
    %c0_8 = arith.constant 0 : index
    %6 = vector.load %arg1[%c1, %c0_7, %c0_8] : memref<32x8x96xf32, #tpu.memory_space<vmem>>, vector<28x8x96xf32>
    %7 = vector.shape_cast %6 : vector<28x8x96xf32> to vector<224x96xf32>
    %c1_9 = arith.constant 1 : index
    %c0_10 = arith.constant 0 : index
    %c0_11 = arith.constant 0 : index
    %8 = vector.load %arg2[%c1_9, %c0_10, %c0_11] : memref<5x96x168xf32, #tpu.memory_space<vmem>>, vector<1x96x168xf32>
    %9 = vector.shape_cast %8 : vector<1x96x168xf32> to vector<96x168xf32>
    %cst_12 = arith.constant dense<0.000000e+00> : vector<224x168xf32>
    %10 = tpu.matmul %7, %9, %cst_12 {dimension_numbers = #tpu.dot_dimension_numbers<[1], [0], [0], [1], [0, 0, 1, 1], [], []>} : vector<224x96xf32>, vector<96x168xf32>, vector<224x168xf32> -> vector<224x168xf32>
    %c0_13 = arith.constant 0 : index
    %c0_14 = arith.constant 0 : index
    %11 = vector.load %arg13[%c0_13, %c0_14] : memref<224x168xf32, #tpu.memory_space<vmem>>, vector<224x168xf32>
    %12 = arith.addf %11, %10 : vector<224x168xf32>
    %c0_15 = arith.constant 0 : index
    %c0_16 = arith.constant 0 : index
    %13 = vector.load %arg13[%c0_15, %c0_16] : memref<224x168xf32, #tpu.memory_space<vmem>>, vector<224x168xf32>
    tpu.vector_store %arg13[%c0_15, %c0_16], %12 {strides = array<i32>} : memref<224x168xf32, #tpu.memory_space<vmem>>, vector<224x168xf32>,
    %c2 = arith.constant 2 : index
    %c0_17 = arith.constant 0 : index
    %c0_18 = arith.constant 0 : index
    %14 = vector.load %arg1[%c2, %c0_17, %c0_18] : memref<32x8x96xf32, #tpu.memory_space<vmem>>, vector<28x8x96xf32>
    %15 = vector.shape_cast %14 : vector<28x8x96xf32> to vector<224x96xf32>
    %c2_19 = arith.constant 2 : index
    %c0_20 = arith.constant 0 : index
    %c0_21 = arith.constant 0 : index
    %16 = vector.load %arg2[%c2_19, %c0_20, %c0_21] : memref<5x96x168xf32, #tpu.memory_space<vmem>>, vector<1x96x168xf32>
    %17 = vector.shape_cast %16 : vector<1x96x168xf32> to vector<96x168xf32>
    %cst_22 = arith.constant dense<0.000000e+00> : vector<224x168xf32>
    %18 = tpu.matmul %15, %17, %cst_22 {dimension_numbers = #tpu.dot_dimension_numbers<[1], [0], [0], [1], [0, 0, 1, 1], [], []>} : vector<224x96xf32>, vector<96x168xf32>, vector<224x168xf32> -> vector<224x168xf32>
    %c0_23 = arith.constant 0 : index
    %c0_24 = arith.constant 0 : index
    %19 = vector.load %arg13[%c0_23, %c0_24] : memref<224x168xf32, #tpu.memory_space<vmem>>, vector<224x168xf32>
    %20 = arith.addf %19, %18 : vector<224x168xf32>
    %c0_25 = arith.constant 0 : index
    %c0_26 = arith.constant 0 : index
    %21 = vector.load %arg13[%c0_25, %c0_26] : memref<224x168xf32, #tpu.memory_space<vmem>>, vector<224x168xf32>
    tpu.vector_store %arg13[%c0_25, %c0_26], %20 {strides = array<i32>} : memref<224x168xf32, #tpu.memory_space<vmem>>, vector<224x168xf32>,
    %c3 = arith.constant 3 : index
    %c0_27 = arith.constant 0 : index
    %c0_28 = arith.constant 0 : index
    %22 = vector.load %arg1[%c3, %c0_27, %c0_28] : memref<32x8x96xf32, #tpu.memory_space<vmem>>, vector<28x8x96xf32>
    %23 = vector.shape_cast %22 : vector<28x8x96xf32> to vector<224x96xf32>
    %c3_29 = arith.constant 3 : index
    %c0_30 = arith.constant 0 : index
    %c0_31 = arith.constant 0 : index
    %24 = vector.load %arg2[%c3_29, %c0_30, %c0_31] : memref<5x96x168xf32, #tpu.memory_space<vmem>>, vector<1x96x168xf32>
    %25 = vector.shape_cast %24 : vector<1x96x168xf32> to vector<96x168xf32>
    %cst_32 = arith.constant dense<0.000000e+00> : vector<224x168xf32>
    %26 = tpu.matmul %23, %25, %cst_32 {dimension_numbers = #tpu.dot_dimension_numbers<[1], [0], [0], [1], [0, 0, 1, 1], [], []>} : vector<224x96xf32>, vector<96x168xf32>, vector<224x168xf32> -> vector<224x168xf32>
    %c0_33 = arith.constant 0 : index
    %c0_34 = arith.constant 0 : index
    %27 = vector.load %arg13[%c0_33, %c0_34] : memref<224x168xf32, #tpu.memory_space<vmem>>, vector<224x168xf32>
    %28 = arith.addf %27, %26 : vector<224x168xf32>
    %c0_35 = arith.constant 0 : index
    %c0_36 = arith.constant 0 : index
    %29 = vector.load %arg13[%c0_35, %c0_36] : memref<224x168xf32, #tpu.memory_space<vmem>>, vector<224x168xf32>
    tpu.vector_store %arg13[%c0_35, %c0_36], %28 {strides = array<i32>} : memref<224x168xf32, #tpu.memory_space<vmem>>, vector<224x168xf32>,
    %c4 = arith.constant 4 : index
    %c0_37 = arith.constant 0 : index
    %c0_38 = arith.constant 0 : index
    %30 = vector.load %arg1[%c4, %c0_37, %c0_38] : memref<32x8x96xf32, #tpu.memory_space<vmem>>, vector<28x8x96xf32>
    %31 = vector.shape_cast %30 : vector<28x8x96xf32> to vector<224x96xf32>
    %c4_39 = arith.constant 4 : index
    %c0_40 = arith.constant 0 : index
    %c0_41 = arith.constant 0 : index
    %32 = vector.load %arg2[%c4_39, %c0_40, %c0_41] : memref<5x96x168xf32, #tpu.memory_space<vmem>>, vector<1x96x168xf32>
    %33 = vector.shape_cast %32 : vector<1x96x168xf32> to vector<96x168xf32>
    %cst_42 = arith.constant dense<0.000000e+00> : vector<224x168xf32>
    %34 = tpu.matmul %31, %33, %cst_42 {dimension_numbers = #tpu.dot_dimension_numbers<[1], [0], [0], [1], [0, 0, 1, 1], [], []>} : vector<224x96xf32>, vector<96x168xf32>, vector<224x168xf32> -> vector<224x168xf32>
    %c0_43 = arith.constant 0 : index
    %c0_44 = arith.constant 0 : index
    %35 = vector.load %arg13[%c0_43, %c0_44] : memref<224x168xf32, #tpu.memory_space<vmem>>, vector<224x168xf32>
    %36 = arith.addf %35, %34 : vector<224x168xf32>
    %c0_45 = arith.constant 0 : index
    %c0_46 = arith.constant 0 : index
    %37 = vector.load %arg13[%c0_45, %c0_46] : memref<224x168xf32, #tpu.memory_space<vmem>>, vector<224x168xf32>
    tpu.vector_store %arg13[%c0_45, %c0_46], %36 {strides = array<i32>} : memref<224x168xf32, #tpu.memory_space<vmem>>, vector<224x168xf32>,
    %c0_47 = arith.constant 0 : index
    %c0_48 = arith.constant 0 : index
    %38 = vector.load %arg13[%c0_47, %c0_48] : memref<224x168xf32, #tpu.memory_space<vmem>>, vector<224x168xf32>
    %c0_49 = arith.constant 0 : index
    %c0_50 = arith.constant 0 : index
    %39 = vector.load %arg3[%c0_49, %c0_50] : memref<1x168xf32, #tpu.memory_space<vmem>>, vector<1x168xf32>
    %40 = vector.broadcast %39 : vector<1x168xf32> to vector<224x168xf32>
    %41 = arith.addf %38, %40 : vector<224x168xf32>
    %cst_51 = arith.constant 0.000000e+00 : f32
    %42 = vector.broadcast %cst_51 : f32 to vector<224x168xf32>
    %43 = arith.maximumf %41, %42 : vector<224x168xf32>
    %44 = vector.shape_cast %43 : vector<224x168xf32> to vector<14x16x168xf32>
    %45 = vector.extract_strided_slice %44 {offsets = [0, 0, 0], sizes = [14, 8, 168], strides = [1, 1, 1]} : vector<14x16x168xf32> to vector<14x8x168xf32>
    %46 = vector.extract_strided_slice %44 {offsets = [0, 8, 0], sizes = [14, 8, 168], strides = [1, 1, 1]} : vector<14x16x168xf32> to vector<14x8x168xf32>
    %47 = arith.maximumf %45, %46 : vector<14x8x168xf32>
    %48 = vector.extract_strided_slice %47 {offsets = [0, 0, 0], sizes = [14, 8, 84], strides = [1, 1, 1]} : vector<14x8x168xf32> to vector<14x8x84xf32>
    %49 = vector.extract_strided_slice %47 {offsets = [0, 0, 84], sizes = [14, 8, 84], strides = [1, 1, 1]} : vector<14x8x168xf32> to vector<14x8x84xf32>
    %50 = arith.maximumf %48, %49 : vector<14x8x84xf32>
    %51 = vector.extract_strided_slice %50 {offsets = [0, 0, 0], sizes = [10, 8, 84], strides = [1, 1, 1]} : vector<14x8x84xf32> to vector<10x8x84xf32>
    %52 = vector.shape_cast %51 : vector<10x8x84xf32> to vector<80x84xf32>
    %c0_52 = arith.constant 0 : index
    %c0_53 = arith.constant 0 : index
    %c0_54 = arith.constant 0 : index
    %53 = vector.load %arg4[%c0_52, %c0_53, %c0_54] : memref<5x84x160xf32, #tpu.memory_space<vmem>>, vector<1x84x160xf32>
    %54 = vector.shape_cast %53 : vector<1x84x160xf32> to vector<84x160xf32>
    %cst_55 = arith.constant dense<0.000000e+00> : vector<80x160xf32>
    %55 = tpu.matmul %52, %54, %cst_55 {dimension_numbers = #tpu.dot_dimension_numbers<[1], [0], [0], [1], [0, 0, 1, 1], [], []>} : vector<80x84xf32>, vector<84x160xf32>, vector<80x160xf32> -> vector<80x160xf32>
    %c0_56 = arith.constant 0 : index
    %c0_57 = arith.constant 0 : index
    %56 = vector.load %arg14[%c0_56, %c0_57] : memref<80x160xf32, #tpu.memory_space<vmem>>, vector<80x160xf32>
    tpu.vector_store %arg14[%c0_56, %c0_57], %55 {strides = array<i32>} : memref<80x160xf32, #tpu.memory_space<vmem>>, vector<80x160xf32>,
    %57 = vector.extract_strided_slice %50 {offsets = [1, 0, 0], sizes = [10, 8, 84], strides = [1, 1, 1]} : vector<14x8x84xf32> to vector<10x8x84xf32>
    %58 = vector.shape_cast %57 : vector<10x8x84xf32> to vector<80x84xf32>
    %c1_58 = arith.constant 1 : index
    %c0_59 = arith.constant 0 : index
    %c0_60 = arith.constant 0 : index
    %59 = vector.load %arg4[%c1_58, %c0_59, %c0_60] : memref<5x84x160xf32, #tpu.memory_space<vmem>>, vector<1x84x160xf32>
    %60 = vector.shape_cast %59 : vector<1x84x160xf32> to vector<84x160xf32>
    %cst_61 = arith.constant dense<0.000000e+00> : vector<80x160xf32>
    %61 = tpu.matmul %58, %60, %cst_61 {dimension_numbers = #tpu.dot_dimension_numbers<[1], [0], [0], [1], [0, 0, 1, 1], [], []>} : vector<80x84xf32>, vector<84x160xf32>, vector<80x160xf32> -> vector<80x160xf32>
    %c0_62 = arith.constant 0 : index
    %c0_63 = arith.constant 0 : index
    %62 = vector.load %arg14[%c0_62, %c0_63] : memref<80x160xf32, #tpu.memory_space<vmem>>, vector<80x160xf32>
    %63 = arith.addf %62, %61 : vector<80x160xf32>
    %c0_64 = arith.constant 0 : index
    %c0_65 = arith.constant 0 : index
    %64 = vector.load %arg14[%c0_64, %c0_65] : memref<80x160xf32, #tpu.memory_space<vmem>>, vector<80x160xf32>
    tpu.vector_store %arg14[%c0_64, %c0_65], %63 {strides = array<i32>} : memref<80x160xf32, #tpu.memory_space<vmem>>, vector<80x160xf32>,
    %65 = vector.extract_strided_slice %50 {offsets = [2, 0, 0], sizes = [10, 8, 84], strides = [1, 1, 1]} : vector<14x8x84xf32> to vector<10x8x84xf32>
    %66 = vector.shape_cast %65 : vector<10x8x84xf32> to vector<80x84xf32>
    %c2_66 = arith.constant 2 : index
    %c0_67 = arith.constant 0 : index
    %c0_68 = arith.constant 0 : index
    %67 = vector.load %arg4[%c2_66, %c0_67, %c0_68] : memref<5x84x160xf32, #tpu.memory_space<vmem>>, vector<1x84x160xf32>
    %68 = vector.shape_cast %67 : vector<1x84x160xf32> to vector<84x160xf32>
    %cst_69 = arith.constant dense<0.000000e+00> : vector<80x160xf32>
    %69 = tpu.matmul %66, %68, %cst_69 {dimension_numbers = #tpu.dot_dimension_numbers<[1], [0], [0], [1], [0, 0, 1, 1], [], []>} : vector<80x84xf32>, vector<84x160xf32>, vector<80x160xf32> -> vector<80x160xf32>
    %c0_70 = arith.constant 0 : index
    %c0_71 = arith.constant 0 : index
    %70 = vector.load %arg14[%c0_70, %c0_71] : memref<80x160xf32, #tpu.memory_space<vmem>>, vector<80x160xf32>
    %71 = arith.addf %70, %69 : vector<80x160xf32>
    %c0_72 = arith.constant 0 : index
    %c0_73 = arith.constant 0 : index
    %72 = vector.load %arg14[%c0_72, %c0_73] : memref<80x160xf32, #tpu.memory_space<vmem>>, vector<80x160xf32>
    tpu.vector_store %arg14[%c0_72, %c0_73], %71 {strides = array<i32>} : memref<80x160xf32, #tpu.memory_space<vmem>>, vector<80x160xf32>,
    %73 = vector.extract_strided_slice %50 {offsets = [3, 0, 0], sizes = [10, 8, 84], strides = [1, 1, 1]} : vector<14x8x84xf32> to vector<10x8x84xf32>
    %74 = vector.shape_cast %73 : vector<10x8x84xf32> to vector<80x84xf32>
    %c3_74 = arith.constant 3 : index
    %c0_75 = arith.constant 0 : index
    %c0_76 = arith.constant 0 : index
    %75 = vector.load %arg4[%c3_74, %c0_75, %c0_76] : memref<5x84x160xf32, #tpu.memory_space<vmem>>, vector<1x84x160xf32>
    %76 = vector.shape_cast %75 : vector<1x84x160xf32> to vector<84x160xf32>
    %cst_77 = arith.constant dense<0.000000e+00> : vector<80x160xf32>
    %77 = tpu.matmul %74, %76, %cst_77 {dimension_numbers = #tpu.dot_dimension_numbers<[1], [0], [0], [1], [0, 0, 1, 1], [], []>} : vector<80x84xf32>, vector<84x160xf32>, vector<80x160xf32> -> vector<80x160xf32>
    %c0_78 = arith.constant 0 : index
    %c0_79 = arith.constant 0 : index
    %78 = vector.load %arg14[%c0_78, %c0_79] : memref<80x160xf32, #tpu.memory_space<vmem>>, vector<80x160xf32>
    %79 = arith.addf %78, %77 : vector<80x160xf32>
    %c0_80 = arith.constant 0 : index
    %c0_81 = arith.constant 0 : index
    %80 = vector.load %arg14[%c0_80, %c0_81] : memref<80x160xf32, #tpu.memory_space<vmem>>, vector<80x160xf32>
    tpu.vector_store %arg14[%c0_80, %c0_81], %79 {strides = array<i32>} : memref<80x160xf32, #tpu.memory_space<vmem>>, vector<80x160xf32>,
    %81 = vector.extract_strided_slice %50 {offsets = [4, 0, 0], sizes = [10, 8, 84], strides = [1, 1, 1]} : vector<14x8x84xf32> to vector<10x8x84xf32>
    %82 = vector.shape_cast %81 : vector<10x8x84xf32> to vector<80x84xf32>
    %c4_82 = arith.constant 4 : index
    %c0_83 = arith.constant 0 : index
    %c0_84 = arith.constant 0 : index
    %83 = vector.load %arg4[%c4_82, %c0_83, %c0_84] : memref<5x84x160xf32, #tpu.memory_space<vmem>>, vector<1x84x160xf32>
    %84 = vector.shape_cast %83 : vector<1x84x160xf32> to vector<84x160xf32>
    %cst_85 = arith.constant dense<0.000000e+00> : vector<80x160xf32>
    %85 = tpu.matmul %82, %84, %cst_85 {dimension_numbers = #tpu.dot_dimension_numbers<[1], [0], [0], [1], [0, 0, 1, 1], [], []>} : vector<80x84xf32>, vector<84x160xf32>, vector<80x160xf32> -> vector<80x160xf32>
    %c0_86 = arith.constant 0 : index
    %c0_87 = arith.constant 0 : index
    %86 = vector.load %arg14[%c0_86, %c0_87] : memref<80x160xf32, #tpu.memory_space<vmem>>, vector<80x160xf32>
    %87 = arith.addf %86, %85 : vector<80x160xf32>
    %c0_88 = arith.constant 0 : index
    %c0_89 = arith.constant 0 : index
    %88 = vector.load %arg14[%c0_88, %c0_89] : memref<80x160xf32, #tpu.memory_space<vmem>>, vector<80x160xf32>
    tpu.vector_store %arg14[%c0_88, %c0_89], %87 {strides = array<i32>} : memref<80x160xf32, #tpu.memory_space<vmem>>, vector<80x160xf32>,
    %c0_90 = arith.constant 0 : index
    %c0_91 = arith.constant 0 : index
    %89 = vector.load %arg14[%c0_90, %c0_91] : memref<80x160xf32, #tpu.memory_space<vmem>>, vector<80x160xf32>
    %c0_92 = arith.constant 0 : index
    %c0_93 = arith.constant 0 : index
    %90 = vector.load %arg5[%c0_92, %c0_93] : memref<1x160xf32, #tpu.memory_space<vmem>>, vector<1x160xf32>
    %91 = vector.broadcast %90 : vector<1x160xf32> to vector<80x160xf32>
    %92 = arith.addf %89, %91 : vector<80x160xf32>
    %cst_94 = arith.constant 0.000000e+00 : f32
    %93 = vector.broadcast %cst_94 : f32 to vector<80x160xf32>
    %94 = arith.maximumf %92, %93 : vector<80x160xf32>
    %95 = vector.shape_cast %94 : vector<80x160xf32> to vector<5x16x160xf32>
    %96 = vector.extract_strided_slice %95 {offsets = [0, 0, 0], sizes = [5, 8, 160], strides = [1, 1, 1]} : vector<5x16x160xf32> to vector<5x8x160xf32>
    %97 = vector.extract_strided_slice %95 {offsets = [0, 8, 0], sizes = [5, 8, 160], strides = [1, 1, 1]} : vector<5x16x160xf32> to vector<5x8x160xf32>
    %98 = arith.maximumf %96, %97 : vector<5x8x160xf32>
    %99 = vector.extract_strided_slice %98 {offsets = [0, 0, 0], sizes = [5, 8, 80], strides = [1, 1, 1]} : vector<5x8x160xf32> to vector<5x8x80xf32>
    %100 = vector.extract_strided_slice %98 {offsets = [0, 0, 80], sizes = [5, 8, 80], strides = [1, 1, 1]} : vector<5x8x160xf32> to vector<5x8x80xf32>
    %101 = arith.maximumf %99, %100 : vector<5x8x80xf32>
    %102 = vector.extract_strided_slice %101 {offsets = [0, 0, 0], sizes = [1, 8, 80], strides = [1, 1, 1]} : vector<5x8x80xf32> to vector<1x8x80xf32>
    %103 = vector.shape_cast %102 : vector<1x8x80xf32> to vector<8x80xf32>
    %c0_95 = arith.constant 0 : index
    %c0_96 = arith.constant 0 : index
    %c0_97 = arith.constant 0 : index
    %104 = vector.load %arg6[%c0_95, %c0_96, %c0_97] : memref<5x80x120xf32, #tpu.memory_space<vmem>>, vector<1x80x120xf32>
    %105 = vector.shape_cast %104 : vector<1x80x120xf32> to vector<80x120xf32>
    %cst_98 = arith.constant dense<0.000000e+00> : vector<8x120xf32>
    %106 = tpu.matmul %103, %105, %cst_98 {dimension_numbers = #tpu.dot_dimension_numbers<[1], [0], [0], [1], [0, 0, 1, 1], [], []>} : vector<8x80xf32>, vector<80x120xf32>, vector<8x120xf32> -> vector<8x120xf32>
    %107 = vector.extract_strided_slice %101 {offsets = [1, 0, 0], sizes = [1, 8, 80], strides = [1, 1, 1]} : vector<5x8x80xf32> to vector<1x8x80xf32>
    %108 = vector.shape_cast %107 : vector<1x8x80xf32> to vector<8x80xf32>
    %c1_99 = arith.constant 1 : index
    %c0_100 = arith.constant 0 : index
    %c0_101 = arith.constant 0 : index
    %109 = vector.load %arg6[%c1_99, %c0_100, %c0_101] : memref<5x80x120xf32, #tpu.memory_space<vmem>>, vector<1x80x120xf32>
    %110 = vector.shape_cast %109 : vector<1x80x120xf32> to vector<80x120xf32>
    %cst_102 = arith.constant dense<0.000000e+00> : vector<8x120xf32>
    %111 = tpu.matmul %108, %110, %cst_102 {dimension_numbers = #tpu.dot_dimension_numbers<[1], [0], [0], [1], [0, 0, 1, 1], [], []>} : vector<8x80xf32>, vector<80x120xf32>, vector<8x120xf32> -> vector<8x120xf32>
    %112 = arith.addf %106, %111 : vector<8x120xf32>
    %113 = vector.extract_strided_slice %101 {offsets = [2, 0, 0], sizes = [1, 8, 80], strides = [1, 1, 1]} : vector<5x8x80xf32> to vector<1x8x80xf32>
    %114 = vector.shape_cast %113 : vector<1x8x80xf32> to vector<8x80xf32>
    %c2_103 = arith.constant 2 : index
    %c0_104 = arith.constant 0 : index
    %c0_105 = arith.constant 0 : index
    %115 = vector.load %arg6[%c2_103, %c0_104, %c0_105] : memref<5x80x120xf32, #tpu.memory_space<vmem>>, vector<1x80x120xf32>
    %116 = vector.shape_cast %115 : vector<1x80x120xf32> to vector<80x120xf32>
    %cst_106 = arith.constant dense<0.000000e+00> : vector<8x120xf32>
    %117 = tpu.matmul %114, %116, %cst_106 {dimension_numbers = #tpu.dot_dimension_numbers<[1], [0], [0], [1], [0, 0, 1, 1], [], []>} : vector<8x80xf32>, vector<80x120xf32>, vector<8x120xf32> -> vector<8x120xf32>
    %118 = arith.addf %112, %117 : vector<8x120xf32>
    %119 = vector.extract_strided_slice %101 {offsets = [3, 0, 0], sizes = [1, 8, 80], strides = [1, 1, 1]} : vector<5x8x80xf32> to vector<1x8x80xf32>
    %120 = vector.shape_cast %119 : vector<1x8x80xf32> to vector<8x80xf32>
    %c3_107 = arith.constant 3 : index
    %c0_108 = arith.constant 0 : index
    %c0_109 = arith.constant 0 : index
    %121 = vector.load %arg6[%c3_107, %c0_108, %c0_109] : memref<5x80x120xf32, #tpu.memory_space<vmem>>, vector<1x80x120xf32>
    %122 = vector.shape_cast %121 : vector<1x80x120xf32> to vector<80x120xf32>
    %cst_110 = arith.constant dense<0.000000e+00> : vector<8x120xf32>
    %123 = tpu.matmul %120, %122, %cst_110 {dimension_numbers = #tpu.dot_dimension_numbers<[1], [0], [0], [1], [0, 0, 1, 1], [], []>} : vector<8x80xf32>, vector<80x120xf32>, vector<8x120xf32> -> vector<8x120xf32>
    %124 = arith.addf %118, %123 : vector<8x120xf32>
    %125 = vector.extract_strided_slice %101 {offsets = [4, 0, 0], sizes = [1, 8, 80], strides = [1, 1, 1]} : vector<5x8x80xf32> to vector<1x8x80xf32>
    %126 = vector.shape_cast %125 : vector<1x8x80xf32> to vector<8x80xf32>
    %c4_111 = arith.constant 4 : index
    %c0_112 = arith.constant 0 : index
    %c0_113 = arith.constant 0 : index
    %127 = vector.load %arg6[%c4_111, %c0_112, %c0_113] : memref<5x80x120xf32, #tpu.memory_space<vmem>>, vector<1x80x120xf32>
    %128 = vector.shape_cast %127 : vector<1x80x120xf32> to vector<80x120xf32>
    %cst_114 = arith.constant dense<0.000000e+00> : vector<8x120xf32>
    %129 = tpu.matmul %126, %128, %cst_114 {dimension_numbers = #tpu.dot_dimension_numbers<[1], [0], [0], [1], [0, 0, 1, 1], [], []>} : vector<8x80xf32>, vector<80x120xf32>, vector<8x120xf32> -> vector<8x120xf32>
    %130 = arith.addf %124, %129 : vector<8x120xf32>
    %c0_115 = arith.constant 0 : index
    %c0_116 = arith.constant 0 : index
    %131 = vector.load %arg7[%c0_115, %c0_116] : memref<1x120xf32, #tpu.memory_space<vmem>>, vector<1x120xf32>
    %132 = vector.broadcast %131 : vector<1x120xf32> to vector<8x120xf32>
    %133 = arith.addf %130, %132 : vector<8x120xf32>
    %cst_117 = arith.constant 0.000000e+00 : f32
    %134 = vector.broadcast %cst_117 : f32 to vector<8x120xf32>
    %135 = arith.maximumf %133, %134 : vector<8x120xf32>
    %c0_118 = arith.constant 0 : index
    %c0_119 = arith.constant 0 : index
    %136 = vector.load %arg8[%c0_118, %c0_119] : memref<120x84xf32, #tpu.memory_space<vmem>>, vector<120x84xf32>
    %cst_120 = arith.constant dense<0.000000e+00> : vector<8x84xf32>
    %137 = tpu.matmul %135, %136, %cst_120 {dimension_numbers = #tpu.dot_dimension_numbers<[1], [0], [0], [1], [0, 0, 1, 1], [], []>} : vector<8x120xf32>, vector<120x84xf32>, vector<8x84xf32> -> vector<8x84xf32>
    %c0_121 = arith.constant 0 : index
    %c0_122 = arith.constant 0 : index
    %138 = vector.load %arg9[%c0_121, %c0_122] : memref<1x84xf32, #tpu.memory_space<vmem>>, vector<1x84xf32>
    %139 = vector.broadcast %138 : vector<1x84xf32> to vector<8x84xf32>
    %140 = arith.addf %137, %139 : vector<8x84xf32>
    %cst_123 = arith.constant 0.000000e+00 : f32
    %141 = vector.broadcast %cst_123 : f32 to vector<8x84xf32>
    %142 = arith.maximumf %140, %141 : vector<8x84xf32>
    %c0_124 = arith.constant 0 : index
    %c0_125 = arith.constant 0 : index
    %143 = vector.load %arg10[%c0_124, %c0_125] : memref<84x10xf32, #tpu.memory_space<vmem>>, vector<84x10xf32>
    %cst_126 = arith.constant dense<0.000000e+00> : vector<8x10xf32>
    %144 = tpu.matmul %142, %143, %cst_126 {dimension_numbers = #tpu.dot_dimension_numbers<[1], [0], [0], [1], [0, 0, 1, 1], [], []>} : vector<8x84xf32>, vector<84x10xf32>, vector<8x10xf32> -> vector<8x10xf32>
    %c0_127 = arith.constant 0 : index
    %c0_128 = arith.constant 0 : index
    %145 = vector.load %arg11[%c0_127, %c0_128] : memref<1x10xf32, #tpu.memory_space<vmem>>, vector<1x10xf32>
    %146 = vector.broadcast %145 : vector<1x10xf32> to vector<8x10xf32>
    %147 = arith.addf %144, %146 : vector<8x10xf32>
    %c0_129 = arith.constant 0 : index
    %c0_130 = arith.constant 0 : index
    %148 = vector.load %arg12[%c0_129, %c0_130] : memref<8x10xf32, #tpu.memory_space<vmem>>, vector<8x10xf32>
    tpu.vector_store %arg12[%c0_129, %c0_130], %147 {strides = array<i32>} : memref<8x10xf32, #tpu.memory_space<vmem>>, vector<8x10xf32>,
    return
  }
  func.func @transform_0(%arg0: i32) -> (i32, i32, i32) {
    %c0_i32 = arith.constant 0 : i32
    %c0_i32_0 = arith.constant 0 : i32
    %c0_i32_1 = arith.constant 0 : i32
    return %c0_i32, %arg0, %c0_i32_0 : i32, i32, i32
  }
  func.func @transform_1(%arg0: i32) -> (i32, i32, i32) {
    %c0_i32 = arith.constant 0 : i32
    %c0_i32_0 = arith.constant 0 : i32
    %c0_i32_1 = arith.constant 0 : i32
    %c0_i32_2 = arith.constant 0 : i32
    return %c0_i32, %c0_i32_0, %c0_i32_1 : i32, i32, i32
  }
  func.func @transform_2(%arg0: i32) -> (i32, i32) {
    %c0_i32 = arith.constant 0 : i32
    %c0_i32_0 = arith.constant 0 : i32
    %c0_i32_1 = arith.constant 0 : i32
    return %c0_i32, %c0_i32_0 : i32, i32
  }
  func.func @transform_3(%arg0: i32) -> (i32, i32, i32) {
    %c0_i32 = arith.constant 0 : i32
    %c0_i32_0 = arith.constant 0 : i32
    %c0_i32_1 = arith.constant 0 : i32
    %c0_i32_2 = arith.constant 0 : i32
    return %c0_i32, %c0_i32_0, %c0_i32_1 : i32, i32, i32
  }
  func.func @transform_4(%arg0: i32) -> (i32, i32) {
    %c0_i32 = arith.constant 0 : i32
    %c0_i32_0 = arith.constant 0 : i32
    %c0_i32_1 = arith.constant 0 : i32
    return %c0_i32, %c0_i32_0 : i32, i32
  }
  func.func @transform_5(%arg0: i32) -> (i32, i32, i32) {
    %c0_i32 = arith.constant 0 : i32
    %c0_i32_0 = arith.constant 0 : i32
    %c0_i32_1 = arith.constant 0 : i32
    %c0_i32_2 = arith.constant 0 : i32
    return %c0_i32, %c0_i32_0, %c0_i32_1 : i32, i32, i32
  }
  func.func @transform_6(%arg0: i32) -> (i32, i32) {
    %c0_i32 = arith.constant 0 : i32
    %c0_i32_0 = arith.constant 0 : i32
    %c0_i32_1 = arith.constant 0 : i32
    return %c0_i32, %c0_i32_0 : i32, i32
  }
  func.func @transform_7(%arg0: i32) -> (i32, i32) {
    %c0_i32 = arith.constant 0 : i32
    %c0_i32_0 = arith.constant 0 : i32
    %c0_i32_1 = arith.constant 0 : i32
    return %c0_i32, %c0_i32_0 : i32, i32
  }
  func.func @transform_8(%arg0: i32) -> (i32, i32) {
    %c0_i32 = arith.constant 0 : i32
    %c0_i32_0 = arith.constant 0 : i32
    %c0_i32_1 = arith.constant 0 : i32
    return %c0_i32, %c0_i32_0 : i32, i32
  }
  func.func @transform_9(%arg0: i32) -> (i32, i32) {
    %c0_i32 = arith.constant 0 : i32
    %c0_i32_0 = arith.constant 0 : i32
    %c0_i32_1 = arith.constant 0 : i32
    return %c0_i32, %c0_i32_0 : i32, i32
  }
  func.func @transform_10(%arg0: i32) -> (i32, i32) {
    %c0_i32 = arith.constant 0 : i32
    %c0_i32_0 = arith.constant 0 : i32
    %c0_i32_1 = arith.constant 0 : i32
    return %c0_i32, %c0_i32_0 : i32, i32
  }
  func.func @transform_11(%arg0: i32) -> (i32, i32) {
    %c0_i32 = arith.constant 0 : i32
    %c0_i32_0 = arith.constant 0 : i32
    return %arg0, %c0_i32 : i32, i32
  }
}

</mosaic_0001>

<bundles_post_ra>
// kernel: net_forward.1
= control target key start
LH: loop header
LB: loop body
LE: loop exit
PB: predicated region body
PF: predicated region fallthrough
CT: control target
= control target key end

     0   :  { %s9283_s0 = inlined_call_operand.vmem [shape: f32[32,16,96], index: 0, kind: input, shape index: {}]   ;;  %s9284_s1 = inlined_call_operand.vmem [shape: f32[5,96,168], index: 1, kind: input, shape index: {}]   ;;  %s9285_s2 = inlined_call_operand.vmem [shape: f32[1,168], index: 2, kind: input, shape index: {}]   ;;  %s9286_s3 = inlined_call_operand.vmem [shape: f32[5,84,160], index: 3, kind: input, shape index: {}]   ;;  %s9287_s4 = inlined_call_operand.vmem [shape: f32[1,160], index: 4, kind: input, shape index: {}]   ;;  %s9288_s5 = inlined_call_operand.vmem [shape: f32[5,80,120], index: 5, kind: input, shape index: {}]   ;;  %s9289_s6 = inlined_call_operand.vmem [shape: f32[1,120], index: 6, kind: input, shape index: {}]   ;;  %s9290_s7 = inlined_call_operand.vmem [shape: f32[120,84], index: 7, kind: input, shape index: {}]   ;;  %s9291_s8 = inlined_call_operand.vmem [shape: f32[1,84], index: 8, kind: input, shape index: {}]   ;;  %s9292_s9 = inlined_call_operand.vmem [shape: f32[84,10], index: 9, kind: input, shape index: {}]   ;;  %s9293_s10 = inlined_call_operand.vmem [shape: f32[1,10], index: 10, kind: input, shape index: {}]   ;;  %s9294_s11 = inlined_call_operand.hbm [shape: f32[16,10], index: 11, kind: output, shape index: {}]  }
   0x1   :  { %9296 = sst [smem:[#allocation9_spill]] %s9283_s0 }
   0x2   :  { %16 = vsyncpa [#allocation6], 0 }
   0x3   :  { %18 = vsyncpa [#allocation6 + $0x1], 0  ;;  %s6687_s17 = smov 0   ;;  %s6689_s18 = smov 0  }
   0x4   :  { %s6691_s19 = smov 0   ;;  %s6693_s20 = smov 0  }
   0x5 LB: > { %s9295_s21 = sadd.s32 4294967295, %s6619_s20   ;;  %s5367_s22 = sadd.s32 4294967294, %s6619_s20   ;;  %s6619_s20 = sphi %s6693_s20, %s9306_s20   ;;  %s6615_s19 = sphi %s6691_s19, %s9305_s19   ;;  %s6611_s18 = sphi %s6689_s18, %s9304_s18   ;;  %s6607_s17 = sphi %s6687_s17, %s9303_s17  }
   0x6   : > { %s6710_s23 = sadd.s32 1, %s6619_s20   ;;  %s31_s24 = sadd.s32 1, %s6615_s19 }
   0x7   : > { %s28_s25 = ssub.s32 %s6619_s20, %s6710_s23  ;;  %p38_p0 = scmp.ne.s32.totalorder %s6615_s19, %s6611_s18 }
   0x8   : > { %p29_p1 = scmp.eq.s32.totalorder %s28_s25, 0  ;;  %p39_p2 = scmp.eq.s32.totalorder %s6619_s20, 0 }
   0x9   : > { %p278_p3 = scmp.eq.s32.totalorder %s9295_s21, 1  ;;  %p283_p4 = scmp.ne.s32.totalorder %s6611_s18, %s6607_s17 }
   0xa   : > { %s6723_s26 = scalar_select %p29_p1, %s6615_s19, %s31_s24  }
   0xb   : > { %p40_p5 = por %p39_p2, %p38_p0  ;;  %p6725_p6 = por %p278_p3, %p38_p0 }
   0xc   : > { %9297 = sst [smem:[#allocation8_spill]] %s6723_s26  ;;  %p284_p7 = scmp.eq.s32.totalorder %s5367_s22, 1 }
   0xd   : > { %p5369_p9 = scmp.ge.s32.totalorder %s6619_s20, 2 }
   0xe   : > { %p6729_p8 = por %p284_p7, %p283_p4 }
   0xf   : > { %330 = sbr.rel (%p5369_p9) target bundleno = 48 (0x30), region = 56 }
  0x16   : > { %333 = sbr.rel (!%p40_p5) target bundleno = 48 (0x30), region = 60  ;;  %s335_s29 = sand.u32 (%p40_p5), 1, %s6615_s19  }
  0x17   : > { %s5371_s30 = sshll.u32 (%p40_p5), %s6619_s20, 3  ;;  %s5370_s12 = sshll.u32 (%p40_p5), %s335_s29, 8 }
  0x18   : > { %s9300_s0 = sld [smem:[#allocation9_spill]] (%p40_p5)  ;;  %s6746_s16 = scalar_lea.vmem (%p40_p5), [#allocation4], %s5370_s12 }
  0x1e   : > { %s6741_s15 = scalar_lea.vmem %s9300_s0, %s5371_s30 }
  0x1f   : > { %v429_v0 = vld [vmem:[%s6741_s15] sm:$0xff]  ;;  %v431_v1 = vld [vmem:[%s6741_s15 + $0x10] sm:$0xff] }
  0x20   : > { %v433_v2 = vld [vmem:[%s6741_s15 + $0x20] sm:$0xff]  ;;  %430 = vst [vmem:[%s6746_s16] sm:$0xff] %v429_v0  ;;  %432 = vst [vmem:[%s6746_s16 + $0x8] sm:$0xff] %v431_v1  ;;  %v435_v3 = vld [vmem:[%s6741_s15 + $0x30] sm:$0xff] }
  0x21   : > { %434 = vst [vmem:[%s6746_s16 + $0x10] sm:$0xff] %v433_v2  ;;  %v437_v4 = vld [vmem:[%s6741_s15 + $0x40] sm:$0xff]  ;;  %v439_v5 = vld [vmem:[%s6741_s15 + $0x50] sm:$0xff]  ;;  %436 = vst [vmem:[%s6746_s16 + $0x18] sm:$0xff] %v435_v3 }
  0x22   : > { %438 = vst [vmem:[%s6746_s16 + $0x20] sm:$0xff] %v437_v4  ;;  %440 = vst [vmem:[%s6746_s16 + $0x28] sm:$0xff] %v439_v5  ;;  %v441_v6 = vld [vmem:[%s6741_s15 + $0x60] sm:$0xff]  ;;  %v443_v7 = vld [vmem:[%s6741_s15 + $0x70] sm:$0xff] }
  0x23   : > { %v445_v8 = vld [vmem:[%s6741_s15 + $0x80] sm:$0xff]  ;;  %442 = vst [vmem:[%s6746_s16 + $0x30] sm:$0xff] %v441_v6  ;;  %444 = vst [vmem:[%s6746_s16 + $0x38] sm:$0xff] %v443_v7  ;;  %v447_v9 = vld [vmem:[%s6741_s15 + $0x90] sm:$0xff] }
  0x24   : > { %446 = vst [vmem:[%s6746_s16 + $0x40] sm:$0xff] %v445_v8  ;;  %v449_v10 = vld [vmem:[%s6741_s15 + $0xa0] sm:$0xff]  ;;  %v451_v11 = vld [vmem:[%s6741_s15 + $0xb0] sm:$0xff]  ;;  %448 = vst [vmem:[%s6746_s16 + $0x48] sm:$0xff] %v447_v9 }
  0x25   : > { %450 = vst [vmem:[%s6746_s16 + $0x50] sm:$0xff] %v449_v10  ;;  %452 = vst [vmem:[%s6746_s16 + $0x58] sm:$0xff] %v451_v11  ;;  %v453_v12 = vld [vmem:[%s6741_s15 + $0xc0] sm:$0xff]  ;;  %v455_v13 = vld [vmem:[%s6741_s15 + $0xd0] sm:$0xff] }
  0x26   : > { %v457_v14 = vld [vmem:[%s6741_s15 + $0xe0] sm:$0xff]  ;;  %454 = vst [vmem:[%s6746_s16 + $0x60] sm:$0xff] %v453_v12  ;;  %456 = vst [vmem:[%s6746_s16 + $0x68] sm:$0xff] %v455_v13  ;;  %v459_v15 = vld [vmem:[%s6741_s15 + $0xf0] sm:$0xff] }
  0x27   : > { %458 = vst [vmem:[%s6746_s16 + $0x70] sm:$0xff] %v457_v14  ;;  %v461_v16 = vld [vmem:[%s6741_s15 + $0x100] sm:$0xff]  ;;  %v463_v17 = vld [vmem:[%s6741_s15 + $0x110] sm:$0xff]  ;;  %460 = vst [vmem:[%s6746_s16 + $0x78] sm:$0xff] %v459_v15 }
  0x28   : > { %462 = vst [vmem:[%s6746_s16 + $0x80] sm:$0xff] %v461_v16  ;;  %464 = vst [vmem:[%s6746_s16 + $0x88] sm:$0xff] %v463_v17  ;;  %v465_v18 = vld [vmem:[%s6741_s15 + $0x120] sm:$0xff]  ;;  %v467_v19 = vld [vmem:[%s6741_s15 + $0x130] sm:$0xff] }
  0x29   : > { %v469_v20 = vld [vmem:[%s6741_s15 + $0x140] sm:$0xff]  ;;  %466 = vst [vmem:[%s6746_s16 + $0x90] sm:$0xff] %v465_v18  ;;  %468 = vst [vmem:[%s6746_s16 + $0x98] sm:$0xff] %v467_v19  ;;  %v471_v21 = vld [vmem:[%s6741_s15 + $0x150] sm:$0xff] }
  0x2a   : > { %470 = vst [vmem:[%s6746_s16 + $0xa0] sm:$0xff] %v469_v20  ;;  %v473_v22 = vld [vmem:[%s6741_s15 + $0x160] sm:$0xff]  ;;  %v475_v23 = vld [vmem:[%s6741_s15 + $0x170] sm:$0xff]  ;;  %472 = vst [vmem:[%s6746_s16 + $0xa8] sm:$0xff] %v471_v21 }
  0x2b   : > { %474 = vst [vmem:[%s6746_s16 + $0xb0] sm:$0xff] %v473_v22  ;;  %476 = vst [vmem:[%s6746_s16 + $0xb8] sm:$0xff] %v475_v23  ;;  %v477_v24 = vld [vmem:[%s6741_s15 + $0x180] sm:$0xff]  ;;  %v479_v25 = vld [vmem:[%s6741_s15 + $0x190] sm:$0xff] }
  0x2c   : > { %v481_v26 = vld [vmem:[%s6741_s15 + $0x1a0] sm:$0xff]  ;;  %478 = vst [vmem:[%s6746_s16 + $0xc0] sm:$0xff] %v477_v24  ;;  %480 = vst [vmem:[%s6746_s16 + $0xc8] sm:$0xff] %v479_v25  ;;  %v483_v27 = vld [vmem:[%s6741_s15 + $0x1b0] sm:$0xff] }
  0x2d   : > { %482 = vst [vmem:[%s6746_s16 + $0xd0] sm:$0xff] %v481_v26  ;;  %v485_v28 = vld [vmem:[%s6741_s15 + $0x1c0] sm:$0xff]  ;;  %v487_v29 = vld [vmem:[%s6741_s15 + $0x1d0] sm:$0xff]  ;;  %484 = vst [vmem:[%s6746_s16 + $0xd8] sm:$0xff] %v483_v27 }
  0x2e   : > { %486 = vst [vmem:[%s6746_s16 + $0xe0] sm:$0xff] %v485_v28  ;;  %488 = vst [vmem:[%s6746_s16 + $0xe8] sm:$0xff] %v487_v29  ;;  %v489_v30 = vld [vmem:[%s6741_s15 + $0x1e0] sm:$0xff]  ;;  %v491_v31 = vld [vmem:[%s6741_s15 + $0x1f0] sm:$0xff] }
  0x2f   : > { %490 = vst [vmem:[%s6746_s16 + $0xf0] sm:$0xff] %v489_v30  ;;  %492 = vst [vmem:[%s6746_s16 + $0xf8] sm:$0xff] %v491_v31 }
  0x30 PF: > { %p5372_p10 = scmp.ge.s32.totalorder %s6619_s20, 1  ;;  %p497_p11 = scmp.lt.s32.totalorder %s6619_s20, 3 }
  0x32   : > { %p498_p12 = pnand %p5372_p10, %p497_p11 }
  0x33   : > { %v572_v32 = vld [vmem:[%s9284_s1 + $0x8] sm:$0xff] (!%p498_p12)  ;;  %v574_v33 = vld [vmem:[%s9284_s1 + $0x18] sm:$0xff] (!%p498_p12)  ;;  %v571_v34 = vld [vmem:[%s9284_s1] sm:$0xff] (!%p498_p12)  ;;  %v6621_v39 = vmov (!%p498_p12), 0.0   ;;  %s6934_s29 = sand.u32 (!%p498_p12), 1, %s6611_s18   ;;  %vm595_vm0 = vcmask (!%p498_p12), 785408  }
  0x34   : > { %501 = sbr.rel (%p498_p12) target bundleno = 1870 (0x74e), region = 98  ;;  %v6182_v35 = vpack.c.bf16 (!%p498_p12), %v574_v33, %v572_v32  ;;  %v573_v36 = vld [vmem:[%s9284_s1 + $0x10] sm:$0xff] (!%p498_p12)  ;;  %v576_v37 = vld [vmem:[%s9284_s1 + $0x28] sm:$0xff] (!%p498_p12)  ;;  %v578_v38 = vld [vmem:[%s9284_s1 + $0x38] sm:$0xff] (!%p498_p12)  ;;  %744 = vmatprep.mubr.f32.mxu0 (!%p498_p12), %v6621_v39  ;;  %1172 = vmatprep.mubr.f32.mxu1 (!%p498_p12), %v6621_v39  ;;  %s5373_s30 = sshll.u32 (!%p498_p12), %s6934_s29, 8  ;;  %vm914_vm1 = vcmask (!%p498_p12), 326656  }
  0x35   : > { %v6184_v40 = vpack.c.bf16 (!%p498_p12), %v573_v36, %v571_v34  ;;  %v6186_v41 = vpack.c.bf16 (!%p498_p12), %v578_v38, %v576_v37  ;;  %v575_v42 = vld [vmem:[%s9284_s1 + $0x20] sm:$0xff] (!%p498_p12)  ;;  %v577_v43 = vld [vmem:[%s9284_s1 + $0x30] sm:$0xff] (!%p498_p12)  ;;  %v580_v44 = vld [vmem:[%s9284_s1 + $0x48] sm:$0xff] (!%p498_p12)  ;;  %s6979_s16 = scalar_lea.vmem (!%p498_p12), [#allocation4], %s5373_s30  ;;  %vm3514_vm2 = vcmask (!%p498_p12), 1043456   ;;  %s6622_s13 = smov (!%p498_p12), 44  }
  0x36   : > { %6183 = vmatprep.subr.bf16.mxu0 (!%p498_p12), %v6182_v35  ;;  %v582_v45 = vld [vmem:[%s9284_s1 + $0x58] sm:$0xff] (!%p498_p12)  ;;  %v5432_v46 = vld [vmem:[%s9284_s1 + $0xc8] sm:$0xff] (!%p498_p12)  ;;  %v6188_v48 = vpack.c.bf16 (!%p498_p12), %v577_v43, %v575_v42  ;;  %v579_v50 = vld [vmem:[%s9284_s1 + $0x40] sm:$0xff] (!%p498_p12)  ;;  %vm3418_vm3 = vcmask (!%p498_p12), 359424   ;;  %vm3483_vm4 = vcmask (!%p498_p12), 687104   ;;  %vm3647_vm5 = vcmask (!%p498_p12), 261120  }
  0x37   : > { %v5434_v47 = vld [vmem:[%s9284_s1 + $0xd8] sm:$0xff] (!%p498_p12)  ;;  %6185 = vmatpush1.bf16.msra.mxu0 (!%p498_p12), %v6184_v40  ;;  %v5431_v51 = vld [vmem:[%s9284_s1 + $0xc0] sm:$0xff] (!%p498_p12)  ;;  %v6190_v52 = vpack.c.bf16 (!%p498_p12), %v582_v45, %v580_v44  ;;  %v581_v53 = vld [vmem:[%s9284_s1 + $0x50] sm:$0xff] (!%p498_p12)  ;;  %vm6624_vm6 = vmmov (!%p498_p12), 0   ;;  %s6625_s25 = smov (!%p498_p12), 48   ;;  %vm4647_vm7 = vcmask (!%p498_p12), 392192  }
  0x38   : > { %v6206_v49 = vpack.c.bf16 (!%p498_p12), %v5434_v47, %v5432_v46  ;;  %6187 = vmatprep.subr.bf16.mxu0 (!%p498_p12), %v6186_v41  ;;  %v5433_v54 = vld [vmem:[%s9284_s1 + $0xd0] sm:$0xff] (!%p498_p12)  ;;  %v584_v55 = vld [vmem:[%s9284_s1 + $0x68] sm:$0xff] (!%p498_p12)  ;;  %v586_v57 = vld [vmem:[%s9284_s1 + $0x78] sm:$0xff] (!%p498_p12)  ;;  %v6192_v63 = vpack.c.bf16 (!%p498_p12), %v581_v53, %v579_v50  ;;  %vm4684_vm8 = vcmask (!%p498_p12), 654336   ;;  %vm5117_vm9 = vcmask (!%p498_p12), 982016   ;;  %s5374_s22 = sshll.u32 (!%p498_p12), %s6934_s29, 3 }
  0x39   : > { %v6208_v56 = vpack.c.bf16 (!%p498_p12), %v5433_v54, %v5431_v51  ;;  %v5436_v58 = vld [vmem:[%s9284_s1 + $0xe8] sm:$0xff] (!%p498_p12)  ;;  %v5438_v59 = vld [vmem:[%s9284_s1 + $0xf8] sm:$0xff] (!%p498_p12)  ;;  %v5435_v61 = vld [vmem:[%s9284_s1 + $0xe0] sm:$0xff] (!%p498_p12)  ;;  %v6194_v3 = vpack.c.bf16 (!%p498_p12), %v586_v57, %v584_v55  ;;  %s542_s26 = scalar_lea.vmem (!%p498_p12), [#allocation5], %s5374_s22  ;;  %vm5286_vm10 = vcmask (!%p498_p12), 80896   ;;  %s5289_s15 = scalar_lea.sflag (!%p498_p12), [#allocation6], %s6934_s29 }
  0x3a   : > { %6207 = vmatprep.subr.bf16.mxu1 (!%p498_p12), %v6206_v49  ;;  %v6210_v60 = vpack.c.bf16 (!%p498_p12), %v5438_v59, %v5436_v58  ;;  %v5437_v62 = vld [vmem:[%s9284_s1 + $0xf0] sm:$0xff] (!%p498_p12)  ;;  %v583_v0 = vld [vmem:[%s9284_s1 + $0x60] sm:$0xff] (!%p498_p12)  ;;  %v5440_v2 = vld [vmem:[%s9284_s1 + $0x108] sm:$0xff] (!%p498_p12)  ;;  %s5302_s12 = sshll.u32 (!%p498_p12), %s542_s26, 4  ;;  %s6626_s22 = smov (!%p498_p12), [#allocation5]   ;;  %s9241_s12 = int_to_ptr.vmem [resolvable:$true] %s5302_s12 }
  0x3b   : > { %6189 = vmatpush1.bf16.msra.mxu0 %v6188_v48  ;;  %6209 = vmatpush1.bf16.msra.mxu1 %v6208_v56  ;;  %v6212_v1 = vpack.c.bf16 %v5437_v62, %v5435_v61  ;;  %v585_v4 = vld [vmem:[%s9284_s1 + $0x70] sm:$0xff]  ;;  %v588_v5 = vld [vmem:[%s9284_s1 + $0x88] sm:$0xff]  ;;  %v5442_v6 = vld [vmem:[%s9284_s1 + $0x118] sm:$0xff]  ;;  %s6561_s24 = sshll.u32 %s6626_s22, 4  ;;  %s6562_s24 = int_to_ptr.vmem [resolvable:$false] %s6561_s24 }
  0x3c   : > { %6191 = vmatprep.subr.bf16.mxu0 %v6190_v52  ;;  %6211 = vmatprep.subr.bf16.mxu1 %v6210_v60  ;;  %v590_v7 = vld [vmem:[%s9284_s1 + $0x98] sm:$0xff]  ;;  %v6214_v8 = vpack.c.bf16 %v5442_v6, %v5440_v2  ;;  %v5439_v9 = vld [vmem:[%s9284_s1 + $0x100] sm:$0xff]  ;;  %v5441_v10 = vld [vmem:[%s9284_s1 + $0x110] sm:$0xff]  ;;  %v6196_v13 = vpack.c.bf16 %v585_v4, %v583_v0  ;;  %s6563_s0 = scalar_lea.vmem %s6562_s24, 256  ;;  %p6564_p2 = scmp.lt.s32.totalorder %s9241_s12, %s6562_s24 }
  0x3d   : > { %v5444_v11 = vld [vmem:[%s9284_s1 + $0x128] sm:$0xff]  ;;  %v5446_v12 = vld [vmem:[%s9284_s1 + $0x138] sm:$0xff]  ;;  %v587_v14 = vld [vmem:[%s9284_s1 + $0x80] sm:$0xff]  ;;  %v6216_v16 = vpack.c.bf16 %v5441_v10, %v5439_v9  ;;  %v6198_v17 = vpack.c.bf16 %v590_v7, %v588_v5 }
  0x3e   : > { %v589_v15 = vld [vmem:[%s9284_s1 + $0x90] sm:$0xff]  ;;  %v592_v18 = vld [vmem:[%s9284_s1 + $0xa8] sm:$0xff]  ;;  %v6218_v19 = vpack.c.bf16 %v5446_v12, %v5444_v11  ;;  %v5443_v20 = vld [vmem:[%s9284_s1 + $0x120] sm:$0xff] }
  0x3f   : > { %6193 = vmatpush1.bf16.msra.mxu0 %v6192_v63  ;;  %6213 = vmatpush1.bf16.msra.mxu1 %v6212_v1  ;;  %v5445_v21 = vld [vmem:[%s9284_s1 + $0x130] sm:$0xff]  ;;  %v594_v22 = vld [vmem:[%s9284_s1 + $0xb8] sm:$0xff]  ;;  %v5448_v23 = vld [vmem:[%s9284_s1 + $0x148] sm:$0xff]  ;;  %v6200_v25 = vpack.c.bf16 %v589_v15, %v587_v14 }
  0x40   : > { %6195 = vmatprep.subr.bf16.mxu0 %v6194_v3  ;;  %6215 = vmatprep.subr.bf16.mxu1 %v6214_v8  ;;  %v5450_v24 = vld [vmem:[%s9284_s1 + $0x158] sm:$0xff]  ;;  %v591_v26 = vld [vmem:[%s9284_s1 + $0xa0] sm:$0xff]  ;;  %v593_v27 = vld [vmem:[%s9284_s1 + $0xb0] sm:$0xff]  ;;  %v6220_v28 = vpack.c.bf16 %v5445_v21, %v5443_v20  ;;  %v6202_v29 = vpack.c.bf16 %v594_v22, %v592_v18 }
  0x41   : > { %v6222_v30 = vpack.c.bf16 %v5450_v24, %v5448_v23  ;;  %v5512_v31 = vld [vmem:[%s9284_s1 + $0x188] sm:$0xff]  ;;  %v5447_v32 = vld [vmem:[%s9284_s1 + $0x140] sm:$0xff]  ;;  %v5449_v33 = vld [vmem:[%s9284_s1 + $0x150] sm:$0xff]  ;;  %v6204_v37 = vpack.c.bf16 %v593_v27, %v591_v26 }
  0x42   : > { %v5514_v34 = vld [vmem:[%s9284_s1 + $0x198] sm:$0xff]  ;;  %v5452_v35 = vld [vmem:[%s9284_s1 + $0x168] sm:$0xff]  ;;  %v6224_v38 = vpack.c.bf16 %v5449_v33, %v5447_v32  ;;  %v5511_v41 = vld [vmem:[%s9284_s1 + $0x180] sm:$0xff] }
  0x43   : > { %6197 = vmatpush1.bf16.msra.mxu0 %v6196_v13  ;;  %6217 = vmatpush1.bf16.msra.mxu1 %v6216_v16  ;;  %v5454_v36 = vld [vmem:[%s9284_s1 + $0x178] sm:$0xff]  ;;  %v6230_v40 = vpack.c.bf16 %v5514_v34, %v5512_v31  ;;  %v5513_v42 = vld [vmem:[%s9284_s1 + $0x190] sm:$0xff]  ;;  %v5451_v44 = vld [vmem:[%s9284_s1 + $0x160] sm:$0xff] }
  0x44   : > { %6199 = vmatprep.subr.bf16.mxu0 %v6198_v17  ;;  %6219 = vmatprep.subr.bf16.mxu1 %v6218_v19  ;;  %v6226_v43 = vpack.c.bf16 %v5454_v36, %v5452_v35  ;;  %v5453_v45 = vld [vmem:[%s9284_s1 + $0x170] sm:$0xff]  ;;  %v5516_v46 = vld [vmem:[%s9284_s1 + $0x1a8] sm:$0xff]  ;;  %v5518_v47 = vld [vmem:[%s9284_s1 + $0x1b8] sm:$0xff]  ;;  %v6232_v49 = vpack.c.bf16 %v5513_v42, %v5511_v41 }
  0x45   : > { %v543_v48 = vld [vmem:[%s6979_s16] sm:$0xff]  ;;  %v6228_v50 = vpack.c.bf16 %v5453_v45, %v5451_v44  ;;  %v6234_v51 = vpack.c.bf16 %v5518_v47, %v5516_v46  ;;  %v5517_v53 = vld [vmem:[%s9284_s1 + $0x1b0] sm:$0xff]  ;;  %v5520_v54 = vld [vmem:[%s9284_s1 + $0x1c8] sm:$0xff] }
  0x46   : > { %v5515_v52 = vld [vmem:[%s9284_s1 + $0x1a0] sm:$0xff]  ;;  %v5522_v55 = vld [vmem:[%s9284_s1 + $0x1d8] sm:$0xff]  ;;  %v544_v56 = vld [vmem:[%s6979_s16 + $0x8] sm:$0xff] }
  0x47   : > { %6201 = vmatpush1.bf16.msra.mxu0 %v6200_v25  ;;  %6221 = vmatpush1.bf16.msra.mxu1 %v6220_v28  ;;  %v6236_v57 = vpack.c.bf16 %v5517_v53, %v5515_v52  ;;  %v6238_v58 = vpack.c.bf16 %v5522_v55, %v5520_v54  ;;  %v5519_v59 = vld [vmem:[%s9284_s1 + $0x1c0] sm:$0xff]  ;;  %v5521_v60 = vld [vmem:[%s9284_s1 + $0x1d0] sm:$0xff]  ;;  %v5524_v62 = vld [vmem:[%s9284_s1 + $0x1e8] sm:$0xff] }
  0x48   : > { %6203 = vmatprep.subr.bf16.mxu0 %v6202_v29  ;;  %6223 = vmatprep.subr.bf16.mxu1 %v6222_v30  ;;  %v7005_v61 = vld [vmem:[%s6979_s16 + $0x10] sm:$0xff]  ;;  %v5526_v63 = vld [vmem:[%s9284_s1 + $0x1f8] sm:$0xff]  ;;  %v5523_v0 = vld [vmem:[%s9284_s1 + $0x1e0] sm:$0xff]  ;;  %v6240_v3 = vpack.c.bf16 %v5521_v60, %v5519_v59 }
  0x49   : > { %v5592_v1 = vld [vmem:[%s9284_s1 + $0x248] sm:$0xff]  ;;  %v5594_v2 = vld [vmem:[%s9284_s1 + $0x258] sm:$0xff]  ;;  %v5525_v4 = vld [vmem:[%s9284_s1 + $0x1f0] sm:$0xff]  ;;  %v6242_v8 = vpack.c.bf16 %v5526_v63, %v5524_v62 }
  0x4a   : > { %v6254_v5 = vpack.c.bf16 %v5594_v2, %v5592_v1  ;;  %v5591_v6 = vld [vmem:[%s9284_s1 + $0x240] sm:$0xff]  ;;  %v5593_v7 = vld [vmem:[%s9284_s1 + $0x250] sm:$0xff]  ;;  %v5528_v9 = vld [vmem:[%s9284_s1 + $0x208] sm:$0xff]  ;;  %v6244_v20 = vpack.c.bf16 %v5525_v4, %v5523_v0 }
  0x4b   : > { %6205 = vmatpush1.bf16.msra.mxu0 %v6204_v37  ;;  %6225 = vmatpush1.bf16.msra.mxu1 %v6224_v38  ;;  %v6256_v10 = vpack.c.bf16 %v5593_v7, %v5591_v6  ;;  %v5596_v11 = vld [vmem:[%s9284_s1 + $0x268] sm:$0xff]  ;;  %v5598_v12 = vld [vmem:[%s9284_s1 + $0x278] sm:$0xff]  ;;  %v5595_v15 = vld [vmem:[%s9284_s1 + $0x260] sm:$0xff] }
  0x4c   : > { %6231 = vmatprep.subr.bf16.mxu0 %v6230_v40  ;;  %6227 = vmatprep.subr.bf16.mxu1 %v6226_v43  ;;  %v5530_v13 = vld [vmem:[%s9284_s1 + $0x218] sm:$0xff]  ;;  %v6258_v14 = vpack.c.bf16 %v5598_v12, %v5596_v11  ;;  %v5597_v16 = vld [vmem:[%s9284_s1 + $0x270] sm:$0xff]  ;;  %v5600_v17 = vld [vmem:[%s9284_s1 + $0x288] sm:$0xff] }
  0x4d   : > { %v5602_v18 = vld [vmem:[%s9284_s1 + $0x298] sm:$0xff]  ;;  %v6246_v21 = vpack.c.bf16 %v5530_v13, %v5528_v9  ;;  %v5527_v22 = vld [vmem:[%s9284_s1 + $0x200] sm:$0xff]  ;;  %v5529_v23 = vld [vmem:[%s9284_s1 + $0x210] sm:$0xff]  ;;  %v6260_v25 = vpack.c.bf16 %v5597_v16, %v5595_v15 }
  0x4e   : > { %5375 = vmatmul.mubr.msk.f32.vlgmr.msra.gmra.mrb[0].mxu0 %vm595_vm0, %v543_v48  ;;  %v7064_v19 = vld [vmem:[%s6979_s16 + $0x18] sm:$0xff]  ;;  %v5532_v24 = vld [vmem:[%s9284_s1 + $0x228] sm:$0xff]  ;;  %v6262_v27 = vpack.c.bf16 %v5602_v18, %v5600_v17  ;;  %v5599_v28 = vld [vmem:[%s9284_s1 + $0x280] sm:$0xff]  ;;  %v6248_v33 = vpack.c.bf16 %v5529_v23, %v5527_v22 }
  0x4f   : > { %6233 = vmatpush1.bf16.msra.mxu0 %v6232_v49  ;;  %750 = vmatprep.mubr.f32.mxu0 %v6621_v39  ;;  %v5534_v26 = vld [vmem:[%s9284_s1 + $0x238] sm:$0xff]  ;;  %v5601_v29 = vld [vmem:[%s9284_s1 + $0x290] sm:$0xff]  ;;  %v5604_v30 = vld [vmem:[%s9284_s1 + $0x2a8] sm:$0xff] }
  0x50   : > { %6229 = vmatpush1.bf16.msra.mxu1 %v6228_v50  ;;  %6235 = vmatprep.subr.bf16.mxu0 %v6234_v51  ;;  %v5606_v31 = vld [vmem:[%s9284_s1 + $0x2b8] sm:$0xff]  ;;  %v7097_v32 = vld [vmem:[%s6979_s16 + $0x20] sm:$0xff]  ;;  %v6250_v34 = vpack.c.bf16 %v5534_v26, %v5532_v24  ;;  %v5533_v36 = vld [vmem:[%s9284_s1 + $0x230] sm:$0xff]  ;;  %v6264_v37 = vpack.c.bf16 %v5601_v29, %v5599_v28 }
  0x51   : > { %6255 = vmatprep.subr.bf16.mxu1 %v6254_v5  ;;  %v5531_v35 = vld [vmem:[%s9284_s1 + $0x220] sm:$0xff]  ;;  %v6266_v40 = vpack.c.bf16 %v5606_v31, %v5604_v30  ;;  %v5605_v41 = vld [vmem:[%s9284_s1 + $0x2b0] sm:$0xff]  ;;  %v5672_v42 = vld [vmem:[%s9284_s1 + $0x308] sm:$0xff] }
  0x52   : > { %5376 = vmatmul.mubr.msk.f32.gmra.mrb[2].mxu0 %vm595_vm0, %v544_v56  ;;  %v5603_v38 = vld [vmem:[%s9284_s1 + $0x2a0] sm:$0xff]  ;;  %v5674_v43 = vld [vmem:[%s9284_s1 + $0x318] sm:$0xff]  ;;  %v5608_v44 = vld [vmem:[%s9284_s1 + $0x2c8] sm:$0xff]  ;;  %v6252_v47 = vpack.c.bf16 %v5533_v36, %v5531_v35 }
  0x53   : > { %756 = vmatprep.mubr.f32.mxu0 %v6621_v39  ;;  %5455 = vmatmul.mubr.msk.f32.vlgmr.msra.gmra.mrb[0].mxu1 %vm595_vm0, %v544_v56  ;;  %v5610_v45 = vld [vmem:[%s9284_s1 + $0x2d8] sm:$0xff]  ;;  %v7130_v46 = vld [vmem:[%s6979_s16 + $0x28] sm:$0xff]  ;;  %v6268_v48 = vpack.c.bf16 %v5605_v41, %v5603_v38  ;;  %v6278_v49 = vpack.c.bf16 %v5674_v43, %v5672_v42  ;;  %v5607_v51 = vld [vmem:[%s9284_s1 + $0x2c0] sm:$0xff] }
  0x54   : > { %1178 = vmatprep.mubr.f32.mxu1 %v6621_v39  ;;  %6237 = vmatpush1.bf16.msra.mxu0 %v6236_v57  ;;  %v6270_v50 = vpack.c.bf16 %v5610_v45, %v5608_v44  ;;  %v5609_v52 = vld [vmem:[%s9284_s1 + $0x2d0] sm:$0xff]  ;;  %v5612_v53 = vld [vmem:[%s9284_s1 + $0x2e8] sm:$0xff]  ;;  %v5614_v54 = vld [vmem:[%s9284_s1 + $0x2f8] sm:$0xff] }
  0x55   : > { %6239 = vmatprep.subr.bf16.mxu0 %v6238_v58  ;;  %6257 = vmatpush1.bf16.msra.mxu1 %v6256_v10  ;;  %v7151_v55 = vld [vmem:[%s6979_s16 + $0x30] sm:$0xff]  ;;  %v6272_v56 = vpack.c.bf16 %v5609_v52, %v5607_v51  ;;  %v6274_v57 = vpack.c.bf16 %v5614_v54, %v5612_v53  ;;  %v5611_v58 = vld [vmem:[%s9284_s1 + $0x2e0] sm:$0xff]  ;;  %v7166_v60 = vld [vmem:[%s6979_s16 + $0x38] sm:$0xff] }
  0x56   : > { %5377 = vmatmul.mubr.msk.f32.gmra.mrb[4].mxu0 %vm595_vm0, %v7005_v61  ;;  %6259 = vmatprep.subr.bf16.mxu1 %v6258_v14  ;;  %v5613_v59 = vld [vmem:[%s9284_s1 + $0x2f0] sm:$0xff]  ;;  %v7175_v63 = vld [vmem:[%s6979_s16 + $0x40] sm:$0xff]  ;;  %v7184_v0 = vld [vmem:[%s6979_s16 + $0x48] sm:$0xff] }
  0x57   : > { %762 = vmatprep.mubr.f32.mxu0 %v6621_v39  ;;  %5456 = vmatmul.mubr.msk.f32.gmra.mrb[2].mxu1 %vm595_vm0, %v7005_v61  ;;  %v6276_v62 = vpack.c.bf16 %v5613_v59, %v5611_v58  ;;  %v7193_v1 = vld [vmem:[%s6979_s16 + $0x50] sm:$0xff]  ;;  %v7202_v2 = vld [vmem:[%s6979_s16 + $0x58] sm:$0xff]  ;;  %v7220_v4 = vld [vmem:[%s6979_s16 + $0x68] sm:$0xff] }
  0x58   : > { %1184 = vmatprep.mubr.f32.mxu1 %v6621_v39  ;;  %6241 = vmatpush1.bf16.msra.mxu0 %v6240_v3  ;;  %v7211_v3 = vld [vmem:[%s6979_s16 + $0x60] sm:$0xff]  ;;  %v7229_v5 = vld [vmem:[%s6979_s16 + $0x70] sm:$0xff]  ;;  %v7238_v6 = vld [vmem:[%s6979_s16 + $0x78] sm:$0xff] }
  0x59   : > { %6243 = vmatprep.subr.bf16.mxu0 %v6242_v8  ;;  %6261 = vmatpush1.bf16.msra.mxu1 %v6260_v25  ;;  %v7247_v7 = vld [vmem:[%s6979_s16 + $0x80] sm:$0xff]  ;;  %v7256_v8 = vld [vmem:[%s6979_s16 + $0x88] sm:$0xff]  ;;  %v7265_v9 = vld [vmem:[%s6979_s16 + $0x90] sm:$0xff] }
  0x5a   : > { %5378 = vmatmul.mubr.msk.f32.gmra.mrb[6].mxu0 %vm595_vm0, %v7064_v19  ;;  %6263 = vmatprep.subr.bf16.mxu1 %v6262_v27  ;;  %v7274_v10 = vld [vmem:[%s6979_s16 + $0x98] sm:$0xff]  ;;  %v7283_v11 = vld [vmem:[%s6979_s16 + $0xa0] sm:$0xff]  ;;  %v7292_v12 = vld [vmem:[%s6979_s16 + $0xa8] sm:$0xff] }
  0x5b   : > { %768 = vmatprep.mubr.f32.mxu0 %v6621_v39  ;;  %5457 = vmatmul.mubr.msk.f32.gmra.mrb[4].mxu1 %vm595_vm0, %v7064_v19  ;;  %v7301_v13 = vld [vmem:[%s6979_s16 + $0xb0] sm:$0xff]  ;;  %v7310_v14 = vld [vmem:[%s6979_s16 + $0xb8] sm:$0xff]  ;;  %v7319_v15 = vld [vmem:[%s6979_s16 + $0xc0] sm:$0xff] }
  0x5c   : > { %1190 = vmatprep.mubr.f32.mxu1 %v6621_v39  ;;  %6245 = vmatpush1.bf16.msra.mxu0 %v6244_v20  ;;  %v7328_v16 = vld [vmem:[%s6979_s16 + $0xc8] sm:$0xff]  ;;  %v7337_v17 = vld [vmem:[%s6979_s16 + $0xd0] sm:$0xff]  ;;  %v7346_v18 = vld [vmem:[%s6979_s16 + $0xd8] sm:$0xff] }
  0x5d   : > { %6247 = vmatprep.subr.bf16.mxu0 %v6246_v21  ;;  %6265 = vmatpush1.bf16.msra.mxu1 %v6264_v37  ;;  %v5671_v20 = vld [vmem:[%s9284_s1 + $0x300] sm:$0xff]  ;;  %v5673_v21 = vld [vmem:[%s9284_s1 + $0x310] sm:$0xff]  ;;  %v5676_v22 = vld [vmem:[%s9284_s1 + $0x328] sm:$0xff] }
  0x5e   : > { %5379 = vmatmul.mubr.msk.f32.gmra.mrb[8].mxu0 %vm595_vm0, %v7097_v32  ;;  %6267 = vmatprep.subr.bf16.mxu1 %v6266_v40  ;;  %v5678_v23 = vld [vmem:[%s9284_s1 + $0x338] sm:$0xff]  ;;  %v6280_v24 = vpack.c.bf16 %v5673_v21, %v5671_v20  ;;  %v5675_v26 = vld [vmem:[%s9284_s1 + $0x320] sm:$0xff]  ;;  %v5677_v27 = vld [vmem:[%s9284_s1 + $0x330] sm:$0xff] }
  0x5f   : > { %774 = vmatprep.mubr.f32.mxu0 %v6621_v39  ;;  %5458 = vmatmul.mubr.msk.f32.gmra.mrb[6].mxu1 %vm595_vm0, %v7097_v32  ;;  %v6282_v25 = vpack.c.bf16 %v5678_v23, %v5676_v22  ;;  %v7374_v28 = vld [vmem:[%s6979_s16 + $0xe0] sm:$0xff]  ;;  %v5680_v29 = vld [vmem:[%s9284_s1 + $0x348] sm:$0xff]  ;;  %v5682_v30 = vld [vmem:[%s9284_s1 + $0x358] sm:$0xff]  ;;  %v6284_v31 = vpack.c.bf16 %v5677_v27, %v5675_v26 }
  0x60   : > { %1196 = vmatprep.mubr.f32.mxu1 %v6621_v39  ;;  %6249 = vmatpush1.bf16.msra.mxu0 %v6248_v33  ;;  %v6286_v33 = vpack.c.bf16 %v5682_v30, %v5680_v29  ;;  %v5681_v35 = vld [vmem:[%s9284_s1 + $0x350] sm:$0xff]  ;;  %v5686_v36 = vld [vmem:[%s9284_s1 + $0x378] sm:$0xff]  ;;  %v5683_v40 = vld [vmem:[%s9284_s1 + $0x360] sm:$0xff] }
  0x61   : > { %6251 = vmatprep.subr.bf16.mxu0 %v6250_v34  ;;  %6269 = vmatpush1.bf16.msra.mxu1 %v6268_v48  ;;  %v5679_v34 = vld [vmem:[%s9284_s1 + $0x340] sm:$0xff]  ;;  %v5685_v41 = vld [vmem:[%s9284_s1 + $0x370] sm:$0xff]  ;;  %v5688_v42 = vld [vmem:[%s9284_s1 + $0x388] sm:$0xff] }
  0x62   : > { %5380 = vmatmul.mubr.msk.f32.gmra.mrb[10].mxu0 %vm595_vm0, %v7130_v46  ;;  %6271 = vmatprep.subr.bf16.mxu1 %v6270_v50  ;;  %v6288_v37 = vpack.c.bf16 %v5681_v35, %v5679_v34  ;;  %v6292_v43 = vpack.c.bf16 %v5685_v41, %v5683_v40  ;;  %v5687_v45 = vld [vmem:[%s9284_s1 + $0x380] sm:$0xff]  ;;  %v5692_v48 = vld [vmem:[%s9284_s1 + $0x3a8] sm:$0xff]  ;;  %v5693_v53 = vld [vmem:[%s9284_s1 + $0x3b0] sm:$0xff] }
  0x63   : > { %780 = vmatprep.mubr.f32.mxu0 %v6621_v39  ;;  %5459 = vmatmul.mubr.msk.f32.gmra.mrb[8].mxu1 %vm595_vm0, %v7130_v46  ;;  %v5691_v52 = vld [vmem:[%s9284_s1 + $0x3a0] sm:$0xff] }
  0x64   : > { %1202 = vmatprep.mubr.f32.mxu1 %v6621_v39  ;;  %6253 = vmatpush1.bf16.msra.mxu0 %v6252_v47  ;;  %v5689_v47 = vld [vmem:[%s9284_s1 + $0x390] sm:$0xff]  ;;  %v6300_v54 = vpack.c.bf16 %v5693_v53, %v5691_v52 }
  0x65   : > { %6279 = vmatprep.subr.bf16.mxu0 %v6278_v49  ;;  %6273 = vmatpush1.bf16.msra.mxu1 %v6272_v56  ;;  %v5694_v49 = vld [vmem:[%s9284_s1 + $0x3b8] sm:$0xff]  ;;  %v6296_v50 = vpack.c.bf16 %v5689_v47, %v5687_v45  ;;  %v5649_v52 = vld [vmem:[%s6979_s16 + $0x50] sm:$0xff] }
  0x66   : > { %5381 = vmatmul.mubr.msk.f32.gmra.mrb[12].mxu0 %vm595_vm0, %v7151_v55  ;;  %6275 = vmatprep.subr.bf16.mxu1 %v6274_v57  ;;  %v6298_v51 = vpack.c.bf16 %v5694_v49, %v5692_v48 }
  0x67   : > { %786 = vmatprep.mubr.f32.mxu0 %v6621_v39  ;;  %5460 = vmatmul.mubr.msk.f32.gmra.mrb[10].mxu1 %vm595_vm0, %v7151_v55 }
  0x68   : > { %1208 = vmatprep.mubr.f32.mxu1 %v6621_v39 }
  0x69   : > { %6277 = vmatpush1.bf16.msra.mxu1 %v6276_v62 }
  0x6a   : > { %5382 = vmatmul.mubr.msk.f32.gmra.mrb[14].mxu0 %vm595_vm0, %v7166_v60 }
  0x6b   : > { %792 = vmatprep.mubr.f32.mxu0 %v6621_v39  ;;  %5461 = vmatmul.mubr.msk.f32.gmra.mrb[12].mxu1 %vm595_vm0, %v7166_v60 }
  0x6c   : > { %1214 = vmatprep.mubr.f32.mxu1 %v6621_v39 }
  0x6e   : > { %5383 = vmatmul.mubr.msk.f32.gmra.mrb[16].mxu0 %vm595_vm0, %v7175_v63 }
  0x6f   : > { %798 = vmatprep.mubr.f32.mxu0 %v6621_v39  ;;  %5462 = vmatmul.mubr.msk.f32.gmra.mrb[14].mxu1 %vm595_vm0, %v7175_v63 }
  0x70   : > { %1220 = vmatprep.mubr.f32.mxu1 %v6621_v39 }
  0x72   : > { %5384 = vmatmul.mubr.msk.f32.gmra.mrb[18].mxu0 %vm595_vm0, %v7184_v0 }
  0x73   : > { %804 = vmatprep.mubr.f32.mxu0 %v6621_v39  ;;  %5463 = vmatmul.mubr.msk.f32.gmra.mrb[16].mxu1 %vm595_vm0, %v7184_v0 }
  0x74   : > { %1226 = vmatprep.mubr.f32.mxu1 %v6621_v39 }
  0x76   : > { %5385 = vmatmul.mubr.msk.f32.gmra.mrb[20].mxu0 %vm595_vm0, %v7193_v1 }
  0x77   : > { %810 = vmatprep.mubr.f32.mxu0 %v6621_v39  ;;  %5464 = vmatmul.mubr.msk.f32.gmra.mrb[18].mxu1 %vm595_vm0, %v7193_v1 }
  0x78   : > { %1232 = vmatprep.mubr.f32.mxu1 %v6621_v39 }
  0x7a   : > { %5386 = vmatmul.mubr.msk.f32.gmra.mrb[22].mxu0 %vm595_vm0, %v7202_v2 }
  0x7b   : > { %816 = vmatprep.mubr.f32.mxu0 %v6621_v39  ;;  %5465 = vmatmul.mubr.msk.f32.gmra.mrb[20].mxu1 %vm595_vm0, %v7202_v2 }
  0x7c   : > { %1238 = vmatprep.mubr.f32.mxu1 %v6621_v39 }
  0x7e   : > { %5387 = vmatmul.mubr.msk.f32.gmra.mrb[24].mxu0 %vm595_vm0, %v7211_v3 }
  0x7f   : > { %822 = vmatprep.mubr.f32.mxu0 %v6621_v39  ;;  %5466 = vmatmul.mubr.msk.f32.gmra.mrb[22].mxu1 %vm595_vm0, %v7211_v3 }
  0x80   : > { %1244 = vmatprep.mubr.f32.mxu1 %v6621_v39 }
  0x82   : > { %5388 = vmatmul.mubr.msk.f32.gmra.mrb[26].mxu0 %vm595_vm0, %v7220_v4 }
  0x83   : > { %828 = vmatprep.mubr.f32.mxu0 %v6621_v39  ;;  %5467 = vmatmul.mubr.msk.f32.gmra.mrb[24].mxu1 %vm595_vm0, %v7220_v4 }
  0x84   : > { %1250 = vmatprep.mubr.f32.mxu1 %v6621_v39 }
  0x86   : > { %5389 = vmatmul.mubr.msk.f32.gmra.mrb[28].mxu0 %vm595_vm0, %v7229_v5 }
  0x87   : > { %834 = vmatprep.mubr.f32.mxu0 %v6621_v39  ;;  %5468 = vmatmul.mubr.msk.f32.gmra.mrb[26].mxu1 %vm595_vm0, %v7229_v5 }
  0x88   : > { %1256 = vmatprep.mubr.f32.mxu1 %v6621_v39 }
  0x8a   : > { %5390 = vmatmul.mubr.msk.f32.gmra.mrb[30].mxu0 %vm595_vm0, %v7238_v6 }
  0x8b   : > { %840 = vmatprep.mubr.f32.mxu0 %v6621_v39  ;;  %5469 = vmatmul.mubr.msk.f32.gmra.mrb[28].mxu1 %vm595_vm0, %v7238_v6 }
  0x8c   : > { %1262 = vmatprep.mubr.f32.mxu1 %v6621_v39 }
  0x8e   : > { %5391 = vmatmul.mubr.msk.f32.gmra.mrb[32].mxu0 %vm595_vm0, %v7247_v7 }
  0x8f   : > { %846 = vmatprep.mubr.f32.mxu0 %v6621_v39  ;;  %5470 = vmatmul.mubr.msk.f32.gmra.mrb[30].mxu1 %vm595_vm0, %v7247_v7 }
  0x90   : > { %1268 = vmatprep.mubr.f32.mxu1 %v6621_v39 }
  0x92   : > { %5392 = vmatmul.mubr.msk.f32.gmra.mrb[34].mxu0 %vm595_vm0, %v7256_v8 }
  0x93   : > { %852 = vmatprep.mubr.f32.mxu0 %v6621_v39  ;;  %5471 = vmatmul.mubr.msk.f32.gmra.mrb[32].mxu1 %vm595_vm0, %v7256_v8 }
  0x94   : > { %1274 = vmatprep.mubr.f32.mxu1 %v6621_v39 }
  0x96   : > { %5393 = vmatmul.mubr.msk.f32.gmra.mrb[36].mxu0 %vm595_vm0, %v7265_v9 }
  0x97   : > { %858 = vmatprep.mubr.f32.mxu0 %v6621_v39  ;;  %5472 = vmatmul.mubr.msk.f32.gmra.mrb[34].mxu1 %vm595_vm0, %v7265_v9 }
  0x98   : > { %1280 = vmatprep.mubr.f32.mxu1 %v6621_v39 }
  0x9a   : > { %5394 = vmatmul.mubr.msk.f32.gmra.mrb[38].mxu0 %vm595_vm0, %v7274_v10 }
  0x9b   : > { %864 = vmatprep.mubr.f32.mxu0 %v6621_v39  ;;  %5473 = vmatmul.mubr.msk.f32.gmra.mrb[36].mxu1 %vm595_vm0, %v7274_v10 }
  0x9c   : > { %1286 = vmatprep.mubr.f32.mxu1 %v6621_v39 }
  0x9e   : > { %5395 = vmatmul.mubr.msk.f32.gmra.mrb[40].mxu0 %vm595_vm0, %v7283_v11 }
  0x9f   : > { %870 = vmatprep.mubr.f32.mxu0 %v6621_v39  ;;  %5474 = vmatmul.mubr.msk.f32.gmra.mrb[38].mxu1 %vm595_vm0, %v7283_v11 }
  0xa0   : > { %1292 = vmatprep.mubr.f32.mxu1 %v6621_v39 }
  0xa2   : > { %5396 = vmatmul.mubr.msk.f32.gmra.mrb[42].mxu0 %vm595_vm0, %v7292_v12 }
  0xa3   : > { %876 = vmatprep.mubr.f32.mxu0 %v6621_v39  ;;  %5475 = vmatmul.mubr.msk.f32.gmra.mrb[40].mxu1 %vm595_vm0, %v7292_v12 }
  0xa4   : > { %1298 = vmatprep.mubr.f32.mxu1 %v6621_v39 }
  0xa6   : > { %5397 = vmatmul.mubr.msk.f32.gmra.mrb[44].mxu0 %vm595_vm0, %v7301_v13 }
  0xa7   : > { %882 = vmatprep.mubr.f32.mxu0 %v6621_v39  ;;  %5476 = vmatmul.mubr.msk.f32.gmra.mrb[42].mxu1 %vm595_vm0, %v7301_v13 }
  0xa8   : > { %1304 = vmatprep.mubr.f32.mxu1 %v6621_v39 }
  0xaa   : > { %5398 = vmatmul.mubr.msk.f32.gmra.mrb[46].mxu0 %vm595_vm0, %v7310_v14 }
  0xab   : > { %888 = vmatprep.mubr.f32.mxu0 %v6621_v39  ;;  %5477 = vmatmul.mubr.msk.f32.gmra.mrb[44].mxu1 %vm595_vm0, %v7310_v14 }
  0xac   : > { %1310 = vmatprep.mubr.f32.mxu1 %v6621_v39 }
  0xae   : > { %5399 = vmatmul.mubr.msk.f32.gmra.mrb[48].mxu0 %vm595_vm0, %v7319_v15 }
  0xaf   : > { %894 = vmatprep.mubr.f32.mxu0 %v6621_v39  ;;  %5478 = vmatmul.mubr.msk.f32.gmra.mrb[46].mxu1 %vm595_vm0, %v7319_v15 }
  0xb0   : > { %1316 = vmatprep.mubr.f32.mxu1 %v6621_v39 }
  0xb2   : > { %5400 = vmatmul.mubr.msk.f32.gmra.mrb[50].mxu0 %vm595_vm0, %v7328_v16 }
  0xb3   : > { %900 = vmatprep.mubr.f32.mxu0 %v6621_v39  ;;  %5479 = vmatmul.mubr.msk.f32.gmra.mrb[48].mxu1 %vm595_vm0, %v7328_v16 }
  0xb4   : > { %1322 = vmatprep.mubr.f32.mxu1 %v6621_v39 }
  0xb6   : > { %5401 = vmatmul.mubr.msk.f32.gmra.mrb[52].mxu0 %vm595_vm0, %v7337_v17 }
  0xb7   : > { %906 = vmatprep.mubr.f32.mxu0 %v6621_v39  ;;  %5480 = vmatmul.mubr.msk.f32.gmra.mrb[50].mxu1 %vm595_vm0, %v7337_v17 }
  0xb8   : > { %1328 = vmatprep.mubr.f32.mxu1 %v6621_v39 }
  0xba   : > { %5402 = vmatmul.mubr.msk.f32.gmra.mrb[54].mxu0 %vm595_vm0, %v7346_v18 }
  0xbb   : > { %1711 = vmatprep.mubr.f32.mxu0 %v6621_v39  ;;  %5481 = vmatmul.mubr.msk.f32.gmra.mrb[52].mxu1 %vm595_vm0, %v7346_v18 }
  0xbc   : > { %1334 = vmatprep.mubr.f32.mxu1 %v6621_v39 }
  0xbe   : > { %5535 = vmatmul.mubr.msk.f32.vlgmr.msra.gmra.mrb[56].mxu0 %vm595_vm0, %v7005_v61  ;;  %v5684_v61 = vld [vmem:[%s9284_s1 + $0x368] sm:$0xff] }
  0xbf   : > { %6281 = vmatpush1.bf16.msra.mxu0 %v6280_v24  ;;  %1717 = vmatprep.mubr.f32.mxu0 %v6621_v39  ;;  %v6290_v38 = vpack.c.bf16 %v5686_v36, %v5684_v61  ;;  %v5647_v36 = vld [vmem:[%s6979_s16 + $0x40] sm:$0xff] }
  0xc0   : > { %5482 = vmatmul.mubr.msk.f32.gmra.mrb[54].mxu1 %vm595_vm0, %v7374_v28  ;;  %6283 = vmatprep.subr.bf16.mxu0 %v6282_v25 }
  0xc1   : > { %2250 = vmatprep.mubr.f32.mxu1 %v6621_v39 }
  0xc2   : > { %5536 = vmatmul.mubr.msk.f32.gmra.mrb[58].mxu0 %vm595_vm0, %v7064_v19 }
  0xc3   : > { %1723 = vmatprep.mubr.f32.mxu0 %v6621_v39  ;;  %6285 = vmatpush1.bf16.msra.mxu0 %v6284_v31 }
  0xc4   : > { %5615 = vmatmul.mubr.msk.f32.vlgmr.msra.gmra.mrb[56].mxu1 %vm595_vm0, %v7064_v19  ;;  %6287 = vmatprep.subr.bf16.mxu0 %v6286_v33  ;;  %v5690_v19 = vld [vmem:[%s9284_s1 + $0x398] sm:$0xff] }
  0xc5   : > { %2256 = vmatprep.mubr.f32.mxu1 %v6621_v39  ;;  %v6294_v44 = vpack.c.bf16 %v5690_v19, %v5688_v42 }
  0xc6   : > { %5537 = vmatmul.mubr.msk.f32.gmra.mrb[60].mxu0 %vm595_vm0, %v7097_v32 }
  0xc7   : > { %1729 = vmatprep.mubr.f32.mxu0 %v6621_v39  ;;  %6289 = vmatpush1.bf16.msra.mxu0 %v6288_v37 }
  0xc8   : > { %5616 = vmatmul.mubr.msk.f32.gmra.mrb[58].mxu1 %vm595_vm0, %v7097_v32  ;;  %6291 = vmatprep.subr.bf16.mxu0 %v6290_v38 }
  0xc9   : > { %2262 = vmatprep.mubr.f32.mxu1 %v6621_v39 }
  0xca   : > { %5538 = vmatmul.mubr.msk.f32.gmra.mrb[62].mxu0 %vm595_vm0, %v7130_v46 }
  0xcb   : > { %1735 = vmatprep.mubr.f32.mxu0 %v6621_v39  ;;  %6293 = vmatpush1.bf16.msra.mxu0 %v6292_v43  ;;  %v5648_v43 = vld [vmem:[%s6979_s16 + $0x48] sm:$0xff] }
  0xcc   : > { %5617 = vmatmul.mubr.msk.f32.gmra.mrb[60].mxu1 %vm595_vm0, %v7130_v46  ;;  %6295 = vmatprep.subr.bf16.mxu0 %v6294_v44 }
  0xcd   : > { %2268 = vmatprep.mubr.f32.mxu1 %v6621_v39 }
  0xce   : > { %5539 = vmatmul.mubr.msk.f32.gmra.mrb[64].mxu0 %vm595_vm0, %v7151_v55 }
  0xcf   : > { %1741 = vmatprep.mubr.f32.mxu0 %v6621_v39  ;;  %6297 = vmatpush1.bf16.msra.mxu0 %v6296_v50 }
  0xd0   : > { %5618 = vmatmul.mubr.msk.f32.gmra.mrb[62].mxu1 %vm595_vm0, %v7151_v55  ;;  %6299 = vmatprep.subr.bf16.mxu0 %v6298_v51 }
  0xd1   : > { %2274 = vmatprep.mubr.f32.mxu1 %v6621_v39 }
  0xd2   : > { %5540 = vmatmul.mubr.msk.f32.gmra.mrb[66].mxu0 %vm595_vm0, %v7166_v60 }
  0xd3   : > { %1747 = vmatprep.mubr.f32.mxu0 %v6621_v39  ;;  %6301 = vmatpush1.bf16.msra.mxu0 %v6300_v54 }
  0xd4   : > { %5619 = vmatmul.mubr.msk.f32.gmra.mrb[64].mxu1 %vm595_vm0, %v7166_v60 }
  0xd5   : > { %2280 = vmatprep.mubr.f32.mxu1 %v6621_v39 }
  0xd6   : > { %5541 = vmatmul.mubr.msk.f32.gmra.mrb[68].mxu0 %vm595_vm0, %v7175_v63 }
  0xd7   : > { %1753 = vmatprep.mubr.f32.mxu0 %v6621_v39 }
  0xd8   : > { %5620 = vmatmul.mubr.msk.f32.gmra.mrb[66].mxu1 %vm595_vm0, %v7175_v63 }
  0xd9   : > { %2286 = vmatprep.mubr.f32.mxu1 %v6621_v39 }
  0xda   : > { %5542 = vmatmul.mubr.msk.f32.gmra.mrb[70].mxu0 %vm595_vm0, %v7184_v0 }
  0xdb   : > { %1759 = vmatprep.mubr.f32.mxu0 %v6621_v39 }
  0xdc   : > { %5621 = vmatmul.mubr.msk.f32.gmra.mrb[68].mxu1 %vm595_vm0, %v7184_v0 }
  0xdd   : > { %2292 = vmatprep.mubr.f32.mxu1 %v6621_v39 }
  0xde   : > { %5543 = vmatmul.mubr.msk.f32.gmra.mrb[72].mxu0 %vm595_vm0, %v7193_v1 }
  0xdf   : > { %1765 = vmatprep.mubr.f32.mxu0 %v6621_v39 }
  0xe0   : > { %5622 = vmatmul.mubr.msk.f32.gmra.mrb[70].mxu1 %vm595_vm0, %v7193_v1 }
  0xe1   : > { %2298 = vmatprep.mubr.f32.mxu1 %v6621_v39 }
  0xe2   : > { %5544 = vmatmul.mubr.msk.f32.gmra.mrb[74].mxu0 %vm595_vm0, %v7202_v2 }
  0xe3   : > { %1771 = vmatprep.mubr.f32.mxu0 %v6621_v39 }
  0xe4   : > { %5623 = vmatmul.mubr.msk.f32.gmra.mrb[72].mxu1 %vm595_vm0, %v7202_v2  ;;  %v7590_v2 = vld [vmem:[%s6979_s16 + $0xe8] sm:$0xff] }
  0xe5   : > { %2304 = vmatprep.mubr.f32.mxu1 %v6621_v39 }
  0xe6   : > { %5545 = vmatmul.mubr.msk.f32.gmra.mrb[76].mxu0 %vm595_vm0, %v7211_v3 }
  0xe7   : > { %1777 = vmatprep.mubr.f32.mxu0 %v6621_v39 }
  0xe8   : > { %5624 = vmatmul.mubr.msk.f32.gmra.mrb[74].mxu1 %vm595_vm0, %v7211_v3 }
  0xe9   : > { %2310 = vmatprep.mubr.f32.mxu1 %v6621_v39 }
  0xea   : > { %5546 = vmatmul.mubr.msk.f32.gmra.mrb[78].mxu0 %vm595_vm0, %v7220_v4 }
  0xeb   : > { %1783 = vmatprep.mubr.f32.mxu0 %v6621_v39 }
  0xec   : > { %5625 = vmatmul.mubr.msk.f32.gmra.mrb[76].mxu1 %vm595_vm0, %v7220_v4 }
  0xed   : > { %2316 = vmatprep.mubr.f32.mxu1 %v6621_v39 }
  0xee   : > { %5547 = vmatmul.mubr.msk.f32.gmra.mrb[80].mxu0 %vm595_vm0, %v7229_v5 }
  0xef   : > { %1789 = vmatprep.mubr.f32.mxu0 %v6621_v39 }
  0xf0   : > { %5626 = vmatmul.mubr.msk.f32.gmra.mrb[78].mxu1 %vm595_vm0, %v7229_v5 }
  0xf1   : > { %2322 = vmatprep.mubr.f32.mxu1 %v6621_v39 }
  0xf2   : > { %5548 = vmatmul.mubr.msk.f32.gmra.mrb[82].mxu0 %vm595_vm0, %v7238_v6 }
  0xf3   : > { %1795 = vmatprep.mubr.f32.mxu0 %v6621_v39 }
  0xf4   : > { %5627 = vmatmul.mubr.msk.f32.gmra.mrb[80].mxu1 %vm595_vm0, %v7238_v6 }
  0xf5   : > { %2328 = vmatprep.mubr.f32.mxu1 %v6621_v39 }
  0xf6   : > { %5549 = vmatmul.mubr.msk.f32.gmra.mrb[84].mxu0 %vm595_vm0, %v7247_v7 }
  0xf7   : > { %1801 = vmatprep.mubr.f32.mxu0 %v6621_v39 }
  0xf8   : > { %5628 = vmatmul.mubr.msk.f32.gmra.mrb[82].mxu1 %vm595_vm0, %v7247_v7 }
  0xf9   : > { %2334 = vmatprep.mubr.f32.mxu1 %v6621_v39 }
  0xfa   : > { %5550 = vmatmul.mubr.msk.f32.gmra.mrb[86].mxu0 %vm595_vm0, %v7256_v8 }
  0xfb   : > { %1807 = vmatprep.mubr.f32.mxu0 %v6621_v39 }
  0xfc   : > { %5629 = vmatmul.mubr.msk.f32.gmra.mrb[84].mxu1 %vm595_vm0, %v7256_v8 }
  0xfd   : > { %2340 = vmatprep.mubr.f32.mxu1 %v6621_v39 }
  0xfe   : > { %5551 = vmatmul.mubr.msk.f32.gmra.mrb[88].mxu0 %vm595_vm0, %v7265_v9 }
  0xff   : > { %1813 = vmatprep.mubr.f32.mxu0 %v6621_v39 }
 0x100   : > { %5630 = vmatmul.mubr.msk.f32.gmra.mrb[86].mxu1 %vm595_vm0, %v7265_v9 }
 0x101   : > { %2346 = vmatprep.mubr.f32.mxu1 %v6621_v39 }
 0x102   : > { %5552 = vmatmul.mubr.msk.f32.gmra.mrb[90].mxu0 %vm595_vm0, %v7274_v10 }
 0x103   : > { %1819 = vmatprep.mubr.f32.mxu0 %v6621_v39 }
 0x104   : > { %5631 = vmatmul.mubr.msk.f32.gmra.mrb[88].mxu1 %vm595_vm0, %v7274_v10  ;;  %v7604_v10 = vld [vmem:[%s6979_s16 + $0xf0] sm:$0xff] }
 0x105   : > { %2352 = vmatprep.mubr.f32.mxu1 %v6621_v39 }
 0x106   : > { %5553 = vmatmul.mubr.msk.f32.gmra.mrb[92].mxu0 %vm595_vm0, %v7283_v11 }
 0x107   : > { %1825 = vmatprep.mubr.f32.mxu0 %v6621_v39 }
 0x108   : > { %5632 = vmatmul.mubr.msk.f32.gmra.mrb[90].mxu1 %vm595_vm0, %v7283_v11 }
 0x109   : > { %2358 = vmatprep.mubr.f32.mxu1 %v6621_v39 }
 0x10a   : > { %5554 = vmatmul.mubr.msk.f32.gmra.mrb[94].mxu0 %vm595_vm0, %v7292_v12 }
 0x10b   : > { %1831 = vmatprep.mubr.f32.mxu0 %v6621_v39 }
 0x10c   : > { %5633 = vmatmul.mubr.msk.f32.gmra.mrb[92].mxu1 %vm595_vm0, %v7292_v12 }
 0x10d   : > { %2364 = vmatprep.mubr.f32.mxu1 %v6621_v39 }
 0x10e   : > { %5555 = vmatmul.mubr.msk.f32.gmra.mrb[96].mxu0 %vm595_vm0, %v7301_v13 }
 0x10f   : > { %1837 = vmatprep.mubr.f32.mxu0 %v6621_v39 }
 0x110   : > { %5634 = vmatmul.mubr.msk.f32.gmra.mrb[94].mxu1 %vm595_vm0, %v7301_v13 }
 0x111   : > { %2370 = vmatprep.mubr.f32.mxu1 %v6621_v39 }
 0x112   : > { %5556 = vmatmul.mubr.msk.f32.gmra.mrb[98].mxu0 %vm595_vm0, %v7310_v14 }
 0x113   : > { %1843 = vmatprep.mubr.f32.mxu0 %v6621_v39 }
 0x114   : > { %5635 = vmatmul.mubr.msk.f32.gmra.mrb[96].mxu1 %vm595_vm0, %v7310_v14 }
 0x115   : > { %2376 = vmatprep.mubr.f32.mxu1 %v6621_v39 }
 0x116   : > { %5557 = vmatmul.mubr.msk.f32.gmra.mrb[100].mxu0 %vm595_vm0, %v7319_v15 }
 0x117   : > { %1849 = vmatprep.mubr.f32.mxu0 %v6621_v39 }
 0x118   : > { %5636 = vmatmul.mubr.msk.f32.gmra.mrb[98].mxu1 %vm595_vm0, %v7319_v15 }
 0x119   : > { %2382 = vmatprep.mubr.f32.mxu1 %v6621_v39 }
 0x11a   : > { %5558 = vmatmul.mubr.msk.f32.gmra.mrb[102].mxu0 %vm595_vm0, %v7328_v16 }
 0x11b   : > { %1855 = vmatprep.mubr.f32.mxu0 %v6621_v39 }
 0x11c   : > { %5637 = vmatmul.mubr.msk.f32.gmra.mrb[100].mxu1 %vm595_vm0, %v7328_v16 }
 0x11d   : > { %2388 = vmatprep.mubr.f32.mxu1 %v6621_v39 }
 0x11e   : > { %5559 = vmatmul.mubr.msk.f32.gmra.mrb[104].mxu0 %vm595_vm0, %v7337_v17 }
 0x11f   : > { %1861 = vmatprep.mubr.f32.mxu0 %v6621_v39 }
 0x120   : > { %5638 = vmatmul.mubr.msk.f32.gmra.mrb[102].mxu1 %vm595_vm0, %v7337_v17 }
 0x121   : > { %v746_v56 = vpop.f32.mrb[0].mxu0  ;;  %2394 = vmatprep.mubr.f32.mxu1 %v6621_v39 }
 0x122   : > { %v748_v57 = vpop.f32.mrb[1].mxu0  ;;  %5560 = vmatmul.mubr.msk.f32.gmra.mrb[106].mxu0 %vm595_vm0, %v7346_v18 }
 0x123   : > { %915 = vst.msk [vmem:[#allocation2 + $0x8] sm:$0xff] %vm914_vm1, %v748_v57  ;;  %1867 = vmatprep.mubr.f32.mxu0 %v6621_v39 }
 0x124   : > { %5639 = vmatmul.mubr.msk.f32.gmra.mrb[104].mxu1 %vm595_vm0, %v7346_v18 }
 0x125   : > { %v752_v58 = vpop.f32.mrb[2].mxu0  ;;  %2400 = vmatprep.mubr.f32.mxu1 %v6621_v39 }
 0x126   : > { %v754_v59 = vpop.f32.mrb[3].mxu0  ;;  %5561 = vmatmul.mubr.msk.f32.gmra.mrb[108].mxu0 %vm595_vm0, %v7374_v28  ;;  %v1174_v62 = vpop.f32.mrb[0].mxu1 }
 0x127   : > { %917 = vst.msk [vmem:[#allocation2 + $0x18] sm:$0xff] %vm914_vm1, %v754_v59  ;;  %v7584_v63 = vadd.f32 %v1174_v62, %v746_v56  ;;  %1873 = vmatprep.mubr.f32.mxu0 %v6621_v39  ;;  %v1176_v0 = vpop.f32.mrb[1].mxu1 }
 0x128   : > { %5640 = vmatmul.mubr.msk.f32.gmra.mrb[106].mxu1 %vm595_vm0, %v7374_v28 }
 0x129   : > { %v758_v1 = vpop.f32.mrb[4].mxu0  ;;  %2406 = vmatprep.mubr.f32.mxu1 %v6621_v39 }
 0x12a   : > { %v760_v3 = vpop.f32.mrb[5].mxu0  ;;  %v1342_v4 = vld [vmem:[#allocation2 + $0x8] sm:$0xff]  ;;  %5562 = vmatmul.mubr.msk.f32.gmra.mrb[110].mxu0 %vm595_vm0, %v7590_v2  ;;  %v1180_v5 = vpop.f32.mrb[2].mxu1 }
 0x12b   : > { %919 = vst.msk [vmem:[#allocation2 + $0x28] sm:$0xff] %vm914_vm1, %v760_v3  ;;  %v1398_v6 = vadd.f32 %v1342_v4, %v1176_v0  ;;  %v7596_v7 = vadd.f32 %v1180_v5, %v752_v58  ;;  %2789 = vmatprep.mubr.f32.mxu0 %v6621_v39  ;;  %v1182_v8 = vpop.f32.mrb[3].mxu1  ;;  %v5650_v0 = vld [vmem:[%s6979_s16 + $0x58] sm:$0xff] }
 0x12c   : > { %5641 = vmatmul.mubr.msk.f32.gmra.mrb[108].mxu1 %vm595_vm0, %v7590_v2 }
 0x12d   : > { %1454 = vst.msk [vmem:[#allocation2 + $0x8] sm:$0xff] %vm914_vm1, %v1398_v6  ;;  %v764_v9 = vpop.f32.mrb[6].mxu0  ;;  %2412 = vmatprep.mubr.f32.mxu1 %v6621_v39 }
 0x12e   : > { %v766_v11 = vpop.f32.mrb[7].mxu0  ;;  %v1344_v12 = vld [vmem:[#allocation2 + $0x18] sm:$0xff]  ;;  %5695 = vmatmul.mubr.msk.f32.vlgmr.msra.gmra.mrb[112].mxu0 %vm595_vm0, %v7097_v32  ;;  %v1186_v13 = vpop.f32.mrb[4].mxu1 }
 0x12f   : > { %921 = vst.msk [vmem:[#allocation2 + $0x38] sm:$0xff] %vm914_vm1, %v766_v11  ;;  %v1400_v14 = vadd.f32 %v1344_v12, %v1182_v8  ;;  %v7609_v15 = vadd.f32 %v1186_v13, %v758_v1  ;;  %2795 = vmatprep.mubr.f32.mxu0 %v6621_v39  ;;  %v1188_v16 = vpop.f32.mrb[5].mxu1  ;;  %v5651_v11 = vld [vmem:[%s6979_s16 + $0x60] sm:$0xff] }
 0x130   : > { %5642 = vmatmul.mubr.msk.f32.gmra.mrb[110].mxu1 %vm595_vm0, %v7604_v10 }
 0x131   : > { %1456 = vst.msk [vmem:[#allocation2 + $0x18] sm:$0xff] %vm914_vm1, %v1400_v14  ;;  %v770_v17 = vpop.f32.mrb[8].mxu0  ;;  %3585 = vmatprep.mubr.f32.mxu1 %v6621_v39 }
 0x132   : > { %v772_v18 = vpop.f32.mrb[9].mxu0  ;;  %v1346_v20 = vld [vmem:[#allocation2 + $0x28] sm:$0xff]  ;;  %5696 = vmatmul.mubr.msk.f32.gmra.mrb[114].mxu0 %vm595_vm0, %v7130_v46  ;;  %v1192_v32 = vpop.f32.mrb[6].mxu1 }
 0x133   : > { %923 = vst.msk [vmem:[#allocation2 + $0x48] sm:$0xff] %vm914_vm1, %v772_v18  ;;  %v1402_v21 = vadd.f32 %v1346_v20, %v1188_v16  ;;  %v7619_v22 = vadd.f32 %v1192_v32, %v764_v9  ;;  %2801 = vmatprep.mubr.f32.mxu0 %v6621_v39  ;;  %v1194_v23 = vpop.f32.mrb[7].mxu1  ;;  %v5652_v32 = vld [vmem:[%s6979_s16 + $0x68] sm:$0xff] }
 0x135   : > { %1458 = vst.msk [vmem:[#allocation2 + $0x28] sm:$0xff] %vm914_vm1, %v1402_v21  ;;  %v776_v24 = vpop.f32.mrb[10].mxu0 }
 0x136   : > { %v778_v25 = vpop.f32.mrb[11].mxu0  ;;  %v1348_v26 = vld [vmem:[#allocation2 + $0x38] sm:$0xff]  ;;  %5697 = vmatmul.mubr.msk.f32.gmra.mrb[116].mxu0 %vm595_vm0, %v7151_v55  ;;  %v1198_v27 = vpop.f32.mrb[8].mxu1 }
 0x137   : > { %925 = vst.msk [vmem:[#allocation2 + $0x58] sm:$0xff] %vm914_vm1, %v778_v25  ;;  %v1404_v46 = vadd.f32 %v1348_v26, %v1194_v23  ;;  %v7626_v28 = vadd.f32 %v1198_v27, %v770_v17  ;;  %2807 = vmatprep.mubr.f32.mxu0 %v6621_v39  ;;  %v1200_v29 = vpop.f32.mrb[9].mxu1 }
 0x139   : > { %1460 = vst.msk [vmem:[#allocation2 + $0x38] sm:$0xff] %vm914_vm1, %v1404_v46  ;;  %v782_v30 = vpop.f32.mrb[12].mxu0 }
 0x13a   : > { %v784_v31 = vpop.f32.mrb[13].mxu0  ;;  %v1350_v33 = vld [vmem:[#allocation2 + $0x48] sm:$0xff]  ;;  %5698 = vmatmul.mubr.msk.f32.gmra.mrb[118].mxu0 %vm595_vm0, %v7166_v60  ;;  %v1204_v34 = vpop.f32.mrb[10].mxu1 }
 0x13b   : > { %927 = vst.msk [vmem:[#allocation2 + $0x68] sm:$0xff] %vm914_vm1, %v784_v31  ;;  %v1406_v55 = vadd.f32 %v1350_v33, %v1200_v29  ;;  %v7633_v35 = vadd.f32 %v1204_v34, %v776_v24  ;;  %2813 = vmatprep.mubr.f32.mxu0 %v6621_v39  ;;  %v1206_v61 = vpop.f32.mrb[11].mxu1  ;;  %v5653_v29 = vld [vmem:[%s6979_s16 + $0x70] sm:$0xff] }
 0x13d   : > { %1462 = vst.msk [vmem:[#allocation2 + $0x48] sm:$0xff] %vm914_vm1, %v1406_v55  ;;  %v788_v37 = vpop.f32.mrb[14].mxu0 }
 0x13e   : > { %v790_v38 = vpop.f32.mrb[15].mxu0  ;;  %v1352_v40 = vld [vmem:[#allocation2 + $0x58] sm:$0xff]  ;;  %5699 = vmatmul.mubr.msk.f32.gmra.mrb[120].mxu0 %vm595_vm0, %v5647_v36  ;;  %v1210_v41 = vpop.f32.mrb[12].mxu1 }
 0x13f   : > { %929 = vst.msk [vmem:[#allocation2 + $0x78] sm:$0xff] %vm914_vm1, %v790_v38  ;;  %v1408_v60 = vadd.f32 %v1352_v40, %v1206_v61  ;;  %v7640_v42 = vadd.f32 %v1210_v41, %v782_v30  ;;  %2819 = vmatprep.mubr.f32.mxu0 %v6621_v39  ;;  %v1212_v19 = vpop.f32.mrb[13].mxu1 }
 0x141   : > { %1464 = vst.msk [vmem:[#allocation2 + $0x58] sm:$0xff] %vm914_vm1, %v1408_v60  ;;  %v794_v44 = vpop.f32.mrb[16].mxu0 }
 0x142   : > { %v796_v45 = vpop.f32.mrb[17].mxu0  ;;  %v1354_v47 = vld [vmem:[#allocation2 + $0x68] sm:$0xff]  ;;  %5700 = vmatmul.mubr.msk.f32.gmra.mrb[122].mxu0 %vm595_vm0, %v5648_v43  ;;  %v1216_v48 = vpop.f32.mrb[14].mxu1 }
 0x143   : > { %931 = vst.msk [vmem:[#allocation2 + $0x88] sm:$0xff] %vm914_vm1, %v796_v45  ;;  %v1410_v49 = vadd.f32 %v1354_v47, %v1212_v19  ;;  %v7647_v50 = vadd.f32 %v1216_v48, %v788_v37  ;;  %2825 = vmatprep.mubr.f32.mxu0 %v6621_v39  ;;  %v1218_v51 = vpop.f32.mrb[15].mxu1  ;;  %v5654_v37 = vld [vmem:[%s6979_s16 + $0x78] sm:$0xff]  ;;  %v5655_v45 = vld [vmem:[%s6979_s16 + $0x80] sm:$0xff] }
 0x145   : > { %1466 = vst.msk [vmem:[#allocation2 + $0x68] sm:$0xff] %vm914_vm1, %v1410_v49  ;;  %v800_v53 = vpop.f32.mrb[18].mxu0 }
 0x146   : > { %v802_v54 = vpop.f32.mrb[19].mxu0  ;;  %v1356_v56 = vld [vmem:[#allocation2 + $0x78] sm:$0xff]  ;;  %5701 = vmatmul.mubr.msk.f32.gmra.mrb[124].mxu0 %vm595_vm0, %v5649_v52  ;;  %v1222_v57 = vpop.f32.mrb[16].mxu1 }
 0x147   : > { %933 = vst.msk [vmem:[#allocation2 + $0x98] sm:$0xff] %vm914_vm1, %v802_v54  ;;  %v1412_v58 = vadd.f32 %v1356_v56, %v1218_v51  ;;  %v7654_v59 = vadd.f32 %v1222_v57, %v794_v44  ;;  %2831 = vmatprep.mubr.f32.mxu0 %v6621_v39  ;;  %v1224_v62 = vpop.f32.mrb[17].mxu1  ;;  %v5656_v56 = vld [vmem:[%s6979_s16 + $0x88] sm:$0xff] }
 0x149   : > { %1468 = vst.msk [vmem:[#allocation2 + $0x78] sm:$0xff] %vm914_vm1, %v1412_v58  ;;  %v806_v1 = vpop.f32.mrb[20].mxu0 }
 0x14a   : > { %v808_v3 = vpop.f32.mrb[21].mxu0  ;;  %v1358_v4 = vld [vmem:[#allocation2 + $0x88] sm:$0xff]  ;;  %5702 = vmatmul.mubr.msk.f32.gmra.mrb[126].mxu0 %vm595_vm0, %v5650_v0  ;;  %v1228_v5 = vpop.f32.mrb[18].mxu1 }
 0x14b   : > { %935 = vst.msk [vmem:[#allocation2 + $0xa8] sm:$0xff] %vm914_vm1, %v808_v3  ;;  %v1414_v6 = vadd.f32 %v1358_v4, %v1224_v62  ;;  %v7661_v8 = vadd.f32 %v1228_v5, %v800_v53  ;;  %2837 = vmatprep.mubr.f32.mxu0 %v6621_v39  ;;  %v1230_v9 = vpop.f32.mrb[19].mxu1  ;;  %v5657_v5 = vld [vmem:[%s6979_s16 + $0x90] sm:$0xff] }
 0x14d   : > { %1470 = vst.msk [vmem:[#allocation2 + $0x88] sm:$0xff] %vm914_vm1, %v1414_v6  ;;  %v812_v12 = vpop.f32.mrb[22].mxu0 }
 0x14e   : > { %v814_v13 = vpop.f32.mrb[23].mxu0  ;;  %v1360_v14 = vld [vmem:[#allocation2 + $0x98] sm:$0xff]  ;;  %5703 = vmatmul.mubr.msk.f32.gmra.mrb[128].mxu0 %vm595_vm0, %v5651_v11  ;;  %v1234_v16 = vpop.f32.mrb[20].mxu1 }
 0x14f   : > { %937 = vst.msk [vmem:[#allocation2 + $0xb8] sm:$0xff] %vm914_vm1, %v814_v13  ;;  %v1416_v17 = vadd.f32 %v1360_v14, %v1230_v9  ;;  %v7668_v18 = vadd.f32 %v1234_v16, %v806_v1  ;;  %2843 = vmatprep.mubr.f32.mxu0 %v6621_v39  ;;  %v1236_v20 = vpop.f32.mrb[21].mxu1 }
 0x151   : > { %1472 = vst.msk [vmem:[#allocation2 + $0x98] sm:$0xff] %vm914_vm1, %v1416_v17  ;;  %v818_v21 = vpop.f32.mrb[24].mxu0  ;;  %v5658_v17 = vld [vmem:[%s6979_s16 + $0x98] sm:$0xff] }
 0x152   : > { %v820_v23 = vpop.f32.mrb[25].mxu0  ;;  %v1362_v24 = vld [vmem:[#allocation2 + $0xa8] sm:$0xff]  ;;  %5704 = vmatmul.mubr.msk.f32.gmra.mrb[130].mxu0 %vm595_vm0, %v5652_v32  ;;  %v1240_v25 = vpop.f32.mrb[22].mxu1 }
 0x153   : > { %939 = vst.msk [vmem:[#allocation2 + $0xc8] sm:$0xff] %vm914_vm1, %v820_v23  ;;  %v1418_v26 = vadd.f32 %v1362_v24, %v1236_v20  ;;  %v7675_v27 = vadd.f32 %v1240_v25, %v812_v12  ;;  %2849 = vmatprep.mubr.f32.mxu0 %v6621_v39  ;;  %v1242_v46 = vpop.f32.mrb[23].mxu1 }
 0x155   : > { %1474 = vst.msk [vmem:[#allocation2 + $0xa8] sm:$0xff] %vm914_vm1, %v1418_v26  ;;  %v824_v30 = vpop.f32.mrb[26].mxu0 }
 0x156   : > { %v826_v31 = vpop.f32.mrb[27].mxu0  ;;  %v1364_v33 = vld [vmem:[#allocation2 + $0xb8] sm:$0xff]  ;;  %5705 = vmatmul.mubr.msk.f32.gmra.mrb[132].mxu0 %vm595_vm0, %v5653_v29  ;;  %v1246_v34 = vpop.f32.mrb[24].mxu1 }
 0x157   : > { %941 = vst.msk [vmem:[#allocation2 + $0xd8] sm:$0xff] %vm914_vm1, %v826_v31  ;;  %v1420_v55 = vadd.f32 %v1364_v33, %v1242_v46  ;;  %v7682_v61 = vadd.f32 %v1246_v34, %v818_v21  ;;  %2855 = vmatprep.mubr.f32.mxu0 %v6621_v39  ;;  %v1248_v36 = vpop.f32.mrb[25].mxu1  ;;  %v5659_v46 = vld [vmem:[%s6979_s16 + $0xa0] sm:$0xff] }
 0x159   : > { %1476 = vst.msk [vmem:[#allocation2 + $0xb8] sm:$0xff] %vm914_vm1, %v1420_v55  ;;  %v830_v38 = vpop.f32.mrb[28].mxu0 }
 0x15a   : > { %v832_v40 = vpop.f32.mrb[29].mxu0  ;;  %v1366_v41 = vld [vmem:[#allocation2 + $0xc8] sm:$0xff]  ;;  %5706 = vmatmul.mubr.msk.f32.gmra.mrb[134].mxu0 %vm595_vm0, %v5654_v37  ;;  %v1252_v60 = vpop.f32.mrb[26].mxu1 }
 0x15b   : > { %943 = vst.msk [vmem:[#allocation2 + $0xe8] sm:$0xff] %vm914_vm1, %v832_v40  ;;  %v1422_v19 = vadd.f32 %v1366_v41, %v1248_v36  ;;  %v7689_v43 = vadd.f32 %v1252_v60, %v824_v30  ;;  %2861 = vmatprep.mubr.f32.mxu0 %v6621_v39  ;;  %v1254_v44 = vpop.f32.mrb[27].mxu1  ;;  %v5660_v37 = vld [vmem:[%s6979_s16 + $0xa8] sm:$0xff] }
 0x15d   : > { %1478 = vst.msk [vmem:[#allocation2 + $0xc8] sm:$0xff] %vm914_vm1, %v1422_v19  ;;  %v836_v47 = vpop.f32.mrb[30].mxu0 }
 0x15e   : > { %v838_v48 = vpop.f32.mrb[31].mxu0  ;;  %v1368_v49 = vld [vmem:[#allocation2 + $0xd8] sm:$0xff]  ;;  %5707 = vmatmul.mubr.msk.f32.gmra.mrb[136].mxu0 %vm595_vm0, %v5655_v45  ;;  %v1258_v51 = vpop.f32.mrb[28].mxu1 }
 0x15f   : > { %945 = vst.msk [vmem:[#allocation2 + $0xf8] sm:$0xff] %vm914_vm1, %v838_v48  ;;  %v1424_v52 = vadd.f32 %v1368_v49, %v1254_v44  ;;  %v7696_v53 = vadd.f32 %v1258_v51, %v830_v38  ;;  %2867 = vmatprep.mubr.f32.mxu0 %v6621_v39  ;;  %v1260_v54 = vpop.f32.mrb[29].mxu1 }
 0x161   : > { %1480 = vst.msk [vmem:[#allocation2 + $0xd8] sm:$0xff] %vm914_vm1, %v1424_v52  ;;  %v842_v57 = vpop.f32.mrb[32].mxu0 }
 0x162   : > { %v844_v58 = vpop.f32.mrb[33].mxu0  ;;  %v1370_v62 = vld [vmem:[#allocation2 + $0xe8] sm:$0xff]  ;;  %5708 = vmatmul.mubr.msk.f32.gmra.mrb[138].mxu0 %vm595_vm0, %v5656_v56  ;;  %v1264_v0 = vpop.f32.mrb[30].mxu1 }
 0x163   : > { %947 = vst.msk [vmem:[#allocation2 + $0x108] sm:$0xff] %vm914_vm1, %v844_v58  ;;  %v1426_v1 = vadd.f32 %v1370_v62, %v1260_v54  ;;  %v7703_v3 = vadd.f32 %v1264_v0, %v836_v47  ;;  %2873 = vmatprep.mubr.f32.mxu0 %v6621_v39  ;;  %v1266_v4 = vpop.f32.mrb[31].mxu1  ;;  %v5661_v47 = vld [vmem:[%s6979_s16 + $0xb0] sm:$0xff]  ;;  %v5662_v58 = vld [vmem:[%s6979_s16 + $0xb8] sm:$0xff] }
 0x165   : > { %1482 = vst.msk [vmem:[#allocation2 + $0xe8] sm:$0xff] %vm914_vm1, %v1426_v1  ;;  %v848_v6 = vpop.f32.mrb[34].mxu0 }
 0x166   : > { %v850_v9 = vpop.f32.mrb[35].mxu0  ;;  %v1372_v11 = vld [vmem:[#allocation2 + $0xf8] sm:$0xff]  ;;  %5709 = vmatmul.mubr.msk.f32.gmra.mrb[140].mxu0 %vm595_vm0, %v5657_v5  ;;  %v1270_v12 = vpop.f32.mrb[32].mxu1 }
 0x167   : > { %949 = vst.msk [vmem:[#allocation2 + $0x118] sm:$0xff] %vm914_vm1, %v850_v9  ;;  %v1428_v13 = vadd.f32 %v1372_v11, %v1266_v4  ;;  %v7710_v14 = vadd.f32 %v1270_v12, %v842_v57  ;;  %2879 = vmatprep.mubr.f32.mxu0 %v6621_v39  ;;  %v1272_v16 = vpop.f32.mrb[33].mxu1  ;;  %v5663_v11 = vld [vmem:[%s6979_s16 + $0xc0] sm:$0xff] }
 0x169   : > { %1484 = vst.msk [vmem:[#allocation2 + $0xf8] sm:$0xff] %vm914_vm1, %v1428_v13  ;;  %v854_v20 = vpop.f32.mrb[36].mxu0 }
 0x16a   : > { %v856_v32 = vpop.f32.mrb[37].mxu0  ;;  %v1374_v21 = vld [vmem:[#allocation2 + $0x108] sm:$0xff]  ;;  %5710 = vmatmul.mubr.msk.f32.gmra.mrb[142].mxu0 %vm595_vm0, %v5658_v17  ;;  %v1276_v23 = vpop.f32.mrb[34].mxu1 }
 0x16b   : > { %951 = vst.msk [vmem:[#allocation2 + $0x128] sm:$0xff] %vm914_vm1, %v856_v32  ;;  %v1430_v24 = vadd.f32 %v1374_v21, %v1272_v16  ;;  %v7717_v25 = vadd.f32 %v1276_v23, %v848_v6  ;;  %2885 = vmatprep.mubr.f32.mxu0 %v6621_v39  ;;  %v1278_v26 = vpop.f32.mrb[35].mxu1  ;;  %v5664_v23 = vld [vmem:[%s6979_s16 + $0xc8] sm:$0xff] }
 0x16d   : > { %1486 = vst.msk [vmem:[#allocation2 + $0x108] sm:$0xff] %vm914_vm1, %v1430_v24  ;;  %v860_v29 = vpop.f32.mrb[38].mxu0 }
 0x16e   : > { %v862_v30 = vpop.f32.mrb[39].mxu0  ;;  %v1376_v31 = vld [vmem:[#allocation2 + $0x118] sm:$0xff]  ;;  %5711 = vmatmul.mubr.msk.f32.gmra.mrb[144].mxu0 %vm595_vm0, %v5659_v46  ;;  %v1282_v33 = vpop.f32.mrb[36].mxu1 }
 0x16f   : > { %953 = vst.msk [vmem:[#allocation2 + $0x138] sm:$0xff] %vm914_vm1, %v862_v30  ;;  %v1432_v34 = vadd.f32 %v1376_v31, %v1278_v26  ;;  %v7724_v55 = vadd.f32 %v1282_v33, %v854_v20  ;;  %2891 = vmatprep.mubr.f32.mxu0 %v6621_v39  ;;  %v1284_v36 = vpop.f32.mrb[37].mxu1 }
 0x171   : > { %1488 = vst.msk [vmem:[#allocation2 + $0x118] sm:$0xff] %vm914_vm1, %v1432_v34  ;;  %v866_v38 = vpop.f32.mrb[40].mxu0  ;;  %v5665_v34 = vld [vmem:[%s6979_s16 + $0xd0] sm:$0xff] }
 0x172   : > { %v868_v40 = vpop.f32.mrb[41].mxu0  ;;  %v1378_v41 = vld [vmem:[#allocation2 + $0x128] sm:$0xff]  ;;  %5712 = vmatmul.mubr.msk.f32.gmra.mrb[146].mxu0 %vm595_vm0, %v5660_v37  ;;  %v1288_v60 = vpop.f32.mrb[38].mxu1 }
 0x173   : > { %955 = vst.msk [vmem:[#allocation2 + $0x148] sm:$0xff] %vm914_vm1, %v868_v40  ;;  %v1434_v19 = vadd.f32 %v1378_v41, %v1284_v36  ;;  %v7731_v44 = vadd.f32 %v1288_v60, %v860_v29  ;;  %2897 = vmatprep.mubr.f32.mxu0 %v6621_v39  ;;  %v1290_v45 = vpop.f32.mrb[39].mxu1 }
 0x175   : > { %1490 = vst.msk [vmem:[#allocation2 + $0x128] sm:$0xff] %vm914_vm1, %v1434_v19  ;;  %v872_v48 = vpop.f32.mrb[42].mxu0 }
 0x176   : > { %v874_v49 = vpop.f32.mrb[43].mxu0  ;;  %v1380_v51 = vld [vmem:[#allocation2 + $0x138] sm:$0xff]  ;;  %5713 = vmatmul.mubr.msk.f32.gmra.mrb[148].mxu0 %vm595_vm0, %v5661_v47  ;;  %v1294_v52 = vpop.f32.mrb[40].mxu1 }
 0x177   : > { %957 = vst.msk [vmem:[#allocation2 + $0x158] sm:$0xff] %vm914_vm1, %v874_v49  ;;  %v1436_v54 = vadd.f32 %v1380_v51, %v1290_v45  ;;  %v7738_v56 = vadd.f32 %v1294_v52, %v866_v38  ;;  %2903 = vmatprep.mubr.f32.mxu0 %v6621_v39  ;;  %v1296_v57 = vpop.f32.mrb[41].mxu1  ;;  %v5666_v45 = vld [vmem:[%s6979_s16 + $0xd8] sm:$0xff] }
 0x179   : > { %1492 = vst.msk [vmem:[#allocation2 + $0x138] sm:$0xff] %vm914_vm1, %v1436_v54  ;;  %v878_v62 = vpop.f32.mrb[44].mxu0 }
 0x17a   : > { %v880_v0 = vpop.f32.mrb[45].mxu0  ;;  %v1382_v1 = vld [vmem:[#allocation2 + $0x148] sm:$0xff]  ;;  %5714 = vmatmul.mubr.msk.f32.gmra.mrb[150].mxu0 %vm595_vm0, %v5662_v58  ;;  %v1300_v4 = vpop.f32.mrb[42].mxu1  ;;  %v5667_v58 = vld [vmem:[%s6979_s16 + $0xe0] sm:$0xff] }
 0x17b   : > { %959 = vst.msk [vmem:[#allocation2 + $0x168] sm:$0xff] %vm914_vm1, %v880_v0  ;;  %v1438_v5 = vadd.f32 %v1382_v1, %v1296_v57  ;;  %v7745_v6 = vadd.f32 %v1300_v4, %v872_v48  ;;  %2909 = vmatprep.mubr.f32.mxu0 %v6621_v39  ;;  %v1302_v9 = vpop.f32.mrb[43].mxu1 }
 0x17d   : > { %1494 = vst.msk [vmem:[#allocation2 + $0x148] sm:$0xff] %vm914_vm1, %v1438_v5  ;;  %v884_v12 = vpop.f32.mrb[46].mxu0 }
 0x17e   : > { %v886_v13 = vpop.f32.mrb[47].mxu0  ;;  %v1384_v16 = vld [vmem:[#allocation2 + $0x158] sm:$0xff]  ;;  %5715 = vmatmul.mubr.msk.f32.gmra.mrb[152].mxu0 %vm595_vm0, %v5663_v11  ;;  %v1306_v17 = vpop.f32.mrb[44].mxu1 }
 0x17f   : > { %961 = vst.msk [vmem:[#allocation2 + $0x178] sm:$0xff] %vm914_vm1, %v886_v13  ;;  %v1440_v20 = vadd.f32 %v1384_v16, %v1302_v9  ;;  %v7752_v32 = vadd.f32 %v1306_v17, %v878_v62  ;;  %2915 = vmatprep.mubr.f32.mxu0 %v6621_v39  ;;  %v1308_v21 = vpop.f32.mrb[45].mxu1 }
 0x181   : > { %1496 = vst.msk [vmem:[#allocation2 + $0x158] sm:$0xff] %vm914_vm1, %v1440_v20  ;;  %v890_v24 = vpop.f32.mrb[48].mxu0  ;;  %v1881_v20 = vld [vmem:[#allocation2 + $0x8] sm:$0xff] }
 0x182   : > { %v892_v26 = vpop.f32.mrb[49].mxu0  ;;  %v1386_v46 = vld [vmem:[#allocation2 + $0x168] sm:$0xff]  ;;  %5716 = vmatmul.mubr.msk.f32.gmra.mrb[154].mxu0 %vm595_vm0, %v5664_v23  ;;  %v1312_v29 = vpop.f32.mrb[46].mxu1 }
 0x183   : > { %963 = vst.msk [vmem:[#allocation2 + $0x188] sm:$0xff] %vm914_vm1, %v892_v26  ;;  %v1442_v30 = vadd.f32 %v1386_v46, %v1308_v21  ;;  %v7759_v31 = vadd.f32 %v1312_v29, %v884_v12  ;;  %2921 = vmatprep.mubr.f32.mxu0 %v6621_v39  ;;  %v1314_v33 = vpop.f32.mrb[47].mxu1 }
 0x185   : > { %1498 = vst.msk [vmem:[#allocation2 + $0x168] sm:$0xff] %vm914_vm1, %v1442_v30  ;;  %v896_v36 = vpop.f32.mrb[50].mxu0 }
 0x186   : > { %v898_v37 = vpop.f32.mrb[51].mxu0  ;;  %v1388_v38 = vld [vmem:[#allocation2 + $0x178] sm:$0xff]  ;;  %5717 = vmatmul.mubr.msk.f32.gmra.mrb[156].mxu0 %vm595_vm0, %v5665_v34  ;;  %v1318_v40 = vpop.f32.mrb[48].mxu1 }
 0x187   : > { %965 = vst.msk [vmem:[#allocation2 + $0x198] sm:$0xff] %vm914_vm1, %v898_v37  ;;  %v1444_v41 = vadd.f32 %v1388_v38, %v1314_v33  ;;  %v7766_v60 = vadd.f32 %v1318_v40, %v890_v24  ;;  %2927 = vmatprep.mubr.f32.mxu0 %v6621_v39  ;;  %v1320_v19 = vpop.f32.mrb[49].mxu1  ;;  %v1883_v34 = vld [vmem:[#allocation2 + $0x18] sm:$0xff] }
 0x188   : > { %v5670_v37 = vld [vmem:[%s6979_s16 + $0xf8] sm:$0xff]  ;;  %s6557_s16 = scalar_lea.vmem %s9241_s12, 128 }
 0x189   : > { %1500 = vst.msk [vmem:[#allocation2 + $0x178] sm:$0xff] %vm914_vm1, %v1444_v41  ;;  %v902_v47 = vpop.f32.mrb[52].mxu0  ;;  %p6558_p13 = scmp.ne.s32.totalorder %s9241_s12, %s6557_s16  ;;  %p6565_p3 = scmp.lt.s32.totalorder %s6563_s0, %s6557_s16 }
 0x18a   : > { %v904_v48 = vpop.f32.mrb[53].mxu0  ;;  %v1390_v49 = vld [vmem:[#allocation2 + $0x188] sm:$0xff]  ;;  %5718 = vmatmul.mubr.msk.f32.gmra.mrb[158].mxu0 %vm595_vm0, %v5666_v45  ;;  %v1324_v51 = vpop.f32.mrb[50].mxu1 }
 0x18b   : > { %967 = vst.msk [vmem:[#allocation2 + $0x1a8] sm:$0xff] %vm914_vm1, %v904_v48  ;;  %v1446_v52 = vadd.f32 %v1390_v49, %v1320_v19  ;;  %v7773_v54 = vadd.f32 %v1324_v51, %v896_v36  ;;  %2933 = vmatprep.mubr.f32.mxu0 %v6621_v39  ;;  %v1326_v57 = vpop.f32.mrb[51].mxu1  ;;  %p6559_p0 = pnand %p6558_p13, %p6725_p6  ;;  %p6566_p4 = por %p6565_p3, %p6564_p2 }
 0x18d   : > { %1502 = vst.msk [vmem:[#allocation2 + $0x188] sm:$0xff] %vm914_vm1, %v1446_v52  ;;  %v908_v62 = vpop.f32.mrb[54].mxu0  ;;  %p6560_p1 = pneg %p6559_p0 }
 0x18e   : > { %v910_v0 = vpop.f32.mrb[55].mxu0  ;;  %v1392_v1 = vld [vmem:[#allocation2 + $0x198] sm:$0xff]  ;;  %5719 = vmatmul.mubr.msk.f32.gmra.mrb[160].mxu0 %vm595_vm0, %v5667_v58  ;;  %v1330_v4 = vpop.f32.mrb[52].mxu1 }
 0x18f   : > { %969 = vst.msk [vmem:[#allocation2 + $0x1b8] sm:$0xff] %vm914_vm1, %v910_v0  ;;  %v1448_v5 = vadd.f32 %v1392_v1, %v1326_v57  ;;  %v7780_v9 = vadd.f32 %v1330_v4, %v902_v47  ;;  %2939 = vmatprep.mubr.f32.mxu0 %v6621_v39  ;;  %v1332_v11 = vpop.f32.mrb[53].mxu1  ;;  %v1885_v47 = vld [vmem:[#allocation2 + $0x28] sm:$0xff]  ;;  %p6567_p5 = pnand %p6566_p4, %p6560_p1 }
 0x191   : > { %1504 = vst.msk [vmem:[#allocation2 + $0x198] sm:$0xff] %vm914_vm1, %v1448_v5  ;;  %v1713_v12 = vpop.f32.mrb[56].mxu0 }
 0x192   : > { %v1936_v13 = vadd.f32 %v1713_v12, %v7584_v63  ;;  %v1394_v16 = vld [vmem:[#allocation2 + $0x1a8] sm:$0xff]  ;;  %v1715_v17 = vpop.f32.mrb[57].mxu0  ;;  %5720 = vmatmul.mubr.msk.f32.gmra.mrb[162].mxu0 %vm595_vm0, %v7590_v2 }
 0x193   : > { %v1450_v21 = vadd.f32 %v1394_v16, %v1332_v11  ;;  %v1937_v23 = vadd.f32 %v1881_v20, %v1715_v17  ;;  %v1336_v24 = vpop.f32.mrb[54].mxu1  ;;  %2945 = vmatprep.mubr.f32.mxu0 %v6621_v39 }
 0x194   : > { %v7788_v26 = vadd.f32 %v1336_v24, %v908_v62  ;;  %v1338_v46 = vpop.f32.mrb[55].mxu1 }
 0x195   : > { %1506 = vst.msk [vmem:[#allocation2 + $0x1a8] sm:$0xff] %vm914_vm1, %v1450_v21  ;;  %1993 = vst.msk [vmem:[#allocation2 + $0x8] sm:$0xff] %vm914_vm1, %v1937_v23  ;;  %v1719_v63 = vpop.f32.mrb[58].mxu0  ;;  %v1889_v21 = vld [vmem:[#allocation2 + $0x48] sm:$0xff] }
 0x196   : > { %v1938_v29 = vadd.f32 %v1719_v63, %v7596_v7  ;;  %v1396_v30 = vld [vmem:[#allocation2 + $0x1b8] sm:$0xff]  ;;  %v1721_v33 = vpop.f32.mrb[59].mxu0  ;;  %5721 = vmatmul.mubr.msk.f32.gmra.mrb[164].mxu0 %vm595_vm0, %v7604_v10 }
 0x197   : > { %v1452_v2 = vadd.f32 %v1396_v30, %v1338_v46  ;;  %v1939_v36 = vadd.f32 %v1883_v34, %v1721_v33  ;;  %2951 = vmatprep.mubr.f32.mxu0 %v6621_v39  ;;  %v2252_v38 = vpop.f32.mrb[56].mxu1 }
 0x198   : > { %v7797_v40 = vadd.f32 %v2252_v38, %v1936_v13  ;;  %v2254_v41 = vpop.f32.mrb[57].mxu1 }
 0x199   : > { %1508 = vst.msk [vmem:[#allocation2 + $0x1b8] sm:$0xff] %vm914_vm1, %v1452_v2  ;;  %1995 = vst.msk [vmem:[#allocation2 + $0x18] sm:$0xff] %vm914_vm1, %v1939_v36  ;;  %v1725_v7 = vpop.f32.mrb[60].mxu0  ;;  %v1891_v2 = vld [vmem:[#allocation2 + $0x58] sm:$0xff] }
 0x19a   : > { %v1940_v19 = vadd.f32 %v1725_v7, %v7609_v15  ;;  %v1727_v45 = vpop.f32.mrb[61].mxu0  ;;  %5722 = vmatmul.mubr.msk.f32.gmra.mrb[166].mxu0 %vm595_vm0, %v5670_v37  ;;  %v1887_v15 = vld [vmem:[#allocation2 + $0x38] sm:$0xff] }
 0x19b   : > { %v1941_v10 = vadd.f32 %v1885_v47, %v1727_v45  ;;  %v2258_v48 = vpop.f32.mrb[58].mxu1  ;;  %4197 = vmatprep.mubr.f32.mxu0 %v6621_v39 }
 0x19c   : > { %v2420_v49 = vld [vmem:[#allocation2 + $0x8] sm:$0xff]  ;;  %v7804_v51 = vadd.f32 %v2258_v48, %v1938_v29  ;;  %v2260_v52 = vpop.f32.mrb[59].mxu1 }
 0x19d   : > { %1997 = vst.msk [vmem:[#allocation2 + $0x28] sm:$0xff] %vm914_vm1, %v1941_v10  ;;  %v2476_v57 = vadd.f32 %v2420_v49, %v2254_v41  ;;  %v1731_v58 = vpop.f32.mrb[62].mxu0  ;;  %v1893_v10 = vld [vmem:[#allocation2 + $0x68] sm:$0xff] }
 0x19e   : > { %v1942_v62 = vadd.f32 %v1731_v58, %v7619_v22  ;;  %v1733_v0 = vpop.f32.mrb[63].mxu0 }
 0x19f   : > { %2532 = vst.msk [vmem:[#allocation2 + $0x8] sm:$0xff] %vm914_vm1, %v2476_v57  ;;  %v1943_v1 = vadd.f32 %v1887_v15, %v1733_v0  ;;  %v2264_v4 = vpop.f32.mrb[60].mxu1 }
 0x1a0   : > { %v2422_v5 = vld [vmem:[#allocation2 + $0x18] sm:$0xff]  ;;  %v7809_v11 = vadd.f32 %v2264_v4, %v1940_v19  ;;  %v2266_v12 = vpop.f32.mrb[61].mxu1 }
 0x1a1   : > { %1999 = vst.msk [vmem:[#allocation2 + $0x38] sm:$0xff] %vm914_vm1, %v1943_v1  ;;  %v2478_v13 = vadd.f32 %v2422_v5, %v2260_v52  ;;  %v1737_v16 = vpop.f32.mrb[64].mxu0  ;;  %v1895_v1 = vld [vmem:[#allocation2 + $0x78] sm:$0xff] }
 0x1a2   : > { %v1944_v17 = vadd.f32 %v1737_v16, %v7626_v28  ;;  %v1739_v20 = vpop.f32.mrb[65].mxu0 }
 0x1a3   : > { %2534 = vst.msk [vmem:[#allocation2 + $0x18] sm:$0xff] %vm914_vm1, %v2478_v13  ;;  %v1945_v22 = vadd.f32 %v1889_v21, %v1739_v20  ;;  %v2270_v23 = vpop.f32.mrb[62].mxu1 }
 0x1a4   : > { %v2424_v24 = vld [vmem:[#allocation2 + $0x28] sm:$0xff]  ;;  %v7814_v46 = vadd.f32 %v2270_v23, %v1942_v62  ;;  %v2272_v63 = vpop.f32.mrb[63].mxu1 }
 0x1a5   : > { %2001 = vst.msk [vmem:[#allocation2 + $0x48] sm:$0xff] %vm914_vm1, %v1945_v22  ;;  %v2480_v29 = vadd.f32 %v2424_v24, %v2266_v12  ;;  %v1743_v30 = vpop.f32.mrb[66].mxu0  ;;  %v1897_v22 = vld [vmem:[#allocation2 + $0x88] sm:$0xff] }
 0x1a6   : > { %v1946_v33 = vadd.f32 %v1743_v30, %v7633_v35  ;;  %v1745_v34 = vpop.f32.mrb[67].mxu0 }
 0x1a7   : > { %2536 = vst.msk [vmem:[#allocation2 + $0x28] sm:$0xff] %vm914_vm1, %v2480_v29  ;;  %v1947_v28 = vadd.f32 %v1891_v2, %v1745_v34  ;;  %v2276_v36 = vpop.f32.mrb[64].mxu1 }
 0x1a8   : > { %v2426_v37 = vld [vmem:[#allocation2 + $0x38] sm:$0xff]  ;;  %v7819_v38 = vadd.f32 %v2276_v36, %v1944_v17  ;;  %v2278_v41 = vpop.f32.mrb[65].mxu1 }
 0x1a9   : > { %2003 = vst.msk [vmem:[#allocation2 + $0x58] sm:$0xff] %vm914_vm1, %v1947_v28  ;;  %v2482_v7 = vadd.f32 %v2426_v37, %v2272_v63  ;;  %v1749_v19 = vpop.f32.mrb[68].mxu0  ;;  %v1899_v28 = vld [vmem:[#allocation2 + $0x98] sm:$0xff] }
 0x1aa   : > { %v1948_v45 = vadd.f32 %v1749_v19, %v7640_v42  ;;  %v1751_v47 = vpop.f32.mrb[69].mxu0 }
 0x1ab   : > { %2538 = vst.msk [vmem:[#allocation2 + $0x38] sm:$0xff] %vm914_vm1, %v2482_v7  ;;  %v1949_v35 = vadd.f32 %v1893_v10, %v1751_v47  ;;  %v2282_v48 = vpop.f32.mrb[66].mxu1 }
 0x1ac   : > { %v2428_v49 = vld [vmem:[#allocation2 + $0x48] sm:$0xff]  ;;  %v7824_v52 = vadd.f32 %v2282_v48, %v1946_v33  ;;  %v2284_v57 = vpop.f32.mrb[67].mxu1 }
 0x1ad   : > { %2005 = vst.msk [vmem:[#allocation2 + $0x68] sm:$0xff] %vm914_vm1, %v1949_v35  ;;  %v2484_v58 = vadd.f32 %v2428_v49, %v2278_v41  ;;  %v1755_v62 = vpop.f32.mrb[70].mxu0  ;;  %v1901_v35 = vld [vmem:[#allocation2 + $0xa8] sm:$0xff] }
 0x1ae   : > { %v1950_v0 = vadd.f32 %v1755_v62, %v7647_v50  ;;  %v1757_v15 = vpop.f32.mrb[71].mxu0 }
 0x1af   : > { %2540 = vst.msk [vmem:[#allocation2 + $0x48] sm:$0xff] %vm914_vm1, %v2484_v58  ;;  %v1951_v42 = vadd.f32 %v1895_v1, %v1757_v15  ;;  %v2288_v4 = vpop.f32.mrb[68].mxu1 }
 0x1b0   : > { %v2430_v5 = vld [vmem:[#allocation2 + $0x58] sm:$0xff]  ;;  %v7829_v12 = vadd.f32 %v2288_v4, %v1948_v45  ;;  %v2290_v13 = vpop.f32.mrb[69].mxu1 }
 0x1b1   : > { %2007 = vst.msk [vmem:[#allocation2 + $0x78] sm:$0xff] %vm914_vm1, %v1951_v42  ;;  %v2486_v16 = vadd.f32 %v2430_v5, %v2284_v57  ;;  %v1761_v17 = vpop.f32.mrb[72].mxu0  ;;  %v1903_v42 = vld [vmem:[#allocation2 + $0xb8] sm:$0xff] }
 0x1b2   : > { %v1952_v20 = vadd.f32 %v1761_v17, %v7654_v59  ;;  %v1763_v21 = vpop.f32.mrb[73].mxu0 }
 0x1b3   : > { %2542 = vst.msk [vmem:[#allocation2 + $0x58] sm:$0xff] %vm914_vm1, %v2486_v16  ;;  %v1953_v50 = vadd.f32 %v1897_v22, %v1763_v21  ;;  %v2294_v23 = vpop.f32.mrb[70].mxu1 }
 0x1b4   : > { %v2432_v24 = vld [vmem:[#allocation2 + $0x68] sm:$0xff]  ;;  %v7834_v63 = vadd.f32 %v2294_v23, %v1950_v0  ;;  %v2296_v29 = vpop.f32.mrb[71].mxu1 }
 0x1b5   : > { %2009 = vst.msk [vmem:[#allocation2 + $0x88] sm:$0xff] %vm914_vm1, %v1953_v50  ;;  %v2488_v30 = vadd.f32 %v2432_v24, %v2290_v13  ;;  %v1767_v33 = vpop.f32.mrb[74].mxu0  ;;  %v1905_v50 = vld [vmem:[#allocation2 + $0xc8] sm:$0xff] }
 0x1b6   : > { %v1954_v34 = vadd.f32 %v1767_v33, %v7661_v8  ;;  %v1769_v2 = vpop.f32.mrb[75].mxu0  ;;  %v3462_v33 = vld [vmem:[%s9286_s3 + $0x8] sm:$0xff] }
 0x1b7   : > { %2544 = vst.msk [vmem:[#allocation2 + $0x68] sm:$0xff] %vm914_vm1, %v2488_v30  ;;  %v1955_v59 = vadd.f32 %v1899_v28, %v1769_v2  ;;  %v2300_v36 = vpop.f32.mrb[72].mxu1 }
 0x1b8   : > { %v2434_v37 = vld [vmem:[#allocation2 + $0x78] sm:$0xff]  ;;  %v7839_v41 = vadd.f32 %v2300_v36, %v1952_v20  ;;  %v2302_v7 = vpop.f32.mrb[73].mxu1  ;;  %v3463_v36 = vld [vmem:[%s9286_s3 + $0x10] sm:$0xff] }
 0x1b9   : > { %2011 = vst.msk [vmem:[#allocation2 + $0x98] sm:$0xff] %vm914_vm1, %v1955_v59  ;;  %v2490_v19 = vadd.f32 %v2434_v37, %v2296_v29  ;;  %v1773_v45 = vpop.f32.mrb[76].mxu0  ;;  %v3461_v59 = vld [vmem:[%s9286_s3] sm:$0xff] }
 0x1ba   : > { %v1956_v47 = vadd.f32 %v1773_v45, %v7668_v18  ;;  %v1775_v10 = vpop.f32.mrb[77].mxu0  ;;  %v6304_v45 = vpack.c.bf16 %v3463_v36, %v3461_v59 }
 0x1bb   : > { %2546 = vst.msk [vmem:[#allocation2 + $0x78] sm:$0xff] %vm914_vm1, %v2490_v19  ;;  %v1957_v8 = vadd.f32 %v1901_v35, %v1775_v10  ;;  %v2306_v48 = vpop.f32.mrb[74].mxu1  ;;  %v1907_v19 = vld [vmem:[#allocation2 + $0xd8] sm:$0xff] }
 0x1bc   : > { %v2436_v49 = vld [vmem:[#allocation2 + $0x88] sm:$0xff]  ;;  %v7844_v57 = vadd.f32 %v2306_v48, %v1954_v34  ;;  %v2308_v58 = vpop.f32.mrb[75].mxu1  ;;  %v3464_v34 = vld [vmem:[%s9286_s3 + $0x18] sm:$0xff] }
 0x1bd   : > { %2013 = vst.msk [vmem:[#allocation2 + $0xa8] sm:$0xff] %vm914_vm1, %v1957_v8  ;;  %v2492_v62 = vadd.f32 %v2436_v49, %v2302_v7  ;;  %v1779_v0 = vpop.f32.mrb[78].mxu0  ;;  %v6302_v28 = vpack.c.bf16 %v3464_v34, %v3462_v33 }
 0x1be   : > { %v1958_v15 = vadd.f32 %v1779_v0, %v7675_v27  ;;  %v1781_v1 = vpop.f32.mrb[79].mxu0  ;;  %v1909_v0 = vld [vmem:[#allocation2 + $0xe8] sm:$0xff] }
 0x1bf   : > { %2548 = vst.msk [vmem:[#allocation2 + $0x88] sm:$0xff] %vm914_vm1, %v2492_v62  ;;  %v1959_v18 = vadd.f32 %v1903_v42, %v1781_v1  ;;  %v2312_v4 = vpop.f32.mrb[76].mxu1  ;;  %6303 = vmatprep.subr.bf16.mxu1 %v6302_v28 }
 0x1c0   : > { %v2438_v5 = vld [vmem:[#allocation2 + $0x98] sm:$0xff]  ;;  %v7849_v13 = vadd.f32 %v2312_v4, %v1956_v47  ;;  %v2314_v16 = vpop.f32.mrb[77].mxu1  ;;  %6305 = vmatpush1.bf16.msra.mxu1 %v6304_v45 }
 0x1c1   : > { %2015 = vst.msk [vmem:[#allocation2 + $0xb8] sm:$0xff] %vm914_vm1, %v1959_v18  ;;  %v2494_v17 = vadd.f32 %v2438_v5, %v2308_v58  ;;  %v1785_v20 = vpop.f32.mrb[80].mxu0 }
 0x1c2   : > { %v1960_v21 = vadd.f32 %v1785_v20, %v7682_v61  ;;  %v1787_v22 = vpop.f32.mrb[81].mxu0 }
 0x1c3   : > { %2550 = vst.msk [vmem:[#allocation2 + $0x98] sm:$0xff] %vm914_vm1, %v2494_v17  ;;  %v1961_v27 = vadd.f32 %v1905_v50, %v1787_v22  ;;  %v2318_v23 = vpop.f32.mrb[78].mxu1 }
 0x1c4   : > { %v2440_v24 = vld [vmem:[#allocation2 + $0xa8] sm:$0xff]  ;;  %v7854_v29 = vadd.f32 %v2318_v23, %v1958_v15  ;;  %v2320_v30 = vpop.f32.mrb[79].mxu1 }
 0x1c5   : > { %2017 = vst.msk [vmem:[#allocation2 + $0xc8] sm:$0xff] %vm914_vm1, %v1961_v27  ;;  %v2496_v61 = vadd.f32 %v2440_v24, %v2314_v16  ;;  %v1791_v2 = vpop.f32.mrb[82].mxu0 }
 0x1c6   : > { %v1962_v37 = vadd.f32 %v1791_v2, %v7689_v43  ;;  %v1793_v7 = vpop.f32.mrb[83].mxu0 }
 0x1c7   : > { %2552 = vst.msk [vmem:[#allocation2 + $0xa8] sm:$0xff] %vm914_vm1, %v2496_v61  ;;  %v1963_v47 = vadd.f32 %v1907_v19, %v1793_v7  ;;  %v2324_v10 = vpop.f32.mrb[80].mxu1  ;;  %v1913_v61 = vld [vmem:[#allocation2 + $0x108] sm:$0xff] }
 0x1c8   : > { %v2442_v35 = vld [vmem:[#allocation2 + $0xb8] sm:$0xff]  ;;  %v7871_v8 = vadd.f32 %v2324_v10, %v1960_v21  ;;  %v2326_v48 = vpop.f32.mrb[81].mxu1  ;;  %v3466_v19 = vld [vmem:[%s9286_s3 + $0x28] sm:$0xff] }
 0x1c9   : > { %2019 = vst.msk [vmem:[#allocation2 + $0xd8] sm:$0xff] %vm914_vm1, %v1963_v47  ;;  %v2498_v49 = vadd.f32 %v2442_v35, %v2320_v30  ;;  %v1797_v58 = vpop.f32.mrb[84].mxu0  ;;  %v1911_v21 = vld [vmem:[#allocation2 + $0xf8] sm:$0xff] }
 0x1ca   : > { %v1964_v62 = vadd.f32 %v1797_v58, %v7696_v53  ;;  %v1799_v43 = vpop.f32.mrb[85].mxu0  ;;  %v1915_v10 = vld [vmem:[#allocation2 + $0x118] sm:$0xff] }
 0x1cb   : > { %2554 = vst.msk [vmem:[#allocation2 + $0xb8] sm:$0xff] %vm914_vm1, %v2498_v49  ;;  %v1965_v15 = vadd.f32 %v1909_v0, %v1799_v43  ;;  %v2330_v1 = vpop.f32.mrb[82].mxu1  ;;  %v3465_v0 = vld [vmem:[%s9286_s3 + $0x20] sm:$0xff] }
 0x1cc   : > { %v2444_v42 = vld [vmem:[#allocation2 + $0xc8] sm:$0xff]  ;;  %v7876_v18 = vadd.f32 %v2330_v1, %v1962_v37  ;;  %v2332_v4 = vpop.f32.mrb[83].mxu1 }
 0x1cd   : > { %2021 = vst.msk [vmem:[#allocation2 + $0xe8] sm:$0xff] %vm914_vm1, %v1965_v15  ;;  %v2500_v5 = vadd.f32 %v2444_v42, %v2326_v48  ;;  %v1803_v16 = vpop.f32.mrb[86].mxu0 }
 0x1ce   : > { %v1966_v17 = vadd.f32 %v1803_v16, %v7703_v3  ;;  %v1805_v20 = vpop.f32.mrb[87].mxu0  ;;  %v1917_v16 = vld [vmem:[#allocation2 + $0x128] sm:$0xff] }
 0x1cf   : > { %2556 = vst.msk [vmem:[#allocation2 + $0xc8] sm:$0xff] %vm914_vm1, %v2500_v5  ;;  %v1967_v53 = vadd.f32 %v1911_v21, %v1805_v20  ;;  %v2336_v22 = vpop.f32.mrb[84].mxu1 }
 0x1d0   : > { %v2446_v50 = vld [vmem:[#allocation2 + $0xd8] sm:$0xff]  ;;  %v7881_v27 = vadd.f32 %v2336_v22, %v1964_v62  ;;  %v2338_v23 = vpop.f32.mrb[85].mxu1 }
 0x1d1   : > { %2023 = vst.msk [vmem:[#allocation2 + $0xf8] sm:$0xff] %vm914_vm1, %v1967_v53  ;;  %v2502_v24 = vadd.f32 %v2446_v50, %v2332_v4  ;;  %v1809_v30 = vpop.f32.mrb[88].mxu0 }
 0x1d2   : > { %v1968_v33 = vadd.f32 %v1809_v30, %v7710_v14  ;;  %v1811_v34 = vpop.f32.mrb[89].mxu0  ;;  %v3468_v14 = vld [vmem:[%s9286_s3 + $0x38] sm:$0xff] }
 0x1d3   : > { %2558 = vst.msk [vmem:[#allocation2 + $0xd8] sm:$0xff] %vm914_vm1, %v2502_v24  ;;  %v1969_v3 = vadd.f32 %v1913_v61, %v1811_v34  ;;  %v2342_v2 = vpop.f32.mrb[86].mxu1  ;;  %v6306_v35 = vpack.c.bf16 %v3468_v14, %v3466_v19  ;;  %v1921_v19 = vld [vmem:[#allocation2 + $0x148] sm:$0xff] }
 0x1d4   : > { %v2448_v28 = vld [vmem:[#allocation2 + $0xe8] sm:$0xff]  ;;  %v7886_v59 = vadd.f32 %v2342_v2, %v1966_v17  ;;  %v2344_v36 = vpop.f32.mrb[87].mxu1 }
 0x1d5   : > { %2025 = vst.msk [vmem:[#allocation2 + $0x108] sm:$0xff] %vm914_vm1, %v1969_v3  ;;  %v2504_v37 = vadd.f32 %v2448_v28, %v2338_v23  ;;  %v1815_v7 = vpop.f32.mrb[90].mxu0  ;;  %6307 = vmatprep.subr.bf16.mxu1 %v6306_v35 }
 0x1d6   : > { %v1970_v45 = vadd.f32 %v1815_v7, %v7717_v25  ;;  %v1817_v47 = vpop.f32.mrb[91].mxu0  ;;  %v3467_v25 = vld [vmem:[%s9286_s3 + $0x30] sm:$0xff] }
 0x1d7   : > { %2560 = vst.msk [vmem:[#allocation2 + $0xe8] sm:$0xff] %vm914_vm1, %v2504_v37  ;;  %v1971_v48 = vadd.f32 %v1915_v10, %v1817_v47  ;;  %v2348_v49 = vpop.f32.mrb[88].mxu1  ;;  %v6308_v42 = vpack.c.bf16 %v3467_v25, %v3465_v0 }
 0x1d8   : > { %v2450_v58 = vld [vmem:[#allocation2 + $0xf8] sm:$0xff]  ;;  %v7897_v62 = vadd.f32 %v2348_v49, %v1968_v33  ;;  %v2350_v43 = vpop.f32.mrb[89].mxu1 }
 0x1d9   : > { %2027 = vst.msk [vmem:[#allocation2 + $0x118] sm:$0xff] %vm914_vm1, %v1971_v48  ;;  %v2506_v15 = vadd.f32 %v2450_v58, %v2344_v36  ;;  %v1821_v1 = vpop.f32.mrb[92].mxu0  ;;  %6309 = vmatpush1.bf16.msra.mxu1 %v6308_v42  ;;  %v1919_v33 = vld [vmem:[#allocation2 + $0x138] sm:$0xff] }
 0x1da   : > { %v1972_v4 = vadd.f32 %v1821_v1, %v7724_v55  ;;  %v1823_v5 = vpop.f32.mrb[93].mxu0 }
 0x1db   : > { %2562 = vst.msk [vmem:[#allocation2 + $0xf8] sm:$0xff] %vm914_vm1, %v2506_v15  ;;  %v1973_v17 = vadd.f32 %v1917_v16, %v1823_v5  ;;  %v2354_v20 = vpop.f32.mrb[90].mxu1  ;;  %v3470_v5 = vld [vmem:[%s9286_s3 + $0x48] sm:$0xff]  ;;  %v3469_v16 = vld [vmem:[%s9286_s3 + $0x40] sm:$0xff] }
 0x1dc   : > { %v2452_v21 = vld [vmem:[#allocation2 + $0x108] sm:$0xff]  ;;  %v7908_v53 = vadd.f32 %v2354_v20, %v1970_v45  ;;  %v2356_v22 = vpop.f32.mrb[91].mxu1 }
 0x1dd   : > { %2029 = vst.msk [vmem:[#allocation2 + $0x128] sm:$0xff] %vm914_vm1, %v1973_v17  ;;  %v2508_v50 = vadd.f32 %v2452_v21, %v2350_v43  ;;  %v1827_v23 = vpop.f32.mrb[94].mxu0  ;;  %v1923_v43 = vld [vmem:[#allocation2 + $0x158] sm:$0xff]  ;;  %v1925_v21 = vld [vmem:[#allocation2 + $0x168] sm:$0xff] }
 0x1de   : > { %v1974_v24 = vadd.f32 %v1827_v23, %v7731_v44  ;;  %v1829_v30 = vpop.f32.mrb[95].mxu0 }
 0x1df   : > { %2564 = vst.msk [vmem:[#allocation2 + $0x108] sm:$0xff] %vm914_vm1, %v2508_v50  ;;  %v1975_v55 = vadd.f32 %v1919_v33, %v1829_v30  ;;  %v2360_v34 = vpop.f32.mrb[92].mxu1  ;;  %v3471_v50 = vld [vmem:[%s9286_s3 + $0x50] sm:$0xff] }
 0x1e0   : > { %v2454_v61 = vld [vmem:[#allocation2 + $0x118] sm:$0xff]  ;;  %v7913_v3 = vadd.f32 %v2360_v34, %v1972_v4  ;;  %v2362_v2 = vpop.f32.mrb[93].mxu1  ;;  %v6312_v30 = vpack.c.bf16 %v3471_v50, %v3469_v16 }
 0x1e1   : > { %2031 = vst.msk [vmem:[#allocation2 + $0x138] sm:$0xff] %vm914_vm1, %v1975_v55  ;;  %v2510_v28 = vadd.f32 %v2454_v61, %v2356_v22  ;;  %v1833_v36 = vpop.f32.mrb[96].mxu0 }
 0x1e2   : > { %v1976_v37 = vadd.f32 %v1833_v36, %v7738_v56  ;;  %v1835_v7 = vpop.f32.mrb[97].mxu0  ;;  %v1927_v36 = vld [vmem:[#allocation2 + $0x178] sm:$0xff] }
 0x1e3   : > { %2566 = vst.msk [vmem:[#allocation2 + $0x118] sm:$0xff] %vm914_vm1, %v2510_v28  ;;  %v1977_v44 = vadd.f32 %v1921_v19, %v1835_v7  ;;  %v2366_v14 = vpop.f32.mrb[94].mxu1 }
 0x1e4   : > { %v2456_v45 = vld [vmem:[#allocation2 + $0x128] sm:$0xff]  ;;  %v7918_v47 = vadd.f32 %v2366_v14, %v1974_v24  ;;  %v2368_v10 = vpop.f32.mrb[95].mxu1 }
 0x1e5   : > { %2033 = vst.msk [vmem:[#allocation2 + $0x148] sm:$0xff] %vm914_vm1, %v1977_v44  ;;  %v2512_v35 = vadd.f32 %v2456_v45, %v2362_v2  ;;  %v1839_v48 = vpop.f32.mrb[98].mxu0 }
 0x1e6   : > { %v1978_v49 = vadd.f32 %v1839_v48, %v7745_v6  ;;  %v1841_v58 = vpop.f32.mrb[99].mxu0  ;;  %v3472_v6 = vld [vmem:[%s9286_s3 + $0x58] sm:$0xff] }
 0x1e7   : > { %2568 = vst.msk [vmem:[#allocation2 + $0x128] sm:$0xff] %vm914_vm1, %v2512_v35  ;;  %v1979_v56 = vadd.f32 %v1923_v43, %v1841_v58  ;;  %v2372_v0 = vpop.f32.mrb[96].mxu1  ;;  %v6310_v22 = vpack.c.bf16 %v3472_v6, %v3470_v5  ;;  %v1931_v5 = vld [vmem:[#allocation2 + $0x198] sm:$0xff]  ;;  %v3184_v6 = vlaneseq }
 0x1e8   : > { %v2458_v25 = vld [vmem:[#allocation2 + $0x138] sm:$0xff]  ;;  %v7923_v15 = vadd.f32 %v2372_v0, %v1976_v37  ;;  %v2374_v1 = vpop.f32.mrb[97].mxu1 }
 0x1e9   : > { %2035 = vst.msk [vmem:[#allocation2 + $0x158] sm:$0xff] %vm914_vm1, %v1979_v56  ;;  %v2514_v42 = vadd.f32 %v2458_v25, %v2368_v10  ;;  %v1845_v4 = vpop.f32.mrb[100].mxu0  ;;  %6311 = vmatprep.subr.bf16.mxu1 %v6310_v22 }
 0x1ea   : > { %v1980_v17 = vadd.f32 %v1845_v4, %v7752_v32  ;;  %v1847_v20 = vpop.f32.mrb[101].mxu0  ;;  %6313 = vmatpush1.bf16.msra.mxu1 %v6312_v30 }
 0x1eb   : > { %2570 = vst.msk [vmem:[#allocation2 + $0x138] sm:$0xff] %vm914_vm1, %v2514_v42  ;;  %v1981_v23 = vadd.f32 %v1925_v21, %v1847_v20  ;;  %v2378_v24 = vpop.f32.mrb[98].mxu1  ;;  %v3476_v20 = vld [vmem:[%s9286_s3 + $0x78] sm:$0xff]  ;;  %v3473_v21 = vld [vmem:[%s9286_s3 + $0x60] sm:$0xff] }
 0x1ec   : > { %v2460_v33 = vld [vmem:[#allocation2 + $0x148] sm:$0xff]  ;;  %v7940_v55 = vadd.f32 %v2378_v24, %v1978_v49  ;;  %v2380_v34 = vpop.f32.mrb[99].mxu1  ;;  %v3475_v24 = vld [vmem:[%s9286_s3 + $0x70] sm:$0xff] }
 0x1ed   : > { %2037 = vst.msk [vmem:[#allocation2 + $0x168] sm:$0xff] %vm914_vm1, %v1981_v23  ;;  %v2516_v32 = vadd.f32 %v2460_v33, %v2374_v1  ;;  %v1851_v61 = vpop.f32.mrb[102].mxu0  ;;  %v1929_v49 = vld [vmem:[#allocation2 + $0x188] sm:$0xff] }
 0x1ee   : > { %v1982_v2 = vadd.f32 %v1851_v61, %v7759_v31  ;;  %v1853_v28 = vpop.f32.mrb[103].mxu0 }
 0x1ef   : > { %2572 = vst.msk [vmem:[#allocation2 + $0x148] sm:$0xff] %vm914_vm1, %v2516_v32  ;;  %v1983_v37 = vadd.f32 %v1927_v36, %v1853_v28  ;;  %v2384_v7 = vpop.f32.mrb[100].mxu1  ;;  %v7971_v28 = vshrl.u32 %v3184_v6, 7 }
 0x1f0   : > { %v2462_v19 = vld [vmem:[#allocation2 + $0x158] sm:$0xff]  ;;  %v7945_v44 = vadd.f32 %v2384_v7, %v1980_v17  ;;  %v2386_v14 = vpop.f32.mrb[101].mxu1  ;;  %v3474_v17 = vld [vmem:[%s9286_s3 + $0x68] sm:$0xff] }
 0x1f1   : > { %2039 = vst.msk [vmem:[#allocation2 + $0x178] sm:$0xff] %vm914_vm1, %v1983_v37  ;;  %v2518_v45 = vadd.f32 %v2462_v19, %v2380_v34  ;;  %v1857_v10 = vpop.f32.mrb[104].mxu0  ;;  %v6314_v23 = vpack.c.bf16 %v3476_v20, %v3474_v17  ;;  %v6316_v34 = vpack.c.bf16 %v3475_v24, %v3473_v21  ;;  %v2959_v21 = vld [vmem:[#allocation2 + $0x8] sm:$0xff] }
 0x1f2   : > { %v1984_v35 = vadd.f32 %v1857_v10, %v7766_v60  ;;  %v1859_v48 = vpop.f32.mrb[105].mxu0 }
 0x1f3   : > { %2574 = vst.msk [vmem:[#allocation2 + $0x158] sm:$0xff] %vm914_vm1, %v2518_v45  ;;  %v1985_v31 = vadd.f32 %v1929_v49, %v1859_v48  ;;  %v2390_v58 = vpop.f32.mrb[102].mxu1  ;;  %6315 = vmatprep.subr.bf16.mxu1 %v6314_v23  ;;  %v1935_v48 = vld [vmem:[#allocation2 + $0x1b8] sm:$0xff]  ;;  %v3186_v49 = vsub.s32 0, %v7971_v28 }
 0x1f4   : > { %v2464_v43 = vld [vmem:[#allocation2 + $0x168] sm:$0xff]  ;;  %v7950_v56 = vadd.f32 %v2390_v58, %v1982_v2  ;;  %v2392_v0 = vpop.f32.mrb[103].mxu1  ;;  %6317 = vmatpush1.bf16.msra.mxu1 %v6316_v34 }
 0x1f5   : > { %2041 = vst.msk [vmem:[#allocation2 + $0x188] sm:$0xff] %vm914_vm1, %v1985_v31  ;;  %v2520_v25 = vadd.f32 %v2464_v43, %v2386_v14  ;;  %v1863_v1 = vpop.f32.mrb[106].mxu0  ;;  %v1933_v2 = vld [vmem:[#allocation2 + $0x1a8] sm:$0xff]  ;;  %v3182_v43 = vld [vmem:[%s9285_s2] sm:$0x3] }
 0x1f6   : > { %v1986_v42 = vadd.f32 %v1863_v1, %v7773_v54  ;;  %v1865_v4 = vpop.f32.mrb[107].mxu0 }
 0x1f7   : > { %2576 = vst.msk [vmem:[#allocation2 + $0x168] sm:$0xff] %vm914_vm1, %v2520_v25  ;;  %v1987_v60 = vadd.f32 %v1931_v5, %v1865_v4  ;;  %v2396_v16 = vpop.f32.mrb[104].mxu1 }
 0x1f8   : > { %v2466_v54 = vld [vmem:[#allocation2 + $0x178] sm:$0xff]  ;;  %v7964_v22 = vadd.f32 %v2396_v16, %v1984_v35  ;;  %v2398_v50 = vpop.f32.mrb[105].mxu1  ;;  %v3479_v16 = vld [vmem:[%s9286_s3 + $0x90] sm:$0xff] }
 0x1f9   : > { %2043 = vst.msk [vmem:[#allocation2 + $0x198] sm:$0xff] %vm914_vm1, %v1987_v60  ;;  %v2522_v30 = vadd.f32 %v2466_v54, %v2392_v0  ;;  %v1869_v33 = vpop.f32.mrb[108].mxu0  ;;  %v3477_v60 = vld [vmem:[%s9286_s3 + $0x80] sm:$0xff]  ;;  %v8001_v54 = vrot.slane %v3182_v43, %v3186_v49 }
 0x1fa   : > { %v1988_v32 = vadd.f32 %v1869_v33, %v7780_v9  ;;  %v1871_v61 = vpop.f32.mrb[109].mxu0 }
 0x1fb   : > { %2578 = vst.msk [vmem:[#allocation2 + $0x178] sm:$0xff] %vm914_vm1, %v2522_v30  ;;  %v1989_v36 = vadd.f32 %v1933_v2, %v1871_v61  ;;  %v2402_v37 = vpop.f32.mrb[106].mxu1 }
 0x1fc   : > { %v2468_v7 = vld [vmem:[#allocation2 + $0x188] sm:$0xff]  ;;  %v7974_v19 = vadd.f32 %v2402_v37, %v1986_v42  ;;  %v2404_v14 = vpop.f32.mrb[107].mxu1  ;;  %v3480_v42 = vld [vmem:[%s9286_s3 + $0x98] sm:$0xff] }
 0x1fd   : > { %2045 = vst.msk [vmem:[#allocation2 + $0x1a8] sm:$0xff] %vm914_vm1, %v1989_v36  ;;  %v2524_v45 = vadd.f32 %v2468_v7, %v2398_v50  ;;  %v1875_v10 = vpop.f32.mrb[110].mxu0  ;;  %v6320_v50 = vpack.c.bf16 %v3479_v16, %v3477_v60  ;;  %v2961_v36 = vld [vmem:[#allocation2 + $0x18] sm:$0xff] }
 0x1fe   : > { %v1990_v9 = vadd.f32 %v1875_v10, %v7788_v26  ;;  %v1877_v35 = vpop.f32.mrb[111].mxu0  ;;  %v3478_v26 = vld [vmem:[%s9286_s3 + $0x88] sm:$0xff] }
 0x1ff   : > { %2580 = vst.msk [vmem:[#allocation2 + $0x188] sm:$0xff] %vm914_vm1, %v2524_v45  ;;  %v1991_v31 = vadd.f32 %v1935_v48, %v1877_v35  ;;  %v2408_v58 = vpop.f32.mrb[108].mxu1  ;;  %v6318_v6 = vpack.c.bf16 %v3480_v42, %v3478_v26  ;;  %v3482_v42 = vld [vmem:[%s9286_s3 + $0xa8] sm:$0xf] }
 0x200   : > { %v2470_v0 = vld [vmem:[#allocation2 + $0x198] sm:$0xff]  ;;  %v7983_v25 = vadd.f32 %v2408_v58, %v1988_v32  ;;  %v2410_v1 = vpop.f32.mrb[109].mxu1 }
 0x201   : > { %2047 = vst.msk [vmem:[#allocation2 + $0x1b8] sm:$0xff] %vm914_vm1, %v1991_v31  ;;  %v2526_v4 = vadd.f32 %v2470_v0, %v2404_v14  ;;  %v2791_v5 = vpop.f32.mrb[112].mxu0  ;;  %6319 = vmatprep.subr.bf16.mxu1 %v6318_v6  ;;  %v3190_v14 = vsub.s32 1, %v7971_v28 }
 0x202   : > { %v3014_v17 = vadd.f32 %v2791_v5, %v7797_v40  ;;  %v2793_v20 = vpop.f32.mrb[113].mxu0  ;;  %6321 = vmatpush1.bf16.msra.mxu1 %v6320_v50 }
 0x203   : > { %2582 = vst.msk [vmem:[#allocation2 + $0x198] sm:$0xff] %vm914_vm1, %v2526_v4  ;;  %v3015_v23 = vadd.f32 %v2959_v21, %v2793_v20  ;;  %v2414_v24 = vpop.f32.mrb[110].mxu1  ;;  %v8017_v26 = vrot.slane %v3182_v43, %v3190_v14  ;;  %v5804_v4 = vld [vmem:[%s9286_s3 + $0x218] sm:$0xff]  ;;  %5723 = vmatprep.subr.msk.mxu1 %vm3514_vm2, %v3482_v42  ;;  %v5806_v43 = vld [vmem:[%s9286_s3 + $0x228] sm:$0xff]  ;;  %v5805_v20 = vld [vmem:[%s9286_s3 + $0x220] sm:$0xff] }
 0x204   : > { %v2472_v30 = vld [vmem:[#allocation2 + $0x1a8] sm:$0xff]  ;;  %v8004_v33 = vadd.f32 %v2414_v24, %v1990_v9  ;;  %v2416_v34 = vpop.f32.mrb[111].mxu1  ;;  %v3194_v37 = vadd.f32 %v8001_v54, %v3014_v17  ;;  %v6362_v16 = vpack.c.bf16 %v5806_v43, %v5804_v4  ;;  %v5803_v17 = vld [vmem:[%s9286_s3 + $0x210] sm:$0xff]  ;;  %v5808_v21 = vld [vmem:[%s9286_s3 + $0x238] sm:$0xff] }
 0x205   : > { %3071 = vst.msk [vmem:[#allocation2 + $0x8] sm:$0xff] %vm914_vm1, %v3015_v23  ;;  %v2528_v40 = vadd.f32 %v2472_v30, %v2410_v1  ;;  %v2797_v32 = vpop.f32.mrb[114].mxu0  ;;  %v2965_v24 = vld [vmem:[#allocation2 + $0x38] sm:$0xff]  ;;  %v5814_v4 = vld [vmem:[%s9286_s3 + $0x268] sm:$0xff] }
 0x206   : > { %v3016_v61 = vadd.f32 %v2797_v32, %v7804_v51  ;;  %v2799_v2 = vpop.f32.mrb[115].mxu0  ;;  %v2963_v51 = vld [vmem:[#allocation2 + $0x28] sm:$0xff]  ;;  %v3250_v58 = vmax.f32 %v3194_v37, 0.0  ;;  %v5807_v32 = vld [vmem:[%s9286_s3 + $0x230] sm:$0xff]  ;;  %6363 = vmatprep.subr.bf16.mxu0 %v6362_v16 }
 0x207   : > { %2584 = vst.msk [vmem:[#allocation2 + $0x1a8] sm:$0xff] %vm914_vm1, %v2528_v40  ;;  %v3017_v7 = vadd.f32 %v2961_v36, %v2799_v2  ;;  %v5810_v40 = vld [vmem:[%s9286_s3 + $0x248] sm:$0xff]  ;;  %v5809_v36 = vld [vmem:[%s9286_s3 + $0x240] sm:$0xff] }
 0x208   : > { %v2474_v45 = vld [vmem:[#allocation2 + $0x1b8] sm:$0xff]  ;;  %v3196_v10 = vadd.f32 %v8001_v54, %v3016_v61  ;;  %v6366_v2 = vpack.c.bf16 %v5810_v40, %v5808_v21 }
 0x209   : > { %3073 = vst.msk [vmem:[#allocation2 + $0x18] sm:$0xff] %vm914_vm1, %v3017_v7  ;;  %v2530_v9 = vadd.f32 %v2474_v45, %v2416_v34  ;;  %v2803_v35 = vpop.f32.mrb[116].mxu0  ;;  %v6364_v34 = vpack.c.bf16 %v5805_v20, %v5803_v17  ;;  %v6368_v45 = vpack.c.bf16 %v5809_v36, %v5807_v32  ;;  %v5811_v17 = vld [vmem:[%s9286_s3 + $0x250] sm:$0xff]  ;;  %v5813_v20 = vld [vmem:[%s9286_s3 + $0x260] sm:$0xff] }
 0x20a   : > { %v3018_v48 = vadd.f32 %v2803_v35, %v7809_v11  ;;  %v2805_v31 = vpop.f32.mrb[117].mxu0  ;;  %v3252_v0 = vmax.f32 %v3196_v10, 0.0  ;;  %v3481_v11 = vld [vmem:[%s9286_s3 + $0xa0] sm:$0xf] }
 0x20b   : > { %2586 = vst.msk [vmem:[#allocation2 + $0x1b8] sm:$0xff] %vm914_vm1, %v2530_v9  ;;  %v3019_v1 = vadd.f32 %v2963_v51, %v2805_v31  ;;  %5724 = vmatpush1.msk.msra.mxu1 %vm3514_vm2, %v3481_v11  ;;  %6365 = vmatpush1.bf16.msra.mxu0 %v6364_v34  ;;  %v2967_v31 = vld [vmem:[#allocation2 + $0x48] sm:$0xff]  ;;  %v5812_v11 = vld [vmem:[%s9286_s3 + $0x258] sm:$0xff] }
 0x20c   : > { %v8028_v5 = vmax.f32 %v3250_v58, %v3252_v0  ;;  %v3127_v6 = vld [vmem:[#allocation2 + $0x8] sm:$0xff]  ;;  %v3198_v30 = vadd.f32 %v8001_v54, %v3018_v48  ;;  %6367 = vmatprep.subr.bf16.mxu0 %v6366_v2 }
 0x20d   : > { %3075 = vst.msk [vmem:[#allocation2 + $0x28] sm:$0xff] %vm914_vm1, %v3019_v1  ;;  %v2809_v60 = vpop.f32.mrb[118].mxu0 }
 0x20e   : > { %v3020_v50 = vadd.f32 %v2809_v60, %v7814_v46  ;;  %v2811_v23 = vpop.f32.mrb[119].mxu0  ;;  %3362 = vrot.lane.b32.xlu0 %v8028_v5, %s6622_s13  ;;  %v3195_v46 = vadd.f32 %v8017_v26, %v3127_v6  ;;  %v3254_v51 = vmax.f32 %v3198_v30, 0.0  ;;  %v6372_v30 = vpack.c.bf16 %v5813_v20, %v5811_v17  ;;  %v2973_v20 = vld [vmem:[#allocation2 + $0x78] sm:$0xff] }
 0x20f   : > { %v3021_v61 = vadd.f32 %v2965_v24, %v2811_v23  ;;  %6369 = vmatpush1.bf16.msra.mxu0 %v6368_v45  ;;  %v2969_v23 = vld [vmem:[#allocation2 + $0x58] sm:$0xff] }
 0x210   : > { %v3129_v37 = vld [vmem:[#allocation2 + $0x18] sm:$0xff]  ;;  %v3200_v7 = vadd.f32 %v8001_v54, %v3020_v50  ;;  %v3251_v1 = vmax.f32 %v3195_v46, 0.0 }
 0x211   : > { %3077 = vst.msk [vmem:[#allocation2 + $0x38] sm:$0xff] %vm914_vm1, %v3021_v61  ;;  %v2815_v10 = vpop.f32.mrb[120].mxu0  ;;  %v3197_v9 = vadd.f32 %v8017_v26, %v3129_v37  ;;  %v2971_v37 = vld [vmem:[#allocation2 + $0x68] sm:$0xff] }
 0x212   : > { %v3022_v35 = vadd.f32 %v2815_v10, %v7819_v38  ;;  %v2817_v48 = vpop.f32.mrb[121].mxu0  ;;  %v3256_v58 = vmax.f32 %v3200_v7, 0.0  ;;  %v6370_v38 = vpack.c.bf16 %v5814_v4, %v5812_v11 }
 0x213   : > { %v3023_v0 = vadd.f32 %v2967_v31, %v2817_v48  ;;  %v3253_v42 = vmax.f32 %v3197_v9, 0.0  ;;  %v5816_v48 = vld [vmem:[%s9286_s3 + $0x278] sm:$0xff]  ;;  %v5818_v31 = vld [vmem:[%s9286_s3 + $0x288] sm:$0xff] }
 0x214   : > { %v8069_v6 = vmax.f32 %v3254_v51, %v3256_v58  ;;  %v3131_v43 = vld [vmem:[#allocation2 + $0x28] sm:$0xff]  ;;  %v3202_v24 = vadd.f32 %v8001_v54, %v3022_v35  ;;  %6371 = vmatprep.subr.bf16.mxu0 %v6370_v38  ;;  %v5815_v51 = vld [vmem:[%s9286_s3 + $0x270] sm:$0xff] }
 0x215   : > { %3079 = vst.msk [vmem:[#allocation2 + $0x48] sm:$0xff] %vm914_vm1, %v3023_v0  ;;  %v2821_v60 = vpop.f32.mrb[122].mxu0  ;;  %v3307_v16 = vmax.f32 %v3251_v1, %v3253_v42  ;;  %v3199_v40 = vadd.f32 %v8017_v26, %v3131_v43  ;;  %6373 = vmatpush1.bf16.msra.mxu0 %v6372_v30  ;;  %v6374_v0 = vpack.c.bf16 %v5818_v31, %v5816_v48  ;;  %v5817_v1 = vld [vmem:[%s9286_s3 + $0x280] sm:$0xff]  ;;  %v5820_v43 = vld [vmem:[%s9286_s3 + $0x298] sm:$0xff]  ;;  %v5822_v38 = vld [vmem:[%s9286_s3 + $0x2a8] sm:$0xff] }
 0x216   : > { %v3024_v21 = vadd.f32 %v2821_v60, %v7824_v52  ;;  %v2823_v50 = vpop.f32.mrb[123].mxu0  ;;  %3366 = vrot.lane.b32.xlu1 %v8069_v6, %s6622_s13  ;;  %v3258_v7 = vmax.f32 %v3202_v24, 0.0  ;;  %v6376_v4 = vpack.c.bf16 %v5817_v1, %v5815_v51  ;;  %v5819_v60 = vld [vmem:[%s9286_s3 + $0x290] sm:$0xff]  ;;  %v2977_v1 = vld [vmem:[#allocation2 + $0x98] sm:$0xff] }
 0x217   : > { %v3025_v34 = vadd.f32 %v2969_v23, %v2823_v50  ;;  %3364 = vrot.lane.b32.xlu0 %v3307_v16, %s6622_s13  ;;  %v3255_v9 = vmax.f32 %v3199_v40, 0.0  ;;  %6375 = vmatprep.subr.bf16.mxu0 %v6374_v0  ;;  %v6378_v50 = vpack.c.bf16 %v5822_v38, %v5820_v43  ;;  %v5821_v23 = vld [vmem:[%s9286_s3 + $0x2a0] sm:$0xff] }
 0x218   : > { %v3133_v32 = vld [vmem:[#allocation2 + $0x38] sm:$0xff]  ;;  %v3204_v61 = vadd.f32 %v8001_v54, %v3024_v21 }
 0x219   : > { %3081 = vst.msk [vmem:[#allocation2 + $0x58] sm:$0xff] %vm914_vm1, %v3025_v34  ;;  %v2827_v52 = vpop.f32.mrb[124].mxu0  ;;  %v3201_v46 = vadd.f32 %v8017_v26, %v3133_v32  ;;  %6377 = vmatpush1.bf16.msra.mxu0 %v6376_v4 }
 0x21a   : > { %v3026_v2 = vadd.f32 %v2827_v52, %v7829_v12  ;;  %v2829_v36 = vpop.f32.mrb[125].mxu0  ;;  %v3260_v45 = vmax.f32 %v3204_v61, 0.0  ;;  %6379 = vmatprep.subr.bf16.mxu0 %v6378_v50 }
 0x21b   : > { %v3027_v10 = vadd.f32 %v2971_v37, %v2829_v36  ;;  %v3257_v35 = vmax.f32 %v3201_v46, 0.0 }
 0x21c   : > { %v8097_v12 = vmax.f32 %v3258_v7, %v3260_v45  ;;  %v3135_v58 = vld [vmem:[#allocation2 + $0x48] sm:$0xff]  ;;  %v3206_v21 = vadd.f32 %v8001_v54, %v3026_v2 }
 0x21d   : > { %3083 = vst.msk [vmem:[#allocation2 + $0x68] sm:$0xff] %vm914_vm1, %v3027_v10  ;;  %v2833_v42 = vpop.f32.mrb[126].mxu0  ;;  %v3309_v11 = vmax.f32 %v3255_v9, %v3257_v35  ;;  %v3203_v30 = vadd.f32 %v8017_v26, %v3135_v58  ;;  %v2975_v2 = vld [vmem:[#allocation2 + $0x88] sm:$0xff]  ;;  %v5824_v9 = vld [vmem:[%s9286_s3 + $0x2b8] sm:$0xf] }
 0x21e   : > { %v3028_v16 = vadd.f32 %v2833_v42, %v7834_v63  ;;  %v2835_v17 = vpop.f32.mrb[127].mxu0  ;;  %3370 = vrot.lane.b32.xlu0 %v8097_v12, %s6622_s13  ;;  %v6380_v63 = vpack.c.bf16 %v5821_v23, %v5819_v60  ;;  %v3262_v36 = vmax.f32 %v3206_v21, 0.0 }
 0x21f   : > { %v3029_v24 = vadd.f32 %v2973_v20, %v2835_v17  ;;  %3368 = vrot.lane.b32.xlu1 %v3309_v11, %s6622_s13  ;;  %v3259_v45 = vmax.f32 %v3203_v30, 0.0  ;;  %v2979_v20 = vld [vmem:[#allocation2 + $0xa8] sm:$0xff] }
 0x220   : > { %v3137_v34 = vld [vmem:[#allocation2 + $0x58] sm:$0xff]  ;;  %v3208_v40 = vadd.f32 %v8001_v54, %v3028_v16  ;;  %6381 = vmatpush1.bf16.msra.mxu0 %v6380_v63 }
 0x221   : > { %3085 = vst.msk [vmem:[#allocation2 + $0x78] sm:$0xff] %vm914_vm1, %v3029_v24  ;;  %v2839_v32 = vpop.f32.mrb[128].mxu0  ;;  %v3205_v61 = vadd.f32 %v8017_v26, %v3137_v34  ;;  %5825 = vmatprep.subr.msk.mxu0 %vm3514_vm2, %v5824_v9 }
 0x222   : > { %v3030_v52 = vadd.f32 %v2839_v32, %v7839_v41  ;;  %v2841_v46 = vpop.f32.mrb[129].mxu0  ;;  %v3264_v37 = vmax.f32 %v3208_v40, 0.0  ;;  %v5823_v41 = vld [vmem:[%s9286_s3 + $0x2b0] sm:$0xf] }
 0x223   : > { %v3031_v7 = vadd.f32 %v2975_v2, %v2841_v46  ;;  %v3261_v10 = vmax.f32 %v3205_v61, 0.0  ;;  %v5736_v61 = vld [vmem:[%s9286_s3 + $0xb8] sm:$0xff] }
 0x224   : > { %v8128_v35 = vmax.f32 %v3262_v36, %v3264_v37  ;;  %v3139_v48 = vld [vmem:[#allocation2 + $0x68] sm:$0xff]  ;;  %v3210_v42 = vadd.f32 %v8001_v54, %v3030_v52  ;;  %5826 = vmatpush1.msk.msra.mxu0 %vm3514_vm2, %v5823_v41  ;;  %v2981_v2 = vld [vmem:[#allocation2 + $0xb8] sm:$0xff] }
 0x225   : > { %3087 = vst.msk [vmem:[#allocation2 + $0x88] sm:$0xff] %vm914_vm1, %v3031_v7  ;;  %v2845_v31 = vpop.f32.mrb[130].mxu0  ;;  %v3311_v51 = vmax.f32 %v3259_v45, %v3261_v10  ;;  %v3207_v4 = vadd.f32 %v8017_v26, %v3139_v48 }
 0x226   : > { %v3032_v58 = vadd.f32 %v2845_v31, %v7844_v57  ;;  %v2847_v0 = vpop.f32.mrb[131].mxu0  ;;  %3374 = vrot.lane.b32.xlu0 %v8128_v35, %s6622_s13  ;;  %v3266_v21 = vmax.f32 %v3210_v42, 0.0 }
 0x227   : > { %v3033_v11 = vadd.f32 %v2977_v1, %v2847_v0  ;;  %3372 = vrot.lane.b32.xlu1 %v3311_v51, %s6622_s13  ;;  %v3263_v24 = vmax.f32 %v3207_v4, 0.0  ;;  %v2983_v51 = vld [vmem:[#allocation2 + $0xc8] sm:$0xff] }
 0x228   : > { %v3141_v43 = vld [vmem:[#allocation2 + $0x78] sm:$0xff]  ;;  %v3212_v38 = vadd.f32 %v8001_v54, %v3032_v58 }
 0x229   : > { %3089 = vst.msk [vmem:[#allocation2 + $0x98] sm:$0xff] %vm914_vm1, %v3033_v11  ;;  %v2851_v57 = vpop.f32.mrb[132].mxu0  ;;  %v3209_v60 = vadd.f32 %v8017_v26, %v3141_v43 }
 0x22a   : > { %v3034_v16 = vadd.f32 %v2851_v57, %v7849_v13  ;;  %v2853_v17 = vpop.f32.mrb[133].mxu0  ;;  %v3268_v50 = vmax.f32 %v3212_v38, 0.0  ;;  %v5738_v13 = vld [vmem:[%s9286_s3 + $0xc8] sm:$0xff] }
 0x22b   : > { %v3035_v23 = vadd.f32 %v2979_v20, %v2853_v17  ;;  %v3265_v30 = vmax.f32 %v3209_v60, 0.0  ;;  %v6322_v37 = vpack.c.bf16 %v5738_v13, %v5736_v61  ;;  %v2985_v17 = vld [vmem:[#allocation2 + $0xd8] sm:$0xff] }
 0x22c   : > { %v8146_v63 = vmax.f32 %v3266_v21, %v3268_v50  ;;  %v3143_v34 = vld [vmem:[#allocation2 + $0x88] sm:$0xff]  ;;  %v3214_v36 = vadd.f32 %v8001_v54, %v3034_v16 }
 0x22d   : > { %3091 = vst.msk [vmem:[#allocation2 + $0xa8] sm:$0xff] %vm914_vm1, %v3035_v23  ;;  %v2857_v40 = vpop.f32.mrb[134].mxu0  ;;  %v3313_v32 = vmax.f32 %v3263_v24, %v3265_v30  ;;  %v3211_v45 = vadd.f32 %v8017_v26, %v3143_v34  ;;  %6323 = vmatprep.subr.bf16.mxu1 %v6322_v37 }
 0x22e   : > { %v3036_v52 = vadd.f32 %v2857_v40, %v7854_v29  ;;  %v2859_v46 = vpop.f32.mrb[135].mxu0  ;;  %3378 = vrot.lane.b32.xlu0 %v8146_v63, %s6622_s13  ;;  %v3270_v58 = vmax.f32 %v3214_v36, 0.0  ;;  %v2987_v40 = vld [vmem:[#allocation2 + $0xe8] sm:$0xff] }
 0x22f   : > { %v3037_v7 = vadd.f32 %v2981_v2, %v2859_v46  ;;  %3376 = vrot.lane.b32.xlu1 %v3313_v32, %s6622_s13  ;;  %v3267_v42 = vmax.f32 %v3211_v45, 0.0 }
 0x230   : > { %v3145_v10 = vld [vmem:[#allocation2 + $0x98] sm:$0xff]  ;;  %v3216_v9 = vadd.f32 %v8001_v54, %v3036_v52 }
 0x231   : > { %3093 = vst.msk [vmem:[#allocation2 + $0xb8] sm:$0xff] %vm914_vm1, %v3037_v7  ;;  %v2863_v29 = vpop.f32.mrb[136].mxu0  ;;  %v3213_v48 = vadd.f32 %v8017_v26, %v3145_v10 }
 0x232   : > { %v3038_v41 = vadd.f32 %v2863_v29, %v7871_v8  ;;  %v2865_v31 = vpop.f32.mrb[137].mxu0  ;;  %v3272_v0 = vmax.f32 %v3216_v9, 0.0  ;;  %v2989_v9 = vld [vmem:[#allocation2 + $0xf8] sm:$0xff] }
 0x233   : > { %v3039_v1 = vadd.f32 %v2983_v51, %v2865_v31  ;;  %v3269_v11 = vmax.f32 %v3213_v48, 0.0 }
 0x234   : > { %v8165_v4 = vmax.f32 %v3270_v58, %v3272_v0  ;;  %v3147_v43 = vld [vmem:[#allocation2 + $0xa8] sm:$0xff]  ;;  %v3218_v8 = vadd.f32 %v8001_v54, %v3038_v41 }
 0x235   : > { %3095 = vst.msk [vmem:[#allocation2 + $0xc8] sm:$0xff] %vm914_vm1, %v3039_v1  ;;  %v2869_v38 = vpop.f32.mrb[138].mxu0  ;;  %v3315_v57 = vmax.f32 %v3267_v42, %v3269_v11  ;;  %v3215_v21 = vadd.f32 %v8017_v26, %v3147_v43  ;;  %v2991_v1 = vld [vmem:[#allocation2 + $0x108] sm:$0xff] }
 0x236   : > { %v3040_v60 = vadd.f32 %v2869_v38, %v7876_v18  ;;  %v2871_v16 = vpop.f32.mrb[139].mxu0  ;;  %3382 = vrot.lane.b32.xlu0 %v8165_v4, %s6622_s13  ;;  %v3274_v32 = vmax.f32 %v3218_v8, 0.0 }
 0x237   : > { %v3041_v20 = vadd.f32 %v2985_v17, %v2871_v16  ;;  %3380 = vrot.lane.b32.xlu1 %v3315_v57, %s6622_s13  ;;  %v3271_v52 = vmax.f32 %v3215_v21, 0.0 }
 0x238   : > { %v3149_v50 = vld [vmem:[#allocation2 + $0xb8] sm:$0xff]  ;;  %v3220_v23 = vadd.f32 %v8001_v54, %v3040_v60 }
 0x239   : > { %3097 = vst.msk [vmem:[#allocation2 + $0xd8] sm:$0xff] %vm914_vm1, %v3041_v20  ;;  %v2875_v24 = vpop.f32.mrb[140].mxu0  ;;  %v3217_v18 = vadd.f32 %v8017_v26, %v3149_v50  ;;  %v2993_v50 = vld [vmem:[#allocation2 + $0x118] sm:$0xff] }
 0x23a   : > { %v3042_v30 = vadd.f32 %v2875_v24, %v7881_v27  ;;  %v2877_v34 = vpop.f32.mrb[141].mxu0  ;;  %v3276_v61 = vmax.f32 %v3220_v23, 0.0 }
 0x23b   : > { %v3043_v13 = vadd.f32 %v2987_v40, %v2877_v34  ;;  %v3273_v46 = vmax.f32 %v3217_v18, 0.0 }
 0x23c   : > { %v8178_v2 = vmax.f32 %v3274_v32, %v3276_v61  ;;  %v3151_v36 = vld [vmem:[#allocation2 + $0xc8] sm:$0xff]  ;;  %v3222_v27 = vadd.f32 %v8001_v54, %v3042_v30 }
 0x23d   : > { %3099 = vst.msk [vmem:[#allocation2 + $0xe8] sm:$0xff] %vm914_vm1, %v3043_v13  ;;  %v2881_v37 = vpop.f32.mrb[142].mxu0  ;;  %v3317_v7 = vmax.f32 %v3271_v52, %v3273_v46  ;;  %v3219_v48 = vadd.f32 %v8017_v26, %v3151_v36  ;;  %v2995_v61 = vld [vmem:[#allocation2 + $0x128] sm:$0xff] }
 0x23e   : > { %v3044_v45 = vadd.f32 %v2881_v37, %v7886_v59  ;;  %v2883_v10 = vpop.f32.mrb[143].mxu0  ;;  %3386 = vrot.lane.b32.xlu0 %v8178_v2, %s6622_s13  ;;  %v3278_v42 = vmax.f32 %v3222_v27, 0.0 }
 0x23f   : > { %v3045_v29 = vadd.f32 %v2989_v9, %v2883_v10  ;;  %3384 = vrot.lane.b32.xlu1 %v3317_v7, %s6622_s13  ;;  %v3275_v38 = vmax.f32 %v3219_v48, 0.0  ;;  %v2997_v48 = vld [vmem:[#allocation2 + $0x138] sm:$0xff] }
 0x240   : > { %v3153_v41 = vld [vmem:[#allocation2 + $0xd8] sm:$0xff]  ;;  %v3224_v31 = vadd.f32 %v8001_v54, %v3044_v45 }
 0x241   : > { %3101 = vst.msk [vmem:[#allocation2 + $0xf8] sm:$0xff] %vm914_vm1, %v3045_v29  ;;  %v2887_v51 = vpop.f32.mrb[144].mxu0  ;;  %v3221_v59 = vadd.f32 %v8017_v26, %v3153_v41 }
 0x242   : > { %v3046_v58 = vadd.f32 %v2887_v51, %v7897_v62  ;;  %v2889_v0 = vpop.f32.mrb[145].mxu0  ;;  %v3280_v11 = vmax.f32 %v3224_v31, 0.0 }
 0x243   : > { %v3047_v43 = vadd.f32 %v2991_v1, %v2889_v0  ;;  %v3277_v57 = vmax.f32 %v3221_v59, 0.0 }
 0x244   : > { %v8191_v60 = vmax.f32 %v3278_v42, %v3280_v11  ;;  %v3155_v16 = vld [vmem:[#allocation2 + $0xe8] sm:$0xff]  ;;  %v3226_v62 = vadd.f32 %v8001_v54, %v3046_v58 }
 0x245   : > { %3103 = vst.msk [vmem:[#allocation2 + $0x108] sm:$0xff] %vm914_vm1, %v3047_v43  ;;  %v2893_v17 = vpop.f32.mrb[146].mxu0  ;;  %v3319_v8 = vmax.f32 %v3275_v38, %v3277_v57  ;;  %v3223_v24 = vadd.f32 %v8017_v26, %v3155_v16  ;;  %v2999_v42 = vld [vmem:[#allocation2 + $0x148] sm:$0xff] }
 0x246   : > { %v3048_v20 = vadd.f32 %v2893_v17, %v7908_v53  ;;  %v2895_v21 = vpop.f32.mrb[147].mxu0  ;;  %3390 = vrot.lane.b32.xlu0 %v8191_v60, %s6622_s13  ;;  %v3282_v13 = vmax.f32 %v3226_v62, 0.0 }
 0x247   : > { %v3049_v23 = vadd.f32 %v2993_v50, %v2895_v21  ;;  %3388 = vrot.lane.b32.xlu1 %v3319_v8, %s6622_s13  ;;  %v3279_v36 = vmax.f32 %v3223_v24, 0.0 }
 0x248   : > { %v3157_v18 = vld [vmem:[#allocation2 + $0xf8] sm:$0xff]  ;;  %v3228_v30 = vadd.f32 %v8001_v54, %v3048_v20 }
 0x249   : > { %3105 = vst.msk [vmem:[#allocation2 + $0x118] sm:$0xff] %vm914_vm1, %v3049_v23  ;;  %v2899_v34 = vpop.f32.mrb[148].mxu0  ;;  %v3225_v53 = vadd.f32 %v8017_v26, %v3157_v18  ;;  %v3001_v23 = vld [vmem:[#allocation2 + $0x158] sm:$0xff] }
 0x24a   : > { %v3050_v40 = vadd.f32 %v2899_v34, %v7913_v3  ;;  %v2901_v32 = vpop.f32.mrb[149].mxu0  ;;  %v3284_v52 = vmax.f32 %v3228_v30, 0.0 }
 0x24b   : > { %v3051_v46 = vadd.f32 %v2995_v61, %v2901_v32  ;;  %v3281_v37 = vmax.f32 %v3225_v53, 0.0  ;;  %v3003_v61 = vld [vmem:[#allocation2 + $0x168] sm:$0xff] }
 0x24c   : > { %v8204_v7 = vmax.f32 %v3282_v13, %v3284_v52  ;;  %v3159_v45 = vld [vmem:[#allocation2 + $0x108] sm:$0xff]  ;;  %v3230_v3 = vadd.f32 %v8001_v54, %v3050_v40 }
 0x24d   : > { %3107 = vst.msk [vmem:[#allocation2 + $0x128] sm:$0xff] %vm914_vm1, %v3051_v46  ;;  %v2905_v10 = vpop.f32.mrb[150].mxu0  ;;  %v3321_v9 = vmax.f32 %v3279_v36, %v3281_v37  ;;  %v3227_v31 = vadd.f32 %v8017_v26, %v3159_v45 }
 0x24e   : > { %v3052_v27 = vadd.f32 %v2905_v10, %v7918_v47  ;;  %v2907_v29 = vpop.f32.mrb[151].mxu0  ;;  %3394 = vrot.lane.b32.xlu0 %v8204_v7, %s6622_s13  ;;  %v3286_v11 = vmax.f32 %v3230_v3, 0.0  ;;  %v3005_v3 = vld [vmem:[#allocation2 + $0x178] sm:$0xff] }
 0x24f   : > { %v3053_v41 = vadd.f32 %v2997_v48, %v2907_v29  ;;  %3392 = vrot.lane.b32.xlu1 %v3321_v9, %s6622_s13  ;;  %v3283_v57 = vmax.f32 %v3227_v31, 0.0 }
 0x250   : > { %v3161_v51 = vld [vmem:[#allocation2 + $0x118] sm:$0xff]  ;;  %v3232_v59 = vadd.f32 %v8001_v54, %v3052_v27 }
 0x251   : > { %3109 = vst.msk [vmem:[#allocation2 + $0x138] sm:$0xff] %vm914_vm1, %v3053_v41  ;;  %v2911_v58 = vpop.f32.mrb[152].mxu0  ;;  %v3229_v47 = vadd.f32 %v8017_v26, %v3161_v51 }
 0x252   : > { %v3054_v0 = vadd.f32 %v2911_v58, %v7923_v15  ;;  %v2913_v1 = vpop.f32.mrb[153].mxu0  ;;  %v3288_v43 = vmax.f32 %v3232_v59, 0.0 }
 0x253   : > { %v3055_v38 = vadd.f32 %v2999_v42, %v2913_v1  ;;  %v3285_v16 = vmax.f32 %v3229_v47, 0.0  ;;  %v3007_v1 = vld [vmem:[#allocation2 + $0x188] sm:$0xff] }
 0x254   : > { %v8217_v17 = vmax.f32 %v3286_v11, %v3288_v43  ;;  %v3163_v8 = vld [vmem:[#allocation2 + $0x128] sm:$0xff]  ;;  %v3234_v15 = vadd.f32 %v8001_v54, %v3054_v0 }
 0x255   : > { %3111 = vst.msk [vmem:[#allocation2 + $0x148] sm:$0xff] %vm914_vm1, %v3055_v38  ;;  %v2917_v20 = vpop.f32.mrb[154].mxu0  ;;  %v3323_v21 = vmax.f32 %v3283_v57, %v3285_v16  ;;  %v3231_v18 = vadd.f32 %v8017_v26, %v3163_v8 }
 0x256   : > { %v3056_v50 = vadd.f32 %v2917_v20, %v7940_v55  ;;  %v2919_v62 = vpop.f32.mrb[155].mxu0  ;;  %3398 = vrot.lane.b32.xlu0 %v8217_v17, %s6622_s13  ;;  %v3290_v13 = vmax.f32 %v3234_v15, 0.0 }
 0x257   : > { %v3057_v24 = vadd.f32 %v3001_v23, %v2919_v62  ;;  %3396 = vrot.lane.b32.xlu1 %v3323_v21, %s6622_s13  ;;  %v3287_v36 = vmax.f32 %v3231_v18, 0.0  ;;  %v3009_v23 = vld [vmem:[#allocation2 + $0x198] sm:$0xff] }
 0x258   : > { %v3165_v30 = vld [vmem:[#allocation2 + $0x138] sm:$0xff]  ;;  %v3236_v34 = vadd.f32 %v8001_v54, %v3056_v50 }
 0x259   : > { %3113 = vst.msk [vmem:[#allocation2 + $0x158] sm:$0xff] %vm914_vm1, %v3057_v24  ;;  %v2923_v53 = vpop.f32.mrb[156].mxu0  ;;  %v3233_v55 = vadd.f32 %v8017_v26, %v3165_v30 }
 0x25a   : > { %v3058_v40 = vadd.f32 %v2923_v53, %v7945_v44  ;;  %v2925_v32 = vpop.f32.mrb[157].mxu0  ;;  %v3292_v52 = vmax.f32 %v3236_v34, 0.0 }
 0x25b   : > { %v3059_v46 = vadd.f32 %v3003_v61, %v2925_v32  ;;  %v3289_v37 = vmax.f32 %v3233_v55, 0.0 }
 0x25c   : > { %v8230_v45 = vmax.f32 %v3290_v13, %v3292_v52  ;;  %v3167_v10 = vld [vmem:[#allocation2 + $0x148] sm:$0xff]  ;;  %v3238_v44 = vadd.f32 %v8001_v54, %v3058_v40 }
 0x25d   : > { %3115 = vst.msk [vmem:[#allocation2 + $0x168] sm:$0xff] %vm914_vm1, %v3059_v46  ;;  %v2929_v9 = vpop.f32.mrb[158].mxu0  ;;  %v3325_v27 = vmax.f32 %v3287_v36, %v3289_v37  ;;  %v3235_v31 = vadd.f32 %v8017_v26, %v3167_v10  ;;  %v3011_v40 = vld [vmem:[#allocation2 + $0x1a8] sm:$0xff] }
 0x25e   : > { %v3060_v29 = vadd.f32 %v2929_v9, %v7950_v56  ;;  %v2931_v48 = vpop.f32.mrb[159].mxu0  ;;  %3402 = vrot.lane.b32.xlu0 %v8230_v45, %s6622_s13  ;;  %v3294_v42 = vmax.f32 %v3238_v44, 0.0 }
 0x25f   : > { %v3061_v41 = vadd.f32 %v3005_v3, %v2931_v48  ;;  %3400 = vrot.lane.b32.xlu1 %v3325_v27, %s6622_s13  ;;  %v3291_v38 = vmax.f32 %v3235_v31, 0.0  ;;  %v3013_v48 = vld [vmem:[#allocation2 + $0x1b8] sm:$0xff] }
 0x260   : > { %v3169_v51 = vld [vmem:[#allocation2 + $0x158] sm:$0xff]  ;;  %v3240_v59 = vadd.f32 %v8001_v54, %v3060_v29 }
 0x261   : > { %3117 = vst.msk [vmem:[#allocation2 + $0x178] sm:$0xff] %vm914_vm1, %v3061_v41  ;;  %v2935_v58 = vpop.f32.mrb[160].mxu0  ;;  %v3237_v56 = vadd.f32 %v8017_v26, %v3169_v51 }
 0x262   : > { %v3062_v47 = vadd.f32 %v2935_v58, %v7964_v22  ;;  %v2937_v0 = vpop.f32.mrb[161].mxu0  ;;  %v3296_v11 = vmax.f32 %v3240_v59, 0.0 }
 0x263   : > { %v3063_v43 = vadd.f32 %v3007_v1, %v2937_v0  ;;  %v3293_v57 = vmax.f32 %v3237_v56, 0.0 }
 0x264   : > { %v8243_v16 = vmax.f32 %v3294_v42, %v3296_v11  ;;  %v3171_v8 = vld [vmem:[#allocation2 + $0x168] sm:$0xff]  ;;  %v3242_v22 = vadd.f32 %v8001_v54, %v3062_v47 }
 0x265   : > { %3119 = vst.msk [vmem:[#allocation2 + $0x188] sm:$0xff] %vm914_vm1, %v3063_v43  ;;  %v2941_v20 = vpop.f32.mrb[162].mxu0  ;;  %v3327_v21 = vmax.f32 %v3291_v38, %v3293_v57  ;;  %v3239_v24 = vadd.f32 %v8017_v26, %v3171_v8 }
 0x266   : > { %v3064_v50 = vadd.f32 %v2941_v20, %v7974_v19  ;;  %v2943_v62 = vpop.f32.mrb[163].mxu0  ;;  %3406 = vrot.lane.b32.xlu0 %v8243_v16, %s6622_s13  ;;  %v3298_v32 = vmax.f32 %v3242_v22, 0.0  ;;  %v5735_v20 = vld [vmem:[%s9286_s3 + $0xb0] sm:$0xff] }
 0x267   : > { %v3065_v15 = vadd.f32 %v3009_v23, %v2943_v62  ;;  %3404 = vrot.lane.b32.xlu1 %v3327_v21, %s6622_s13  ;;  %v3295_v52 = vmax.f32 %v3239_v24, 0.0  ;;  %v5737_v21 = vld [vmem:[%s9286_s3 + $0xc0] sm:$0xff] }
 0x268   : > { %v3173_v18 = vld [vmem:[#allocation2 + $0x178] sm:$0xff]  ;;  %v3244_v30 = vadd.f32 %v8001_v54, %v3064_v50  ;;  %v6324_v22 = vpack.c.bf16 %v5737_v21, %v5735_v20 }
 0x269   : > { %3121 = vst.msk [vmem:[#allocation2 + $0x198] sm:$0xff] %vm914_vm1, %v3065_v15  ;;  %v2947_v34 = vpop.f32.mrb[164].mxu0  ;;  %v3241_v19 = vadd.f32 %v8017_v26, %v3173_v18  ;;  %v5740_v50 = vld [vmem:[%s9286_s3 + $0xd8] sm:$0xff]  ;;  %v5739_v18 = vld [vmem:[%s9286_s3 + $0xd0] sm:$0xff] }
 0x26a   : > { %v3066_v53 = vadd.f32 %v2947_v34, %v7983_v25  ;;  %v2949_v55 = vpop.f32.mrb[165].mxu0  ;;  %v3300_v61 = vmax.f32 %v3244_v30, 0.0  ;;  %v5741_v30 = vld [vmem:[%s9286_s3 + $0xe0] sm:$0xff]  ;;  %v5744_v34 = vld [vmem:[%s9286_s3 + $0xf8] sm:$0xff] }
 0x26b   : > { %v3067_v13 = vadd.f32 %v3011_v40, %v2949_v55  ;;  %v3297_v46 = vmax.f32 %v3241_v19, 0.0  ;;  %v5746_v19 = vld [vmem:[%s9286_s3 + $0x108] sm:$0xff]  ;;  %v5743_v40 = vld [vmem:[%s9286_s3 + $0xf0] sm:$0xff] }
 0x26c   : > { %v8256_v36 = vmax.f32 %v3298_v32, %v3300_v61  ;;  %v3175_v37 = vld [vmem:[#allocation2 + $0x188] sm:$0xff]  ;;  %v3246_v25 = vadd.f32 %v8001_v54, %v3066_v53  ;;  %v6328_v53 = vpack.c.bf16 %v5741_v30, %v5739_v18  ;;  %v6330_v55 = vpack.c.bf16 %v5746_v19, %v5744_v34  ;;  %v5745_v32 = vld [vmem:[%s9286_s3 + $0x100] sm:$0xff]  ;;  %v5748_v61 = vld [vmem:[%s9286_s3 + $0x118] sm:$0xff] }
 0x26d   : > { %3123 = vst.msk [vmem:[#allocation2 + $0x1a8] sm:$0xff] %vm914_vm1, %v3067_v13  ;;  %v2953_v10 = vpop.f32.mrb[166].mxu0  ;;  %v3329_v9 = vmax.f32 %v3295_v52, %v3297_v46  ;;  %v3243_v44 = vadd.f32 %v8017_v26, %v3175_v37  ;;  %v5750_v13 = vld [vmem:[%s9286_s3 + $0x128] sm:$0xff]  ;;  %v6332_v37 = vpack.c.bf16 %v5745_v32, %v5743_v40  ;;  %v5771_v32 = vld [vmem:[%s9286_s3 + $0x170] sm:$0xff] }
 0x26e   : > { %v3068_v27 = vadd.f32 %v2953_v10, %v8004_v33  ;;  %v2955_v29 = vpop.f32.mrb[167].mxu0  ;;  %3410 = vrot.lane.b32.xlu0 %v8256_v36, %s6622_s13  ;;  %v3302_v33 = vmax.f32 %v3246_v25, 0.0  ;;  %v5754_v25 = vld [vmem:[%s9286_s3 + $0x148] sm:$0xff] }
 0x26f   : > { %v3069_v3 = vadd.f32 %v3013_v48, %v2955_v29  ;;  %3408 = vrot.lane.b32.xlu1 %v3329_v9, %s6622_s13  ;;  %v3299_v58 = vmax.f32 %v3243_v44, 0.0  ;;  %v6334_v9 = vpack.c.bf16 %v5750_v13, %v5748_v61  ;;  %v5749_v29 = vld [vmem:[%s9286_s3 + $0x120] sm:$0xff]  ;;  %v5752_v48 = vld [vmem:[%s9286_s3 + $0x138] sm:$0xff]  ;;  %v5751_v44 = vld [vmem:[%s9286_s3 + $0x130] sm:$0xff] }
 0x270   : > { %v3177_v41 = vld [vmem:[#allocation2 + $0x198] sm:$0xff]  ;;  %v3248_v31 = vadd.f32 %v8001_v54, %v3068_v27  ;;  %v5747_v27 = vld [vmem:[%s9286_s3 + $0x110] sm:$0xff]  ;;  %v5774_v61 = vld [vmem:[%s9286_s3 + $0x188] sm:$0xff] }
 0x271   : > { %3125 = vst.msk [vmem:[#allocation2 + $0x1b8] sm:$0xff] %vm914_vm1, %v3069_v3  ;;  %v3245_v51 = vadd.f32 %v8017_v26, %v3177_v41  ;;  %v6338_v3 = vpack.c.bf16 %v5754_v25, %v5752_v48  ;;  %v5753_v41 = vld [vmem:[%s9286_s3 + $0x140] sm:$0xff]  ;;  %v5776_v13 = vld [vmem:[%s9286_s3 + $0x198] sm:$0xff] }
 0x272   : > { %v3304_v59 = vmax.f32 %v3248_v31, 0.0 }
 0x273   : > { %v3301_v56 = vmax.f32 %v3245_v51, 0.0 }
 0x274   : > { %v8268_v47 = vmax.f32 %v3302_v33, %v3304_v59  ;;  %v3179_v0 = vld [vmem:[#allocation2 + $0x1a8] sm:$0xff]  ;;  %v6340_v59 = vpack.c.bf16 %v5753_v41, %v5751_v44  ;;  %v5777_v41 = vld [vmem:[%s9286_s3 + $0x1a0] sm:$0xff] }
 0x275   : > { %v3331_v1 = vmax.f32 %v3299_v58, %v3301_v56  ;;  %v3247_v42 = vadd.f32 %v8017_v26, %v3179_v0  ;;  %v5756_v56 = vld [vmem:[%s9286_s3 + $0x158] sm:$0xf]  ;;  %v5770_v0 = vld [vmem:[%s9286_s3 + $0x168] sm:$0xff] }
 0x276   : > { %3414 = vrot.lane.b32.xlu0 %v8268_v47, %s6622_s13 }
 0x277   : > { %3412 = vrot.lane.b32.xlu1 %v3331_v1, %s6622_s13  ;;  %v3303_v43 = vmax.f32 %v3247_v42, 0.0  ;;  %v5772_v1 = vld [vmem:[%s9286_s3 + $0x178] sm:$0xff] }
 0x278   : > { %v3181_v54 = vld [vmem:[#allocation2 + $0x1b8] sm:$0xff]  ;;  %v6342_v42 = vpack.c.bf16 %v5772_v1, %v5770_v0 }
 0x279   : > { %v3249_v11 = vadd.f32 %v8017_v26, %v3181_v54  ;;  %v5742_v26 = vld [vmem:[%s9286_s3 + $0xe8] sm:$0xff] }
 0x27a   : > { %v6326_v24 = vpack.c.bf16 %v5742_v26, %v5740_v50 }
 0x27b   : > { %v3305_v38 = vmax.f32 %v3249_v11, 0.0 }
 0x27d   : > { %v3333_v57 = vmax.f32 %v3303_v43, %v3305_v38 }
 0x27f   : > { %3416 = vrot.lane.b32.xlu1 %v3333_v57, %s6622_s13 }
 0x280   : > { %v3363_v8 = vpop.permute.xlu0 %3362 }
 0x289   : > { %v3365_v62 = vpop.permute.xlu0 %3364 }
 0x28a   : > { %v3419_v23 = vsel %vm3418_vm3, %v3363_v8, %v3365_v62 }
 0x28b   : > { %v3447_v15 = vmax.f32 %v8028_v5, %v3419_v23  ;;  %v3367_v5 = vpop.permute.xlu1 %3366 }
 0x28d   : > { %5725 = vmatmul.mubr.msk.f32.vlgmr.msra.gmra.mrb[112].mxu1 %vm3483_vm4, %v3447_v15 }
 0x28e   : > { %3591 = vmatprep.mubr.f32.mxu1 %v6621_v39  ;;  %6325 = vmatpush1.bf16.msra.mxu1 %v6324_v22 }
 0x28f   : > { %6327 = vmatprep.subr.bf16.mxu1 %v6326_v24 }
 0x290   : > { %v3371_v31 = vpop.permute.xlu0 %3370 }
 0x291   : > { %v3369_v52 = vpop.permute.xlu1 %3368 }
 0x292   : > { %v3420_v46 = vsel %vm3418_vm3, %v3367_v5, %v3369_v52  ;;  %6329 = vmatpush1.bf16.msra.mxu1 %v6328_v53  ;;  %v6346_v52 = vpack.c.bf16 %v5776_v13, %v5774_v61  ;;  %v5848_v61 = vld [vmem:[%s9286_s3 + $0x318] sm:$0xff] }
 0x293   : > { %v8318_v10 = vmax.f32 %v8069_v6, %v3420_v46  ;;  %6331 = vmatprep.subr.bf16.mxu1 %v6330_v55  ;;  %v6336_v6 = vpack.c.bf16 %v5749_v29, %v5747_v27  ;;  %v5773_v46 = vld [vmem:[%s9286_s3 + $0x180] sm:$0xff]  ;;  %v5780_v27 = vld [vmem:[%s9286_s3 + $0x1b8] sm:$0xff] }
 0x295   : > { %5726 = vmatmul.mubr.msk.f32.gmra.mrb[114].mxu1 %vm3483_vm4, %v8318_v10 }
 0x296   : > { %3597 = vmatprep.mubr.f32.mxu1 %v6621_v39  ;;  %6333 = vmatpush1.bf16.msra.mxu1 %v6332_v37  ;;  %v5775_v37 = vld [vmem:[%s9286_s3 + $0x190] sm:$0xff] }
 0x297   : > { %6335 = vmatprep.subr.bf16.mxu1 %v6334_v9  ;;  %v5778_v9 = vld [vmem:[%s9286_s3 + $0x1a8] sm:$0xff] }
 0x298   : > { %v3375_v54 = vpop.permute.xlu0 %3374  ;;  %v6350_v44 = vpack.c.bf16 %v5780_v27, %v5778_v9 }
 0x299   : > { %v3373_v51 = vpop.permute.xlu1 %3372 }
 0x29a   : > { %v3421_v33 = vsel %vm3418_vm3, %v3371_v31, %v3373_v51  ;;  %6337 = vmatpush1.bf16.msra.mxu1 %v6336_v6  ;;  %v6348_v6 = vpack.c.bf16 %v5775_v37, %v5773_v46  ;;  %v5782_v31 = vld [vmem:[%s9286_s3 + $0x1c8] sm:$0xff]  ;;  %v5784_v51 = vld [vmem:[%s9286_s3 + $0x1d8] sm:$0xff]  ;;  %v5847_v46 = vld [vmem:[%s9286_s3 + $0x310] sm:$0xff] }
 0x29b   : > { %v8343_v58 = vmax.f32 %v8097_v12, %v3421_v33  ;;  %6339 = vmatprep.subr.bf16.mxu1 %v6338_v3  ;;  %v5755_v12 = vld [vmem:[%s9286_s3 + $0x150] sm:$0xf]  ;;  %v6354_v33 = vpack.c.bf16 %v5784_v51, %v5782_v31  ;;  %v5850_v37 = vld [vmem:[%s9286_s3 + $0x328] sm:$0xff] }
 0x29c   : > { %v5858_v51 = vld [vmem:[%s9286_s3 + $0x368] sm:$0xf] }
 0x29d   : > { %5727 = vmatmul.mubr.msk.f32.gmra.mrb[116].mxu1 %vm3483_vm4, %v8343_v58 }
 0x29e   : > { %3603 = vmatprep.mubr.f32.mxu1 %v6621_v39  ;;  %6341 = vmatpush1.bf16.msra.mxu1 %v6340_v59  ;;  %v5781_v59 = vld [vmem:[%s9286_s3 + $0x1c0] sm:$0xff] }
 0x29f   : > { %5757 = vmatprep.subr.msk.mxu1 %vm3514_vm2, %v5756_v56  ;;  %v5783_v56 = vld [vmem:[%s9286_s3 + $0x1d0] sm:$0xff] }
 0x2a0   : > { %v3379_v57 = vpop.permute.xlu0 %3378 }
 0x2a1   : > { %v3377_v11 = vpop.permute.xlu1 %3376 }
 0x2a2   : > { %v3422_v43 = vsel %vm3418_vm3, %v3375_v54, %v3377_v11  ;;  %5758 = vmatpush1.msk.msra.mxu1 %vm3514_vm2, %v5755_v12  ;;  %v5786_v12 = vld [vmem:[%s9286_s3 + $0x1e8] sm:$0xff] }
 0x2a3   : > { %v8364_v38 = vmax.f32 %v8128_v35, %v3422_v43  ;;  %6343 = vmatprep.subr.bf16.mxu1 %v6342_v42  ;;  %v5788_v42 = vld [vmem:[%s9286_s3 + $0x1f8] sm:$0xff]  ;;  %v6356_v43 = vpack.c.bf16 %v5783_v56, %v5781_v59 }
 0x2a5   : > { %5728 = vmatmul.mubr.msk.f32.gmra.mrb[118].mxu1 %vm3483_vm4, %v8364_v38  ;;  %5827 = vmatmul.mubr.msk.f32.vlgmr.msra.gmra.mrb[168].mxu0 %vm3483_vm4, %v8364_v38 }
 0x2a6   : > { %3609 = vmatprep.mubr.f32.mxu1 %v6621_v39  ;;  %4203 = vmatprep.mubr.f32.mxu0 %v6621_v39 }
 0x2a8   : > { %v3383_v35 = vpop.permute.xlu0 %3382 }
 0x2a9   : > { %v3381_v8 = vpop.permute.xlu1 %3380 }
 0x2aa   : > { %v3423_v20 = vsel %vm3418_vm3, %v3379_v57, %v3381_v8  ;;  %v6358_v57 = vpack.c.bf16 %v5788_v42, %v5786_v12  ;;  %v5785_v8 = vld [vmem:[%s9286_s3 + $0x1e0] sm:$0xff] }
 0x2ab   : > { %v8374_v21 = vmax.f32 %v8146_v63, %v3423_v20  ;;  %v5787_v20 = vld [vmem:[%s9286_s3 + $0x1f0] sm:$0xff] }
 0x2ad   : > { %5729 = vmatmul.mubr.msk.f32.gmra.mrb[120].mxu1 %vm3483_vm4, %v8374_v21  ;;  %5828 = vmatmul.mubr.msk.f32.gmra.mrb[170].mxu0 %vm3483_vm4, %v8374_v21 }
 0x2ae   : > { %3615 = vmatprep.mubr.f32.mxu1 %v6621_v39  ;;  %4209 = vmatprep.mubr.f32.mxu0 %v6621_v39 }
 0x2b0   : > { %v3387_v63 = vpop.permute.xlu0 %3386 }
 0x2b1   : > { %v3385_v50 = vpop.permute.xlu1 %3384 }
 0x2b2   : > { %v3424_v26 = vsel %vm3418_vm3, %v3383_v35, %v3385_v50 }
 0x2b3   : > { %v8384_v62 = vmax.f32 %v8165_v4, %v3424_v26  ;;  %v5790_v26 = vld [vmem:[%s9286_s3 + $0x208] sm:$0xf] }
 0x2b5   : > { %5730 = vmatmul.mubr.msk.f32.gmra.mrb[122].mxu1 %vm3483_vm4, %v8384_v62  ;;  %5829 = vmatmul.mubr.msk.f32.gmra.mrb[172].mxu0 %vm3483_vm4, %v8384_v62 }
 0x2b6   : > { %3621 = vmatprep.mubr.f32.mxu1 %v6621_v39  ;;  %4215 = vmatprep.mubr.f32.mxu0 %v6621_v39 }
 0x2b8   : > { %v3391_v4 = vpop.permute.xlu0 %3390 }
 0x2b9   : > { %v3389_v23 = vpop.permute.xlu1 %3388 }
 0x2ba   : > { %v3425_v22 = vsel %vm3418_vm3, %v3387_v63, %v3389_v23  ;;  %v5838_v63 = vld [vmem:[%s9286_s3 + $0x2c8] sm:$0xff]  ;;  %v5840_v23 = vld [vmem:[%s9286_s3 + $0x2d8] sm:$0xff] }
 0x2bb   : > { %v8394_v15 = vmax.f32 %v8178_v2, %v3425_v22 }
 0x2bd   : > { %5731 = vmatmul.mubr.msk.f32.gmra.mrb[124].mxu1 %vm3483_vm4, %v8394_v15  ;;  %5830 = vmatmul.mubr.msk.f32.gmra.mrb[174].mxu0 %vm3483_vm4, %v8394_v15 }
 0x2be   : > { %3627 = vmatprep.mubr.f32.mxu1 %v6621_v39  ;;  %4221 = vmatprep.mubr.f32.mxu0 %v6621_v39 }
 0x2c0   : > { %v3395_v2 = vpop.permute.xlu0 %3394 }
 0x2c1   : > { %v3393_v24 = vpop.permute.xlu1 %3392 }
 0x2c2   : > { %v3426_v18 = vsel %vm3418_vm3, %v3391_v4, %v3393_v24  ;;  %v5789_v24 = vld [vmem:[%s9286_s3 + $0x200] sm:$0xf] }
 0x2c3   : > { %v8404_v30 = vmax.f32 %v8191_v60, %v3426_v18  ;;  %v6382_v18 = vpack.c.bf16 %v5840_v23, %v5838_v63 }
 0x2c5   : > { %5732 = vmatmul.mubr.msk.f32.gmra.mrb[126].mxu1 %vm3483_vm4, %v8404_v30  ;;  %5831 = vmatmul.mubr.msk.f32.gmra.mrb[176].mxu0 %vm3483_vm4, %v8404_v30 }
 0x2c6   : > { %3633 = vmatprep.mubr.f32.mxu1 %v6621_v39  ;;  %4227 = vmatprep.mubr.f32.mxu0 %v6621_v39 }
 0x2c8   : > { %v3399_v60 = vpop.permute.xlu0 %3398 }
 0x2c9   : > { %v3397_v34 = vpop.permute.xlu1 %3396 }
 0x2ca   : > { %v3427_v19 = vsel %vm3418_vm3, %v3395_v2, %v3397_v34  ;;  %v5839_v2 = vld [vmem:[%s9286_s3 + $0x2d0] sm:$0xff]  ;;  %v5842_v34 = vld [vmem:[%s9286_s3 + $0x2e8] sm:$0xff] }
 0x2cb   : > { %v8414_v5 = vmax.f32 %v8204_v7, %v3427_v19  ;;  %v5769_v7 = vld [vmem:[%s9286_s3 + $0x160] sm:$0xff]  ;;  %v5844_v19 = vld [vmem:[%s9286_s3 + $0x2f8] sm:$0xff] }
 0x2cd   : > { %5733 = vmatmul.mubr.msk.f32.gmra.mrb[128].mxu1 %vm3483_vm4, %v8414_v5  ;;  %5832 = vmatmul.mubr.msk.f32.gmra.mrb[178].mxu0 %vm3483_vm4, %v8414_v5 }
 0x2ce   : > { %3639 = vmatprep.mubr.f32.mxu1 %v6621_v39  ;;  %4233 = vmatprep.mubr.f32.mxu0 %v6621_v39 }
 0x2d0   : > { %v3403_v29 = vpop.permute.xlu0 %3402 }
 0x2d1   : > { %v3401_v53 = vpop.permute.xlu1 %3400 }
 0x2d2   : > { %v3428_v55 = vsel %vm3418_vm3, %v3399_v60, %v3401_v53  ;;  %v6386_v53 = vpack.c.bf16 %v5844_v19, %v5842_v34 }
 0x2d3   : > { %v8424_v40 = vmax.f32 %v8217_v17, %v3428_v55  ;;  %v6344_v17 = vpack.c.bf16 %v5771_v32, %v5769_v7  ;;  %v5841_v55 = vld [vmem:[%s9286_s3 + $0x2e0] sm:$0xff]  ;;  %v5843_v7 = vld [vmem:[%s9286_s3 + $0x2f0] sm:$0xff]  ;;  %v5846_v32 = vld [vmem:[%s9286_s3 + $0x308] sm:$0xff] }
 0x2d4   : > { %v6388_v13 = vpack.c.bf16 %v5843_v7, %v5841_v55 }
 0x2d5   : > { %5734 = vmatmul.mubr.msk.f32.gmra.mrb[130].mxu1 %vm3483_vm4, %v8424_v40  ;;  %5833 = vmatmul.mubr.msk.f32.gmra.mrb[180].mxu0 %vm3483_vm4, %v8424_v40 }
 0x2d6   : > { %3763 = vmatprep.mubr.f32.mxu1 %v6621_v39  ;;  %4239 = vmatprep.mubr.f32.mxu0 %v6621_v39 }
 0x2d8   : > { %v3407_v0 = vpop.permute.xlu0 %3406 }
 0x2d9   : > { %5759 = vmatmul.mubr.msk.f32.vlgmr.msra.gmra.mrb[132].mxu1 %vm3483_vm4, %v8318_v10  ;;  %v3405_v48 = vpop.permute.xlu1 %3404  ;;  %v5779_v10 = vld [vmem:[%s9286_s3 + $0x1b0] sm:$0xff] }
 0x2da   : > { %v3429_v25 = vsel %vm3418_vm3, %v3403_v29, %v3405_v48  ;;  %6345 = vmatpush1.bf16.msra.mxu1 %v6344_v17  ;;  %3769 = vmatprep.mubr.f32.mxu1 %v6621_v39  ;;  %v6390_v17 = vpack.c.bf16 %v5848_v61, %v5846_v32  ;;  %v5849_v29 = vld [vmem:[%s9286_s3 + $0x320] sm:$0xff]  ;;  %v5851_v48 = vld [vmem:[%s9286_s3 + $0x330] sm:$0xff] }
 0x2db   : > { %v8461_v3 = vmax.f32 %v8230_v45, %v3429_v25  ;;  %6347 = vmatprep.subr.bf16.mxu1 %v6346_v52  ;;  %v6352_v45 = vpack.c.bf16 %v5779_v10, %v5777_v41  ;;  %v5845_v52 = vld [vmem:[%s9286_s3 + $0x300] sm:$0xff]  ;;  %v5854_v25 = vld [vmem:[%s9286_s3 + $0x348] sm:$0xff]  ;;  %v5855_v10 = vld [vmem:[%s9286_s3 + $0x350] sm:$0xff] }
 0x2dc   : > { %v6392_v9 = vpack.c.bf16 %v5847_v46, %v5845_v52  ;;  %v5853_v41 = vld [vmem:[%s9286_s3 + $0x340] sm:$0xff] }
 0x2dd   : > { %5760 = vmatmul.mubr.msk.f32.gmra.mrb[134].mxu1 %vm3483_vm4, %v8343_v58  ;;  %5834 = vmatmul.mubr.msk.f32.gmra.mrb[182].mxu0 %vm3483_vm4, %v8461_v3  ;;  %v6400_v31 = vpack.c.bf16 %v5855_v10, %v5853_v41  ;;  %v5874_v41 = vld [vmem:[%s9288_s5 + $0x68] sm:$0xff] }
 0x2de   : > { %3775 = vmatprep.mubr.f32.mxu1 %v6621_v39  ;;  %6349 = vmatpush1.bf16.msra.mxu1 %v6348_v6  ;;  %v6396_v6 = vpack.c.bf16 %v5851_v48, %v5849_v29  ;;  %v5871_v48 = vld [vmem:[%s9288_s5 + $0x50] sm:$0xff] }
 0x2df   : > { %4245 = vmatprep.mubr.f32.mxu0 %v6621_v39  ;;  %6351 = vmatprep.subr.bf16.mxu1 %v6350_v44 }
 0x2e0   : > { %v3411_v35 = vpop.permute.xlu0 %3410 }
 0x2e1   : > { %5761 = vmatmul.mubr.msk.f32.gmra.mrb[136].mxu1 %vm3483_vm4, %v8364_v38  ;;  %v3409_v1 = vpop.permute.xlu1 %3408 }
 0x2e2   : > { %v3430_v54 = vsel %vm3418_vm3, %v3407_v0, %v3409_v1  ;;  %3781 = vmatprep.mubr.f32.mxu1 %v6621_v39  ;;  %6353 = vmatpush1.bf16.msra.mxu1 %v6352_v45  ;;  %v5857_v45 = vld [vmem:[%s9286_s3 + $0x360] sm:$0xf] }
 0x2e3   : > { %v8498_v11 = vmax.f32 %v8243_v16, %v3430_v54  ;;  %6355 = vmatprep.subr.bf16.mxu1 %v6354_v33  ;;  %v6360_v16 = vpack.c.bf16 %v5787_v20, %v5785_v8 }
 0x2e5   : > { %5762 = vmatmul.mubr.msk.f32.gmra.mrb[138].mxu1 %vm3483_vm4, %v8374_v21  ;;  %5835 = vmatmul.mubr.msk.f32.gmra.mrb[184].mxu0 %vm3483_vm4, %v8498_v11 }
 0x2e6   : > { %3787 = vmatprep.mubr.f32.mxu1 %v6621_v39  ;;  %4251 = vmatprep.mubr.f32.mxu0 %v6621_v39 }
 0x2e7   : > { %6357 = vmatpush1.bf16.msra.mxu1 %v6356_v43 }
 0x2e8   : > { %6359 = vmatprep.subr.bf16.mxu1 %v6358_v57 }
 0x2e9   : > { %5763 = vmatmul.mubr.msk.f32.gmra.mrb[140].mxu1 %vm3483_vm4, %v8384_v62  ;;  %v3413_v50 = vpop.permute.xlu1 %3412 }
 0x2ea   : > { %v3431_v22 = vsel %vm3418_vm3, %v3411_v35, %v3413_v50  ;;  %3793 = vmatprep.mubr.f32.mxu1 %v6621_v39 }
 0x2eb   : > { %v8526_v4 = vmax.f32 %v8256_v36, %v3431_v22  ;;  %6361 = vmatpush1.bf16.msra.mxu1 %v6360_v16  ;;  %v5837_v36 = vld [vmem:[%s9286_s3 + $0x2c0] sm:$0xff] }
 0x2ec   : > { %5791 = vmatprep.subr.msk.mxu1 %vm3514_vm2, %v5790_v26  ;;  %v6384_v60 = vpack.c.bf16 %v5839_v2, %v5837_v36 }
 0x2ed   : > { %5764 = vmatmul.mubr.msk.f32.gmra.mrb[142].mxu1 %vm3483_vm4, %v8394_v15  ;;  %5836 = vmatmul.mubr.msk.f32.gmra.mrb[186].mxu0 %vm3483_vm4, %v8526_v4 }
 0x2ee   : > { %3799 = vmatprep.mubr.f32.mxu1 %v6621_v39  ;;  %6029 = vmatprep.mubr.msk.f32.mxu0 %vm6624_vm6, %v6621_v39 }
 0x2ef   : > { %5792 = vmatpush1.msk.msra.mxu1 %vm3514_vm2, %v5789_v24 }
 0x2f0   : > { %6383 = vmatprep.subr.bf16.mxu1 %v6382_v18 }
 0x2f1   : > { %5765 = vmatmul.mubr.msk.f32.gmra.mrb[144].mxu1 %vm3483_vm4, %v8404_v30 }
 0x2f2   : > { %3805 = vmatprep.mubr.f32.mxu1 %v6621_v39 }
 0x2f5   : > { %5766 = vmatmul.mubr.msk.f32.gmra.mrb[146].mxu1 %vm3483_vm4, %v8414_v5 }
 0x2f6   : > { %3811 = vmatprep.mubr.f32.mxu1 %v6621_v39 }
 0x2f9   : > { %5767 = vmatmul.mubr.msk.f32.gmra.mrb[148].mxu1 %vm3483_vm4, %v8424_v40 }
 0x2fa   : > { %3817 = vmatprep.mubr.f32.mxu1 %v6621_v39 }
 0x2fd   : > { %5768 = vmatmul.mubr.msk.f32.gmra.mrb[150].mxu1 %vm3483_vm4, %v8461_v3 }
 0x2fe   : > { %3980 = vmatprep.mubr.f32.mxu1 %v6621_v39 }
 0x301   : > { %5793 = vmatmul.mubr.msk.f32.vlgmr.msra.gmra.mrb[152].mxu1 %vm3483_vm4, %v8343_v58  ;;  %v5852_v58 = vld [vmem:[%s9286_s3 + $0x338] sm:$0xff] }
 0x302   : > { %6385 = vmatpush1.bf16.msra.mxu1 %v6384_v60  ;;  %3986 = vmatprep.mubr.f32.mxu1 %v6621_v39  ;;  %v6394_v27 = vpack.c.bf16 %v5852_v58, %v5850_v37 }
 0x303   : > { %6387 = vmatprep.subr.bf16.mxu1 %v6386_v53 }
 0x305   : > { %5794 = vmatmul.mubr.msk.f32.gmra.mrb[154].mxu1 %vm3483_vm4, %v8364_v38  ;;  %v5856_v38 = vld [vmem:[%s9286_s3 + $0x358] sm:$0xff] }
 0x306   : > { %3992 = vmatprep.mubr.f32.mxu1 %v6621_v39  ;;  %6389 = vmatpush1.bf16.msra.mxu1 %v6388_v13  ;;  %v6398_v44 = vpack.c.bf16 %v5856_v38, %v5854_v25  ;;  %v5872_v25 = vld [vmem:[%s9288_s5 + $0x58] sm:$0xff]  ;;  %v5873_v38 = vld [vmem:[%s9288_s5 + $0x60] sm:$0xff] }
 0x307   : > { %6391 = vmatprep.subr.bf16.mxu1 %v6390_v17 }
 0x309   : > { %5795 = vmatmul.mubr.msk.f32.gmra.mrb[156].mxu1 %vm3483_vm4, %v8374_v21 }
 0x30a   : > { %3998 = vmatprep.mubr.f32.mxu1 %v6621_v39  ;;  %6393 = vmatpush1.bf16.msra.mxu1 %v6392_v9 }
 0x30b   : > { %6395 = vmatprep.subr.bf16.mxu1 %v6394_v27 }
 0x30d   : > { %5796 = vmatmul.mubr.msk.f32.gmra.mrb[158].mxu1 %vm3483_vm4, %v8384_v62 }
 0x30e   : > { %4004 = vmatprep.mubr.f32.mxu1 %v6621_v39  ;;  %6397 = vmatpush1.bf16.msra.mxu1 %v6396_v6  ;;  %v6623_v6 = vmov 0.0|0.0  }
 0x30f   : > { %6399 = vmatprep.subr.bf16.mxu1 %v6398_v44  ;;  %6402 = vmatprep.subr.bf16.mxu0 %v6623_v6  ;;  %v6403_v44 = vpack.c.bf16 %v5872_v25, %v5871_v48 }
 0x311   : > { %5797 = vmatmul.mubr.msk.f32.gmra.mrb[160].mxu1 %vm3483_vm4, %v8394_v15  ;;  %6404 = vmatpush3.bf16.msra.mxu0 %v6403_v44  ;;  %v5879_v44 = vld [vmem:[%s9288_s5 + $0x90] sm:$0xff] }
 0x312   : > { %4010 = vmatprep.mubr.f32.mxu1 %v6621_v39  ;;  %6401 = vmatpush1.bf16.msra.mxu1 %v6400_v31  ;;  %v4663_v31 = vld [vmem:[%s9288_s5] sm:$0xff] }
 0x313   : > { %5859 = vmatprep.subr.msk.mxu1 %vm3514_vm2, %v5858_v51  ;;  %v4664_v51 = vld [vmem:[%s9288_s5 + $0x8] sm:$0xff]  ;;  %6405 = vmatprep.subr.bf16.mxu0 %v6623_v6 }
 0x315   : > { %5798 = vmatmul.mubr.msk.f32.gmra.mrb[162].mxu1 %vm3483_vm4, %v8404_v30 }
 0x316   : > { %4016 = vmatprep.mubr.f32.mxu1 %v6621_v39  ;;  %5860 = vmatpush1.msk.msra.mxu1 %vm3514_vm2, %v5857_v45 }
 0x317   : > { %6417 = vmatprep.subr.bf16.mxu1 %v6623_v6 }
 0x319   : > { %5799 = vmatmul.mubr.msk.f32.gmra.mrb[164].mxu1 %vm3483_vm4, %v8414_v5 }
 0x31a   : > { %4022 = vmatprep.mubr.f32.mxu1 %v6621_v39 }
 0x31d   : > { %5800 = vmatmul.mubr.msk.f32.gmra.mrb[166].mxu1 %vm3483_vm4, %v8424_v40 }
 0x31e   : > { %4028 = vmatprep.mubr.f32.mxu1 %v6621_v39 }
 0x321   : > { %5801 = vmatmul.mubr.msk.f32.gmra.mrb[168].mxu1 %vm3483_vm4, %v8461_v3 }
 0x322   : > { %4034 = vmatprep.mubr.f32.mxu1 %v6621_v39 }
 0x325   : > { %5802 = vmatmul.mubr.msk.f32.gmra.mrb[170].mxu1 %vm3483_vm4, %v8498_v11 }
 0x326   : > { %4414 = vmatprep.mubr.f32.mxu1 %v6621_v39 }
 0x329   : > { %5861 = vmatmul.mubr.msk.f32.vlgmr.msra.gmra.mrb[172].mxu1 %vm3483_vm4, %v8374_v21  ;;  %v3417_v21 = vpop.permute.xlu1 %3416 }
 0x32a   : > { %4420 = vmatprep.mubr.f32.mxu1 %v6621_v39 }
 0x32d   : > { %5862 = vmatmul.mubr.msk.f32.gmra.mrb[174].mxu1 %vm3483_vm4, %v8384_v62  ;;  %v3415_v62 = vpop.permute.xlu0 %3414 }
 0x32e   : > { %4426 = vmatprep.mubr.f32.mxu1 %v6621_v39 }
 0x331   : > { %5863 = vmatmul.mubr.msk.f32.gmra.mrb[176].mxu1 %vm3483_vm4, %v8394_v15  ;;  %v3432_v15 = vsel %vm3418_vm3, %v3415_v62, %v3417_v21 }
 0x332   : > { %4432 = vmatprep.mubr.f32.mxu1 %v6621_v39 }
 0x335   : > { %5864 = vmatmul.mubr.msk.f32.gmra.mrb[178].mxu1 %vm3483_vm4, %v8404_v30  ;;  %v3460_v30 = vmax.f32 %v8268_v47, %v3432_v15  ;;  %v6406_v15 = vpack.c.bf16 %v5874_v41, %v5873_v38  ;;  %v5880_v41 = vld [vmem:[%s9288_s5 + $0x98] sm:$0xff] }
 0x336   : > { %4438 = vmatprep.mubr.f32.mxu1 %v6621_v39 }
 0x337   : > { %6407 = vmatpush3.bf16.msra.mxu0 %v6406_v15  ;;  %v6415_v15 = vpack.c.bf16 %v5880_v41, %v5879_v44 }
 0x338   : > { %6408 = vmatprep.subr.bf16.mxu0 %v6623_v6 }
 0x339   : > { %5865 = vmatmul.mubr.msk.f32.gmra.mrb[180].mxu1 %vm3483_vm4, %v8414_v5 }
 0x33a   : > { %4444 = vmatprep.mubr.f32.mxu1 %v6621_v39 }
 0x33d   : > { %5866 = vmatmul.mubr.msk.f32.gmra.mrb[182].mxu1 %vm3483_vm4, %v8424_v40 }
 0x33e   : > { %4450 = vmatprep.mubr.f32.mxu1 %v6621_v39 }
 0x341   : > { %5867 = vmatmul.mubr.msk.f32.gmra.mrb[184].mxu1 %vm3483_vm4, %v8461_v3 }
 0x342   : > { %4456 = vmatprep.mubr.f32.mxu1 %v6621_v39 }
 0x345   : > { %5868 = vmatmul.mubr.msk.f32.gmra.mrb[186].mxu1 %vm3483_vm4, %v8498_v11 }
 0x346   : > { %4462 = vmatprep.mubr.f32.mxu1 %v6621_v39 }
 0x349   : > { %5869 = vmatmul.mubr.msk.f32.gmra.mrb[188].mxu1 %vm3483_vm4, %v8526_v4 }
 0x34a   : > { %4468 = vmatprep.mubr.f32.mxu1 %v6621_v39 }
 0x34d   : > { %5870 = vmatmul.mubr.msk.f32.gmra.mrb[190].mxu1 %vm3483_vm4, %v3460_v30  ;;  %v6418_v30 = vpack.c.bf16 %v4664_v51, %v4663_v31 }
 0x34e   : > { %6052 = vmatprep.mubr.msk.f32.mxu1 %vm6624_vm6, %v6621_v39 }
 0x34f   : > { %6419 = vmatpush3.bf16.msra.mxu1 %v6418_v30 }
 0x350   : > { %6420 = vmatprep.subr.bf16.mxu1 %v6623_v6 }
 0x360   : > { %v3587_v5 = vpop.f32.mrb[112].mxu1 }
 0x361   : > { %v3589_v40 = vpop.f32.mrb[113].mxu1 }
 0x362   : > { %3648 = vst.msk [vmem:[#allocation3 + $0x8] sm:$0xff] %vm3647_vm5, %v3589_v40  ;;  %v4666_v40 = vld [vmem:[%s9288_s5 + $0x18] sm:$0xff] }
 0x368   : > { %v3593_v3 = vpop.f32.mrb[114].mxu1 }
 0x369   : > { %v3595_v33 = vpop.f32.mrb[115].mxu1  ;;  %v3825_v13 = vld [vmem:[#allocation3 + $0x8] sm:$0xff] }
 0x36a   : > { %3650 = vst.msk [vmem:[#allocation3 + $0x18] sm:$0xff] %vm3647_vm5, %v3595_v33  ;;  %v5875_v33 = vld [vmem:[%s9288_s5 + $0x70] sm:$0xff] }
 0x370   : > { %v8674_v59 = vpop.f32.mrb[116].mxu1 }
 0x371   : > { %v3601_v56 = vpop.f32.mrb[117].mxu1  ;;  %v3827_v9 = vld [vmem:[#allocation3 + $0x18] sm:$0xff] }
 0x372   : > { %3652 = vst.msk [vmem:[#allocation3 + $0x28] sm:$0xff] %vm3647_vm5, %v3601_v56 }
 0x378   : > { %v8677_v0 = vpop.f32.mrb[118].mxu1  ;;  %v8679_v1 = vpop.f32.mrb[168].mxu0 }
 0x379   : > { %v3607_v47 = vpop.f32.mrb[119].mxu1  ;;  %v8681_v12 = vpop.f32.mrb[169].mxu0  ;;  %v3829_v62 = vld [vmem:[#allocation3 + $0x28] sm:$0xff] }
 0x37a   : > { %3654 = vst.msk [vmem:[#allocation3 + $0x38] sm:$0xff] %vm3647_vm5, %v3607_v47 }
 0x380   : > { %v8684_v42 = vpop.f32.mrb[120].mxu1  ;;  %v8686_v54 = vpop.f32.mrb[170].mxu0 }
 0x381   : > { %v3613_v11 = vpop.f32.mrb[121].mxu1  ;;  %v8688_v43 = vpop.f32.mrb[171].mxu0 }
 0x382   : > { %3656 = vst.msk [vmem:[#allocation3 + $0x48] sm:$0xff] %vm3647_vm5, %v3613_v11 }
 0x388   : > { %v8691_v57 = vpop.f32.mrb[122].mxu1  ;;  %v8693_v8 = vpop.f32.mrb[172].mxu0 }
 0x389   : > { %v3619_v20 = vpop.f32.mrb[123].mxu1  ;;  %v8695_v16 = vpop.f32.mrb[173].mxu0  ;;  %v3833_v48 = vld [vmem:[#allocation3 + $0x48] sm:$0xff] }
 0x38a   : > { %3658 = vst.msk [vmem:[#allocation3 + $0x58] sm:$0xff] %vm3647_vm5, %v3619_v20  ;;  %v4667_v20 = vld [vmem:[%s9288_s5 + $0x20] sm:$0xff] }
 0x390   : > { %v8698_v35 = vpop.f32.mrb[124].mxu1  ;;  %v8700_v50 = vpop.f32.mrb[174].mxu0 }
 0x391   : > { %v3625_v26 = vpop.f32.mrb[125].mxu1  ;;  %v8702_v63 = vpop.f32.mrb[175].mxu0 }
 0x392   : > { %3660 = vst.msk [vmem:[#allocation3 + $0x68] sm:$0xff] %vm3647_vm5, %v3625_v26  ;;  %v4668_v26 = vld [vmem:[%s9288_s5 + $0x28] sm:$0xff] }
 0x398   : > { %v8705_v23 = vpop.f32.mrb[126].mxu1  ;;  %v8707_v22 = vpop.f32.mrb[176].mxu0 }
 0x399   : > { %v3631_v4 = vpop.f32.mrb[127].mxu1  ;;  %v8709_v24 = vpop.f32.mrb[177].mxu0 }
 0x39a   : > { %3662 = vst.msk [vmem:[#allocation3 + $0x78] sm:$0xff] %vm3647_vm5, %v3631_v4 }
 0x3a0   : > { %v8712_v18 = vpop.f32.mrb[128].mxu1  ;;  %v8714_v36 = vpop.f32.mrb[178].mxu0 }
 0x3a1   : > { %v3637_v2 = vpop.f32.mrb[129].mxu1  ;;  %v8716_v34 = vpop.f32.mrb[179].mxu0 }
 0x3a2   : > { %3664 = vst.msk [vmem:[#allocation3 + $0x88] sm:$0xff] %vm3647_vm5, %v3637_v2 }
 0x3a8   : > { %v8719_v19 = vpop.f32.mrb[130].mxu1  ;;  %v8721_v60 = vpop.f32.mrb[180].mxu0 }
 0x3a9   : > { %v3643_v53 = vpop.f32.mrb[131].mxu1  ;;  %v8723_v55 = vpop.f32.mrb[181].mxu0 }
 0x3aa   : > { %3666 = vst.msk [vmem:[#allocation3 + $0x98] sm:$0xff] %vm3647_vm5, %v3643_v53  ;;  %v3831_v53 = vld [vmem:[#allocation3 + $0x38] sm:$0xff] }
 0x3ac   : > { %v3765_v7 = vpop.f32.mrb[132].mxu1 }
 0x3ad   : > { %v8726_v32 = vadd.f32 %v3765_v7, %v3587_v5  ;;  %v3767_v61 = vpop.f32.mrb[133].mxu1  ;;  %v4665_v5 = vld [vmem:[%s9288_s5 + $0x10] sm:$0xff] }
 0x3ae   : > { %v3845_v17 = vadd.f32 %v3825_v13, %v3767_v61  ;;  %v6421_v56 = vpack.c.bf16 %v4666_v40, %v4665_v5 }
 0x3b0   : > { %3865 = vst.msk [vmem:[#allocation3 + $0x8] sm:$0xff] %vm3647_vm5, %v3845_v17  ;;  %v3771_v52 = vpop.f32.mrb[134].mxu1  ;;  %v8729_v46 = vpop.f32.mrb[182].mxu0  ;;  %v5877_v17 = vld [vmem:[%s9288_s5 + $0x80] sm:$0xff]  ;;  %6422 = vmatpush3.bf16.msra.mxu1 %v6421_v56 }
 0x3b1   : > { %v8731_v37 = vadd.f32 %v3771_v52, %v3593_v3  ;;  %v3773_v58 = vpop.f32.mrb[135].mxu1  ;;  %v8733_v27 = vpop.f32.mrb[183].mxu0  ;;  %v5878_v52 = vld [vmem:[%s9288_s5 + $0x88] sm:$0xff]  ;;  %6423 = vmatprep.subr.bf16.mxu1 %v6623_v6 }
 0x3b2   : > { %v3847_v29 = vadd.f32 %v3827_v9, %v3773_v58  ;;  %v6412_v25 = vpack.c.bf16 %v5878_v52, %v5877_v17 }
 0x3b4   : > { %3867 = vst.msk [vmem:[#allocation3 + $0x18] sm:$0xff] %vm3647_vm5, %v3847_v29  ;;  %v3777_v10 = vpop.f32.mrb[136].mxu1 }
 0x3b5   : > { %v8757_v45 = vadd.f32 %v3777_v10, %v8674_v59  ;;  %v3779_v21 = vpop.f32.mrb[137].mxu1  ;;  %v5876_v59 = vld [vmem:[%s9288_s5 + $0x78] sm:$0xff] }
 0x3b6   : > { %v3849_v3 = vadd.f32 %v3829_v62, %v3779_v21  ;;  %v6409_v61 = vpack.c.bf16 %v5876_v59, %v5875_v33  ;;  %v3835_v21 = vld [vmem:[#allocation3 + $0x58] sm:$0xff]  ;;  %v3837_v33 = vld [vmem:[#allocation3 + $0x68] sm:$0xff] }
 0x3b8   : > { %3869 = vst.msk [vmem:[#allocation3 + $0x28] sm:$0xff] %vm3647_vm5, %v3849_v3  ;;  %v3783_v47 = vpop.f32.mrb[138].mxu1  ;;  %v8773_v11 = vpop.f32.mrb[184].mxu0  ;;  %6410 = vmatpush3.bf16.msra.mxu0 %v6409_v61  ;;  %v3841_v61 = vld [vmem:[#allocation3 + $0x88] sm:$0xff] }
 0x3b9   : > { %v8783_v4 = vadd.f32 %v3783_v47, %v8677_v0  ;;  %v3785_v2 = vpop.f32.mrb[139].mxu1  ;;  %v8785_v7 = vpop.f32.mrb[185].mxu0  ;;  %v6424_v0 = vpack.c.bf16 %v4668_v26, %v4667_v20  ;;  %6411 = vmatprep.subr.bf16.mxu0 %v6623_v6  ;;  %v3839_v20 = vld [vmem:[#allocation3 + $0x78] sm:$0xff] }
 0x3ba   : > { %v3851_v13 = vadd.f32 %v3831_v53, %v3785_v2 }
 0x3bb   : > { %6425 = vmatpush3.bf16.msra.mxu1 %v6424_v0  ;;  %v3843_v0 = vld [vmem:[#allocation3 + $0x98] sm:$0xff] }
 0x3bc   : > { %3871 = vst.msk [vmem:[#allocation3 + $0x38] sm:$0xff] %vm3647_vm5, %v3851_v13  ;;  %v3789_v58 = vpop.f32.mrb[140].mxu1  ;;  %6426 = vmatprep.subr.bf16.mxu1 %v6623_v6  ;;  %6413 = vmatpush3.bf16.msra.mxu0 %v6412_v25 }
 0x3bd   : > { %v8797_v9 = vadd.f32 %v3789_v58, %v8684_v42  ;;  %v3791_v29 = vpop.f32.mrb[141].mxu1  ;;  %6414 = vmatprep.subr.bf16.mxu0 %v6623_v6 }
 0x3be   : > { %v3853_v38 = vadd.f32 %v3833_v48, %v3791_v29 }
 0x3c0   : > { %3873 = vst.msk [vmem:[#allocation3 + $0x48] sm:$0xff] %vm3647_vm5, %v3853_v38  ;;  %v3795_v42 = vpop.f32.mrb[142].mxu1  ;;  %v8807_v10 = vpop.f32.mrb[186].mxu0  ;;  %6416 = vmatpush3.bf16.msra.mxu0 %v6415_v15 }
 0x3c1   : > { %v8811_v31 = vadd.f32 %v3795_v42, %v8691_v57  ;;  %v3797_v51 = vpop.f32.mrb[143].mxu1  ;;  %v8813_v62 = vpop.f32.mrb[187].mxu0  ;;  %6432 = vmatprep.subr.bf16.mxu0 %v6623_v6 }
 0x3c2   : > { %v3855_v30 = vadd.f32 %v3835_v21, %v3797_v51  ;;  %v4044_v51 = vld [vmem:[#allocation3 + $0x18] sm:$0xff] }
 0x3c4   : > { %3875 = vst.msk [vmem:[#allocation3 + $0x58] sm:$0xff] %vm3647_vm5, %v3855_v30  ;;  %v3801_v5 = vpop.f32.mrb[144].mxu1 }
 0x3c5   : > { %v8818_v40 = vadd.f32 %v3801_v5, %v8698_v35  ;;  %v3803_v3 = vpop.f32.mrb[145].mxu1 }
 0x3c6   : > { %v3857_v57 = vadd.f32 %v3837_v33, %v3803_v3  ;;  %v4046_v3 = vld [vmem:[#allocation3 + $0x28] sm:$0xff] }
 0x3c8   : > { %3877 = vst.msk [vmem:[#allocation3 + $0x68] sm:$0xff] %vm3647_vm5, %v3857_v57  ;;  %v3807_v59 = vpop.f32.mrb[146].mxu1 }
 0x3c9   : > { %v8823_v56 = vadd.f32 %v3807_v59, %v8705_v23  ;;  %v3809_v47 = vpop.f32.mrb[147].mxu1 }
 0x3ca   : > { %v3859_v26 = vadd.f32 %v3839_v20, %v3809_v47  ;;  %v4048_v20 = vld [vmem:[#allocation3 + $0x38] sm:$0xff] }
 0x3cc   : > { %3879 = vst.msk [vmem:[#allocation3 + $0x78] sm:$0xff] %vm3647_vm5, %v3859_v26  ;;  %v3813_v2 = vpop.f32.mrb[148].mxu1 }
 0x3cd   : > { %v8827_v35 = vadd.f32 %v3813_v2, %v8712_v18  ;;  %v3815_v53 = vpop.f32.mrb[149].mxu1  ;;  %v4042_v18 = vld [vmem:[#allocation3 + $0x8] sm:$0xff] }
 0x3ce   : > { %v3861_v13 = vadd.f32 %v3841_v61, %v3815_v53 }
 0x3d0   : > { %3881 = vst.msk [vmem:[#allocation3 + $0x88] sm:$0xff] %vm3647_vm5, %v3861_v13  ;;  %v3819_v17 = vpop.f32.mrb[150].mxu1 }
 0x3d1   : > { %v8831_v52 = vadd.f32 %v3819_v17, %v8719_v19  ;;  %v3821_v23 = vpop.f32.mrb[151].mxu1 }
 0x3d2   : > { %v3863_v58 = vadd.f32 %v3843_v0, %v3821_v23 }
 0x3d4   : > { %3883 = vst.msk [vmem:[#allocation3 + $0x98] sm:$0xff] %vm3647_vm5, %v3863_v58  ;;  %v3982_v29 = vpop.f32.mrb[152].mxu1 }
 0x3d5   : > { %v4061_v48 = vadd.f32 %v3982_v29, %v8726_v32  ;;  %v3984_v25 = vpop.f32.mrb[153].mxu1 }
 0x3d6   : > { %v4062_v38 = vadd.f32 %v4042_v18, %v3984_v25 }
 0x3d7   : > { %v8836_v44 = vadd.f32 %v8679_v1, %v4061_v48 }
 0x3d8   : > { %4082 = vst.msk [vmem:[#allocation3 + $0x8] sm:$0xff] %vm3647_vm5, %v4062_v38  ;;  %v3988_v41 = vpop.f32.mrb[154].mxu1 }
 0x3d9   : > { %v4063_v19 = vadd.f32 %v3988_v41, %v8731_v37  ;;  %v3990_v42 = vpop.f32.mrb[155].mxu1 }
 0x3da   : > { %v4064_v21 = vadd.f32 %v4044_v51, %v3990_v42 }
 0x3db   : > { %v8841_v15 = vadd.f32 %v8686_v54, %v4063_v19 }
 0x3dc   : > { %4084 = vst.msk [vmem:[#allocation3 + $0x18] sm:$0xff] %vm3647_vm5, %v4064_v21  ;;  %v3994_v32 = vpop.f32.mrb[156].mxu1 }
 0x3dd   : > { %v4065_v30 = vadd.f32 %v3994_v32, %v8757_v45  ;;  %v3996_v5 = vpop.f32.mrb[157].mxu1 }
 0x3de   : > { %v4066_v1 = vadd.f32 %v4046_v3, %v3996_v5 }
 0x3df   : > { %v4259_v33 = vld [vmem:[#allocation3 + $0x8] sm:$0xff]  ;;  %v8846_v57 = vadd.f32 %v8693_v8, %v4065_v30 }
 0x3e0   : > { %4086 = vst.msk [vmem:[#allocation3 + $0x28] sm:$0xff] %vm3647_vm5, %v4066_v1  ;;  %v4000_v37 = vpop.f32.mrb[158].mxu1  ;;  %v4279_v59 = vadd.f32 %v4259_v33, %v8681_v12  ;;  %v4050_v12 = vld [vmem:[#allocation3 + $0x48] sm:$0xff] }
 0x3e1   : > { %v4067_v54 = vadd.f32 %v4000_v37, %v8783_v4  ;;  %v4002_v47 = vpop.f32.mrb[159].mxu1 }
 0x3e2   : > { %v4068_v26 = vadd.f32 %v4048_v20, %v4002_v47  ;;  %4299 = vst.msk [vmem:[#allocation3 + $0x8] sm:$0xff] %vm3647_vm5, %v4279_v59 }
 0x3e3   : > { %v4261_v45 = vld [vmem:[#allocation3 + $0x18] sm:$0xff]  ;;  %v8853_v2 = vadd.f32 %v8700_v50, %v4067_v54 }
 0x3e4   : > { %4088 = vst.msk [vmem:[#allocation3 + $0x38] sm:$0xff] %vm3647_vm5, %v4068_v26  ;;  %v4006_v8 = vpop.f32.mrb[160].mxu1  ;;  %v4281_v53 = vadd.f32 %v4261_v45, %v8688_v43  ;;  %v4052_v43 = vld [vmem:[#allocation3 + $0x58] sm:$0xff] }
 0x3e5   : > { %v4069_v61 = vadd.f32 %v4006_v8, %v8797_v9  ;;  %v4008_v13 = vpop.f32.mrb[161].mxu1 }
 0x3e6   : > { %v4070_v17 = vadd.f32 %v4050_v12, %v4008_v13  ;;  %4301 = vst.msk [vmem:[#allocation3 + $0x18] sm:$0xff] %vm3647_vm5, %v4281_v53 }
 0x3e7   : > { %v4263_v4 = vld [vmem:[#allocation3 + $0x28] sm:$0xff]  ;;  %v8860_v23 = vadd.f32 %v8707_v22, %v4069_v61 }
 0x3e8   : > { %4090 = vst.msk [vmem:[#allocation3 + $0x48] sm:$0xff] %vm3647_vm5, %v4070_v17  ;;  %v4012_v50 = vpop.f32.mrb[162].mxu1  ;;  %v4283_v0 = vadd.f32 %v4263_v4, %v8695_v16  ;;  %v4054_v16 = vld [vmem:[#allocation3 + $0x68] sm:$0xff] }
 0x3e9   : > { %v4071_v58 = vadd.f32 %v4012_v50, %v8811_v31  ;;  %v4014_v29 = vpop.f32.mrb[163].mxu1  ;;  %v4476_v61 = vld [vmem:[#allocation3 + $0x8] sm:$0xff] }
 0x3ea   : > { %v4072_v48 = vadd.f32 %v4052_v43, %v4014_v29  ;;  %4303 = vst.msk [vmem:[#allocation3 + $0x28] sm:$0xff] %vm3647_vm5, %v4283_v0  ;;  %v4669_v43 = vld [vmem:[%s9288_s5 + $0x30] sm:$0xff] }
 0x3eb   : > { %v4265_v9 = vld [vmem:[#allocation3 + $0x38] sm:$0xff]  ;;  %v8867_v25 = vadd.f32 %v8714_v36, %v4071_v58 }
 0x3ec   : > { %4092 = vst.msk [vmem:[#allocation3 + $0x58] sm:$0xff] %vm3647_vm5, %v4072_v48  ;;  %v4018_v22 = vpop.f32.mrb[164].mxu1  ;;  %v4285_v18 = vadd.f32 %v4265_v9, %v8702_v63  ;;  %v4056_v63 = vld [vmem:[#allocation3 + $0x78] sm:$0xff] }
 0x3ed   : > { %v4073_v38 = vadd.f32 %v4018_v22, %v8818_v40  ;;  %v4020_v41 = vpop.f32.mrb[165].mxu1 }
 0x3ee   : > { %v4074_v19 = vadd.f32 %v4054_v16, %v4020_v41  ;;  %4305 = vst.msk [vmem:[#allocation3 + $0x38] sm:$0xff] %vm3647_vm5, %v4285_v18 }
 0x3ef   : > { %v4267_v31 = vld [vmem:[#allocation3 + $0x48] sm:$0xff]  ;;  %v8874_v42 = vadd.f32 %v8721_v60, %v4073_v38 }
 0x3f0   : > { %4094 = vst.msk [vmem:[#allocation3 + $0x68] sm:$0xff] %vm3647_vm5, %v4074_v19  ;;  %v4024_v36 = vpop.f32.mrb[166].mxu1  ;;  %v4287_v51 = vadd.f32 %v4267_v31, %v8709_v24  ;;  %v4058_v24 = vld [vmem:[#allocation3 + $0x88] sm:$0xff] }
 0x3f1   : > { %v4075_v21 = vadd.f32 %v4024_v36, %v8823_v56  ;;  %v4026_v32 = vpop.f32.mrb[167].mxu1  ;;  %v4480_v38 = vld [vmem:[#allocation3 + $0x28] sm:$0xff] }
 0x3f2   : > { %v4076_v30 = vadd.f32 %v4056_v63, %v4026_v32  ;;  %4307 = vst.msk [vmem:[#allocation3 + $0x48] sm:$0xff] %vm3647_vm5, %v4287_v51 }
 0x3f3   : > { %v4269_v40 = vld [vmem:[#allocation3 + $0x58] sm:$0xff]  ;;  %v8881_v5 = vadd.f32 %v8729_v46, %v4075_v21 }
 0x3f4   : > { %4096 = vst.msk [vmem:[#allocation3 + $0x78] sm:$0xff] %vm3647_vm5, %v4076_v30  ;;  %v4030_v60 = vpop.f32.mrb[168].mxu1  ;;  %v4289_v3 = vadd.f32 %v4269_v40, %v8716_v34  ;;  %v4060_v34 = vld [vmem:[#allocation3 + $0x98] sm:$0xff] }
 0x3f5   : > { %v4077_v1 = vadd.f32 %v4030_v60, %v8827_v35  ;;  %v4032_v33 = vpop.f32.mrb[169].mxu1  ;;  %v8897_v35 = vld [vmem:[%s9287_s4] sm:$0x3]  ;;  %v4482_v21 = vld [vmem:[#allocation3 + $0x38] sm:$0xff] }
 0x3f6   : > { %v4078_v37 = vadd.f32 %v4058_v24, %v4032_v33  ;;  %4309 = vst.msk [vmem:[#allocation3 + $0x58] sm:$0xff] %vm3647_vm5, %v4289_v3  ;;  %v8908_v13 = vrot.slane %v8897_v35, %v3186_v49 }
 0x3f7   : > { %v4271_v56 = vld [vmem:[#allocation3 + $0x68] sm:$0xff]  ;;  %v8888_v59 = vadd.f32 %v8773_v11, %v4077_v1 }
 0x3f8   : > { %4098 = vst.msk [vmem:[#allocation3 + $0x88] sm:$0xff] %vm3647_vm5, %v4078_v37  ;;  %v4036_v46 = vpop.f32.mrb[170].mxu1  ;;  %v4291_v54 = vadd.f32 %v4271_v56, %v8723_v55 }
 0x3f9   : > { %v4079_v47 = vadd.f32 %v4036_v46, %v8831_v52  ;;  %v4038_v20 = vpop.f32.mrb[171].mxu1  ;;  %v4484_v3 = vld [vmem:[#allocation3 + $0x48] sm:$0xff]  ;;  %v4671_v46 = vld [vmem:[%s9288_s5 + $0x40] sm:$0xff] }
 0x3fa   : > { %v4080_v26 = vadd.f32 %v4060_v34, %v4038_v20  ;;  %4311 = vst.msk [vmem:[#allocation3 + $0x68] sm:$0xff] %vm3647_vm5, %v4291_v54  ;;  %v4672_v54 = vld [vmem:[%s9288_s5 + $0x48] sm:$0xff] }
 0x3fb   : > { %v4273_v45 = vld [vmem:[#allocation3 + $0x78] sm:$0xff]  ;;  %v8900_v11 = vadd.f32 %v8807_v10, %v4079_v47 }
 0x3fc   : > { %4100 = vst.msk [vmem:[#allocation3 + $0x98] sm:$0xff] %vm3647_vm5, %v4080_v26  ;;  %v4416_v8 = vpop.f32.mrb[172].mxu1  ;;  %v4293_v55 = vadd.f32 %v4273_v45, %v8733_v27  ;;  %v6430_v26 = vpack.c.bf16 %v4672_v54, %v4671_v46 }
 0x3fd   : > { %v4495_v52 = vadd.f32 %v4416_v8, %v8836_v44  ;;  %v4418_v53 = vpop.f32.mrb[173].mxu1  ;;  %v4478_v44 = vld [vmem:[#allocation3 + $0x18] sm:$0xff] }
 0x3fe   : > { %v4496_v12 = vadd.f32 %v4476_v61, %v4418_v53  ;;  %4313 = vst.msk [vmem:[#allocation3 + $0x78] sm:$0xff] %vm3647_vm5, %v4293_v55  ;;  %v4486_v34 = vld [vmem:[#allocation3 + $0x58] sm:$0xff] }
 0x3ff   : > { %v4275_v17 = vld [vmem:[#allocation3 + $0x88] sm:$0xff]  ;;  %v4567_v0 = vadd.f32 %v8908_v13, %v4495_v52 }
 0x400   : > { %4516 = vst.msk [vmem:[#allocation3 + $0x8] sm:$0xff] %vm3647_vm5, %v4496_v12  ;;  %v4422_v10 = vpop.f32.mrb[174].mxu1  ;;  %v4295_v4 = vadd.f32 %v4275_v17, %v8785_v7  ;;  %v4670_v7 = vld [vmem:[%s9288_s5 + $0x38] sm:$0xff] }
 0x401   : > { %v4497_v27 = vadd.f32 %v4422_v10, %v8841_v15  ;;  %v4424_v50 = vpop.f32.mrb[175].mxu1  ;;  %v6427_v9 = vpack.c.bf16 %v4670_v7, %v4669_v43  ;;  %v4587_v41 = vmax.f32 %v4567_v0, 0.0  ;;  %v4488_v10 = vld [vmem:[#allocation3 + $0x68] sm:$0xff] }
 0x402   : > { %v4498_v58 = vadd.f32 %v4478_v44, %v4424_v50  ;;  %4315 = vst.msk [vmem:[#allocation3 + $0x88] sm:$0xff] %vm3647_vm5, %v4295_v4 }
 0x403   : > { %v4569_v49 = vadd.f32 %v8908_v13, %v4497_v27  ;;  %v4277_v29 = vld [vmem:[#allocation3 + $0x98] sm:$0xff]  ;;  %6428 = vmatpush3.bf16.msra.mxu1 %v6427_v9 }
 0x404   : > { %4518 = vst.msk [vmem:[#allocation3 + $0x18] sm:$0xff] %vm3647_vm5, %v4498_v58  ;;  %v4428_v15 = vpop.f32.mrb[176].mxu1  ;;  %v4297_v48 = vadd.f32 %v4277_v29, %v8813_v62  ;;  %6429 = vmatprep.subr.bf16.mxu1 %v6623_v6 }
 0x405   : > { %v4499_v22 = vadd.f32 %v4428_v15, %v8846_v57  ;;  %v4430_v18 = vpop.f32.mrb[177].mxu1  ;;  %v4589_v16 = vmax.f32 %v4569_v49, 0.0  ;;  %v4490_v9 = vld [vmem:[#allocation3 + $0x78] sm:$0xff] }
 0x406   : > { %v4500_v19 = vadd.f32 %v4480_v38, %v4430_v18  ;;  %4317 = vst.msk [vmem:[#allocation3 + $0x98] sm:$0xff] %vm3647_vm5, %v4297_v48 }
 0x407   : > { %v8927_v31 = vmax.f32 %v4587_v41, %v4589_v16  ;;  %v4571_v57 = vadd.f32 %v8908_v13, %v4499_v22  ;;  %v4536_v55 = vld [vmem:[#allocation3 + $0x8] sm:$0xff]  ;;  %6431 = vmatpush3.bf16.msra.mxu1 %v6430_v26 }
 0x408   : > { %4520 = vst.msk [vmem:[#allocation3 + $0x28] sm:$0xff] %vm3647_vm5, %v4500_v19  ;;  %v4434_v36 = vpop.f32.mrb[178].mxu1  ;;  %6447 = vmatprep.subr.bf16.mxu1 %v6623_v6 }
 0x409   : > { %v4501_v62 = vadd.f32 %v4434_v36, %v8853_v2  ;;  %v4436_v51 = vpop.f32.mrb[179].mxu1  ;;  %v4591_v1 = vmax.f32 %v4571_v57, 0.0  ;;  %v4492_v57 = vld [vmem:[#allocation3 + $0x88] sm:$0xff] }
 0x40a   : > { %v4502_v32 = vadd.f32 %v4482_v21, %v4436_v51 }
 0x40b   : > { %v4573_v63 = vadd.f32 %v8908_v13, %v4501_v62  ;;  %v4538_v28 = vld [vmem:[#allocation3 + $0x18] sm:$0xff] }
 0x40c   : > { %4522 = vst.msk [vmem:[#allocation3 + $0x38] sm:$0xff] %vm3647_vm5, %v4502_v32  ;;  %v4440_v30 = vpop.f32.mrb[180].mxu1 }
 0x40d   : > { %v4503_v40 = vadd.f32 %v4440_v30, %v8860_v23  ;;  %v4442_v60 = vpop.f32.mrb[181].mxu1  ;;  %v4593_v33 = vmax.f32 %v4573_v63, 0.0  ;;  %v8946_v23 = vrot.slane %v8897_v35, %v3190_v14 }
 0x40e   : > { %v4504_v24 = vadd.f32 %v4484_v3, %v4442_v60 }
 0x40f   : > { %v8936_v37 = vmax.f32 %v4591_v1, %v4593_v33  ;;  %v4540_v2 = vld [vmem:[#allocation3 + $0x28] sm:$0xff]  ;;  %v4575_v14 = vadd.f32 %v8908_v13, %v4503_v40  ;;  %v4570_v61 = vadd.f32 %v8946_v23, %v4538_v28  ;;  %v4568_v58 = vadd.f32 %v8946_v23, %v4536_v55 }
 0x410   : > { %4524 = vst.msk [vmem:[#allocation3 + $0x48] sm:$0xff] %vm3647_vm5, %v4504_v24  ;;  %v4446_v56 = vpop.f32.mrb[182].mxu1  ;;  %v4572_v45 = vadd.f32 %v8946_v23, %v4540_v2 }
 0x411   : > { %v4505_v47 = vadd.f32 %v4446_v56, %v8867_v25  ;;  %v4448_v20 = vpop.f32.mrb[183].mxu1  ;;  %4631 = vrot.lane.b32.xlu0 %v8936_v37, %s6625_s25  ;;  %v4595_v4 = vmax.f32 %v4575_v14, 0.0  ;;  %v4588_v38 = vmax.f32 %v4568_v58, 0.0  ;;  %v5886_v58 = vld [vmem:[%s9288_s5 + $0xb8] sm:$0xff] }
 0x412   : > { %v4506_v35 = vadd.f32 %v4486_v34, %v4448_v20  ;;  %v4592_v44 = vmax.f32 %v4572_v45, 0.0 }
 0x413   : > { %v4542_v8 = vld [vmem:[#allocation3 + $0x38] sm:$0xff]  ;;  %v4577_v52 = vadd.f32 %v8908_v13, %v4505_v47 }
 0x414   : > { %4526 = vst.msk [vmem:[#allocation3 + $0x58] sm:$0xff] %vm3647_vm5, %v4506_v35  ;;  %v4452_v25 = vpop.f32.mrb[184].mxu1  ;;  %v4574_v53 = vadd.f32 %v8946_v23, %v4542_v8 }
 0x415   : > { %v4507_v12 = vadd.f32 %v4452_v25, %v8874_v42  ;;  %v4454_v17 = vpop.f32.mrb[185].mxu1  ;;  %4627 = vrot.lane.b32.xlu0 %v8927_v31, %s6625_s25  ;;  %v4597_v27 = vmax.f32 %v4577_v52, 0.0  ;;  %v4590_v42 = vmax.f32 %v4570_v61, 0.0 }
 0x416   : > { %v4508_v50 = vadd.f32 %v4488_v10, %v4454_v17  ;;  %v4594_v0 = vmax.f32 %v4574_v53, 0.0  ;;  %v5883_v10 = vld [vmem:[%s9288_s5 + $0xa0] sm:$0xff] }
 0x417   : > { %v8968_v49 = vmax.f32 %v4595_v4, %v4597_v27  ;;  %v4544_v29 = vld [vmem:[#allocation3 + $0x48] sm:$0xff]  ;;  %v4579_v22 = vadd.f32 %v8908_v13, %v4507_v12 }
 0x418   : > { %4528 = vst.msk [vmem:[#allocation3 + $0x68] sm:$0xff] %vm3647_vm5, %v4508_v50  ;;  %v4458_v43 = vpop.f32.mrb[186].mxu1  ;;  %v4610_v7 = vmax.f32 %v4592_v44, %v4594_v0  ;;  %v4576_v41 = vadd.f32 %v8946_v23, %v4544_v29  ;;  %v5884_v4 = vld [vmem:[%s9288_s5 + $0xa8] sm:$0xff]  ;;  %v5885_v44 = vld [vmem:[%s9288_s5 + $0xb0] sm:$0xff] }
 0x419   : > { %v4509_v15 = vadd.f32 %v4458_v43, %v8881_v5  ;;  %v4460_v48 = vpop.f32.mrb[187].mxu1  ;;  %4635 = vrot.lane.b32.xlu0 %v8968_v49, %s6625_s25  ;;  %v4608_v5 = vmax.f32 %v4588_v38, %v4590_v42  ;;  %v4599_v32 = vmax.f32 %v4579_v22, 0.0  ;;  %v5894_v29 = vld [vmem:[%s9288_s5 + $0xf0] sm:$0xff]  ;;  %v5895_v43 = vld [vmem:[%s9288_s5 + $0xf8] sm:$0xff]  ;;  %v5896_v38 = vld [vmem:[%s9288_s5 + $0x100] sm:$0xff] }
 0x41a   : > { %v4510_v18 = vadd.f32 %v4490_v9, %v4460_v48  ;;  %4633 = vrot.lane.b32.xlu1 %v4610_v7, %s6625_s25  ;;  %v4596_v40 = vmax.f32 %v4576_v41, 0.0  ;;  %v6448_v48 = vpack.c.bf16 %v5895_v43, %v5894_v29  ;;  %v5887_v9 = vld [vmem:[%s9288_s5 + $0xc0] sm:$0xff]  ;;  %v5897_v41 = vld [vmem:[%s9288_s5 + $0x108] sm:$0xff] }
 0x41b   : > { %v4546_v16 = vld [vmem:[#allocation3 + $0x58] sm:$0xff]  ;;  %v4581_v19 = vadd.f32 %v8908_v13, %v4509_v15  ;;  %v5099_v29 = vld [vmem:[%s9290_s7 + $0x20] sm:$0xff]  ;;  %v5100_v43 = vld [vmem:[%s9290_s7 + $0x28] sm:$0xff] }
 0x41c   : > { %4530 = vst.msk [vmem:[#allocation3 + $0x78] sm:$0xff] %vm3647_vm5, %v4510_v18  ;;  %v4464_v36 = vpop.f32.mrb[188].mxu1  ;;  %v4578_v62 = vadd.f32 %v8946_v23, %v4546_v16  ;;  %v5888_v18 = vld [vmem:[%s9288_s5 + $0xc8] sm:$0xff] }
 0x41d   : > { %v4511_v51 = vadd.f32 %v4464_v36, %v8888_v59  ;;  %v4466_v21 = vpop.f32.mrb[189].mxu1  ;;  %v4601_v63 = vmax.f32 %v4581_v19, 0.0  ;;  %v4494_v59 = vld [vmem:[#allocation3 + $0x98] sm:$0xff]  ;;  %v6439_v16 = vpack.c.bf16 %v5888_v18, %v5887_v9  ;;  %v5889_v19 = vld [vmem:[%s9288_s5 + $0xd0] sm:$0xff]  ;;  %v5104_v9 = vld [vmem:[%s9290_s7 + $0x48] sm:$0xff] }
 0x41e   : > { %v4512_v30 = vadd.f32 %v4492_v57, %v4466_v21  ;;  %4629 = vrot.lane.b32.xlu1 %v4608_v5, %s6625_s25  ;;  %v4598_v60 = vmax.f32 %v4578_v62, 0.0  ;;  %v5890_v36 = vld [vmem:[%s9288_s5 + $0xd8] sm:$0xff]  ;;  %v5898_v5 = vld [vmem:[%s9288_s5 + $0x110] sm:$0xff]  ;;  %v5891_v57 = vld [vmem:[%s9288_s5 + $0xe0] sm:$0xff] }
 0x41f   : > { %v8982_v3 = vmax.f32 %v4599_v32, %v4601_v63  ;;  %v4548_v1 = vld [vmem:[#allocation3 + $0x68] sm:$0xff]  ;;  %v4583_v46 = vadd.f32 %v8908_v13, %v4511_v51  ;;  %v5899_v62 = vld [vmem:[%s9288_s5 + $0x118] sm:$0xff]  ;;  %v6442_v51 = vpack.c.bf16 %v5890_v36, %v5889_v19  ;;  %v5900_v63 = vld [vmem:[%s9288_s5 + $0x120] sm:$0xff] }
 0x420   : > { %4532 = vst.msk [vmem:[#allocation3 + $0x88] sm:$0xff] %vm3647_vm5, %v4512_v30  ;;  %v4470_v33 = vpop.f32.mrb[190].mxu1  ;;  %v4612_v24 = vmax.f32 %v4596_v40, %v4598_v60  ;;  %v4580_v47 = vadd.f32 %v8946_v23, %v4548_v1  ;;  %v6454_v21 = vpack.c.bf16 %v5899_v62, %v5898_v5  ;;  %v5892_v32 = vld [vmem:[%s9288_s5 + $0xe8] sm:$0xff]  ;;  %v5105_v18 = vld [vmem:[%s9290_s7 + $0x50] sm:$0xff]  ;;  %v5192_v36 = vld [vmem:[%s9292_s9] sm:$0xff] }
 0x421   : > { %v4513_v2 = vadd.f32 %v4470_v33, %v8900_v11  ;;  %v4472_v56 = vpop.f32.mrb[191].mxu1  ;;  %4639 = vrot.lane.b32.xlu0 %v8982_v3, %s6625_s25  ;;  %v4603_v11 = vmax.f32 %v4583_v46, 0.0  ;;  %v5901_v30 = vld [vmem:[%s9288_s5 + $0x128] sm:$0xff]  ;;  %v6445_v60 = vpack.c.bf16 %v5892_v32, %v5891_v57  ;;  %v5902_v33 = vld [vmem:[%s9288_s5 + $0x130] sm:$0xff]  ;;  %v5195_v57 = vld [vmem:[%s9292_s9 + $0x18] sm:$0xff] }
 0x422   : > { %v4514_v54 = vadd.f32 %v4494_v59, %v4472_v56  ;;  %4637 = vrot.lane.b32.xlu1 %v4612_v24, %s6625_s25  ;;  %v4600_v26 = vmax.f32 %v4580_v47, 0.0  ;;  %v6457_v1 = vpack.c.bf16 %v5901_v30, %v5900_v63  ;;  %v5905_v56 = vld [vmem:[%s9288_s5 + $0x140] sm:$0xff]  ;;  %v5906_v59 = vld [vmem:[%s9288_s5 + $0x148] sm:$0xff]  ;;  %v5194_v62 = vld [vmem:[%s9292_s9 + $0x10] sm:$0xff] }
 0x423   : > { %v4550_v20 = vld [vmem:[#allocation3 + $0x78] sm:$0xff]  ;;  %v4585_v34 = vadd.f32 %v8908_v13, %v4513_v2  ;;  %v5193_v5 = vld [vmem:[%s9292_s9 + $0x8] sm:$0xff]  ;;  %v6502_v32 = vpack.c.bf16 %v5195_v57, %v5194_v62  ;;  %v5196_v63 = vld [vmem:[%s9292_s9 + $0x20] sm:$0xff] }
 0x424   : > { %4534 = vst.msk [vmem:[#allocation3 + $0x98] sm:$0xff] %vm3647_vm5, %v4514_v54  ;;  %v4582_v28 = vadd.f32 %v8946_v23, %v4550_v20  ;;  %v5903_v2 = vld [vmem:[%s9288_s5 + $0x138] sm:$0xff]  ;;  %v6463_v20 = vpack.c.bf16 %v5906_v59, %v5905_v56  ;;  %v5197_v30 = vld [vmem:[%s9292_s9 + $0x28] sm:$0xff] }
 0x425   : > { %v4605_v14 = vmax.f32 %v4585_v34, 0.0  ;;  %v6460_v47 = vpack.c.bf16 %v5903_v2, %v5902_v33 }
 0x426   : > { %v4602_v35 = vmax.f32 %v4582_v28, 0.0 }
 0x427   : > { %v8994_v45 = vmax.f32 %v4603_v11, %v4605_v14  ;;  %v4552_v8 = vld [vmem:[#allocation3 + $0x88] sm:$0xff]  ;;  %v5907_v11 = vld [vmem:[%s9288_s5 + $0x150] sm:$0xff]  ;;  %v5908_v14 = vld [vmem:[%s9288_s5 + $0x158] sm:$0xff] }
 0x428   : > { %v4614_v55 = vmax.f32 %v4600_v26, %v4602_v35  ;;  %v4584_v52 = vadd.f32 %v8946_v23, %v4552_v8  ;;  %v5909_v8 = vld [vmem:[%s9288_s5 + $0x160] sm:$0xff] }
 0x429   : > { %4643 = vrot.lane.b32.xlu0 %v8994_v45, %s6625_s25 }
 0x42a   : > { %4641 = vrot.lane.b32.xlu1 %v4614_v55, %s6625_s25  ;;  %v4604_v53 = vmax.f32 %v4584_v52, 0.0  ;;  %v5910_v55 = vld [vmem:[%s9288_s5 + $0x168] sm:$0xff] }
 0x42b   : > { %v4554_v13 = vld [vmem:[#allocation3 + $0x98] sm:$0xff]  ;;  %v6469_v52 = vpack.c.bf16 %v5910_v55, %v5909_v8  ;;  %v5200_v55 = vld [vmem:[%s9292_s9 + $0x40] sm:$0xff] }
 0x42c   : > { %v4586_v25 = vadd.f32 %v8946_v23, %v4554_v13  ;;  %v6433_v23 = vpack.c.bf16 %v5884_v4, %v5883_v10  ;;  %v5912_v13 = vld [vmem:[%s9288_s5 + $0x178] sm:$0xff] }
 0x42e   : > { %v4606_v61 = vmax.f32 %v4586_v25, 0.0 }
 0x430   : > { %v4616_v12 = vmax.f32 %v4604_v53, %v4606_v61  ;;  %v5913_v53 = vld [vmem:[%s9288_s5 + $0x180] sm:$0xff]  ;;  %v5914_v61 = vld [vmem:[%s9288_s5 + $0x188] sm:$0xff] }
 0x432   : > { %4645 = vrot.lane.b32.xlu1 %v4616_v12, %s6625_s25  ;;  %s9301_s25 = sadd.s32 4294967295, %s6619_s20  }
 0x433   : > { %s5923_s30 = sshll.u32 %s9301_s25, 7 }
 0x434   : > { %s9239_s13 = scalar_lea.hbm %s9294_s11, %s5923_s30 }
 0x483   : > { %v4632_v17 = vpop.permute.xlu0 %4631 }
 0x487   : > { %v4628_v7 = vpop.permute.xlu0 %4627 }
 0x48b   : > { %v4636_v24 = vpop.permute.xlu0 %4635 }
 0x48c   : > { %v4634_v27 = vpop.permute.xlu1 %4633 }
 0x48d   : > { %v4649_v50 = vsel %vm4647_vm7, %v4632_v17, %v4634_v27  ;;  %v6475_v17 = vpack.c.bf16 %v5914_v61, %v5913_v53 }
 0x48e   : > { %v4659_v0 = vmax.f32 %v8936_v37, %v4649_v50  ;;  %v6436_v37 = vpack.c.bf16 %v5886_v58, %v5885_v44  ;;  %v5095_v50 = vld [vmem:[%s9290_s7] sm:$0xff] }
 0x490   : > { %6030 = vmatmul.mubr.msk.f32.vlgmr.msra.gmra.mrb[188].mxu0 %vm4684_vm8, %v4659_v0  ;;  %v4630_v42 = vpop.permute.xlu1 %4629  ;;  %v5098_v0 = vld [vmem:[%s9290_s7 + $0x18] sm:$0xff] }
 0x491   : > { %6434 = vmatpush3.bf16.msra.mxu0 %v6433_v23  ;;  %v4648_v15 = vsel %vm4647_vm7, %v4628_v7, %v4630_v42  ;;  %6075 = vmatprep.mubr.msk.f32.mxu0 %vm6624_vm6, %v6621_v39  ;;  %v5096_v23 = vld [vmem:[%s9290_s7 + $0x8] sm:$0xff]  ;;  %v5101_v7 = vld [vmem:[%s9290_s7 + $0x30] sm:$0xff]  ;;  %v6484_v42 = vpack.c.bf16 %v5100_v43, %v5099_v29 }
 0x492   : > { %v4658_v22 = vmax.f32 %v8927_v31, %v4648_v15  ;;  %6435 = vmatprep.subr.bf16.mxu0 %v6623_v6  ;;  %v6451_v31 = vpack.c.bf16 %v5897_v41, %v5896_v38  ;;  %v6478_v44 = vpack.c.bf16 %v5096_v23, %v5095_v50  ;;  %v5102_v15 = vld [vmem:[%s9290_s7 + $0x38] sm:$0xff] }
 0x493   : > { %v4640_v28 = vpop.permute.xlu0 %4639  ;;  %v5106_v38 = vld [vmem:[%s9290_s7 + $0x58] sm:$0xff] }
 0x494   : > { %6053 = vmatmul.mubr.msk.f32.vlgmr.msra.gmra.mrb[192].mxu1 %vm4684_vm8, %v4658_v22  ;;  %v4638_v40 = vpop.permute.xlu1 %4637  ;;  %v6493_v41 = vpack.c.bf16 %v5106_v38, %v5105_v18 }
 0x495   : > { %6437 = vmatpush3.bf16.msra.mxu0 %v6436_v37  ;;  %6449 = vmatpush3.bf16.msra.mxu1 %v6448_v48  ;;  %v4650_v46 = vsel %vm4647_vm7, %v4636_v24, %v4638_v40  ;;  %v6487_v37 = vpack.c.bf16 %v5102_v15, %v5101_v7  ;;  %v5103_v48 = vld [vmem:[%s9290_s7 + $0x40] sm:$0xff]  ;;  %v6505_v40 = vpack.c.bf16 %v5197_v30, %v5196_v63 }
 0x496   : > { %6438 = vmatprep.subr.bf16.mxu0 %v6623_v6  ;;  %6450 = vmatprep.subr.bf16.mxu1 %v6623_v6  ;;  %v4660_v34 = vmax.f32 %v8968_v49, %v4650_v46  ;;  %v6466_v49 = vpack.c.bf16 %v5908_v14, %v5907_v11  ;;  %v6490_v22 = vpack.c.bf16 %v5104_v9, %v5103_v48 }
 0x497   : > { %6098 = vmatprep.mubr.msk.f32.mxu1 %vm6624_vm6, %v6621_v39 }
 0x499   : > { %6440 = vmatpush3.bf16.msra.mxu0 %v6439_v16  ;;  %6452 = vmatpush3.bf16.msra.mxu1 %v6451_v31  ;;  %v5107_v16 = vld [vmem:[%s9290_s7 + $0x60] sm:$0xff]  ;;  %v5108_v31 = vld [vmem:[%s9290_s7 + $0x68] sm:$0xff] }
 0x49a   : > { %6441 = vmatprep.subr.bf16.mxu0 %v6623_v6  ;;  %6453 = vmatprep.subr.bf16.mxu1 %v6623_v6  ;;  %v6496_v19 = vpack.c.bf16 %v5108_v31, %v5107_v16 }
 0x49b   : > { %v4644_v10 = vpop.permute.xlu0 %4643 }
 0x49c   : > { %v4642_v54 = vpop.permute.xlu1 %4641 }
 0x49d   : > { %6443 = vmatpush3.bf16.msra.mxu0 %v6442_v51  ;;  %6455 = vmatpush3.bf16.msra.mxu1 %v6454_v21  ;;  %v4651_v26 = vsel %vm4647_vm7, %v4640_v28, %v4642_v54  ;;  %v5109_v51 = vld [vmem:[%s9290_s7 + $0x70] sm:$0xff]  ;;  %v6499_v21 = vpack.c.bf16 %v5193_v5, %v5192_v36 }
 0x49e   : > { %6444 = vmatprep.subr.bf16.mxu0 %v6623_v6  ;;  %6456 = vmatprep.subr.bf16.mxu1 %v6623_v6  ;;  %v4661_v35 = vmax.f32 %v8982_v3, %v4651_v26  ;;  %v5911_v3 = vld [vmem:[%s9288_s5 + $0x170] sm:$0xff]  ;;  %v5916_v26 = vld [vmem:[%s9289_s6] ss:$0 sm:$0xff] }
 0x49f   : > { %v6472_v25 = vpack.c.bf16 %v5912_v13, %v5911_v3  ;;  %v5202_v13 = vld [vmem:[%s9292_s9 + $0x50] sm:$0xf] }
 0x4a1   : > { %6446 = vmatpush3.bf16.msra.mxu0 %v6445_v60  ;;  %6458 = vmatpush3.bf16.msra.mxu1 %v6457_v1  ;;  %v5198_v60 = vld [vmem:[%s9292_s9 + $0x30] sm:$0xff]  ;;  %v5199_v1 = vld [vmem:[%s9292_s9 + $0x38] sm:$0xff] }
 0x4a2   : > { %6459 = vmatprep.subr.bf16.mxu1 %v6623_v6  ;;  %6462 = vmatprep.subr.bf16.mxu0 %v6623_v6  ;;  %v6508_v33 = vpack.c.bf16 %v5199_v1, %v5198_v60 }
 0x4a4   : > { %6076 = vmatmul.mubr.msk.f32.vlgmr.msra.gmra.mrb[190].mxu0 %vm4684_vm8, %v4660_v34  ;;  %v4646_v12 = vpop.permute.xlu1 %4645 }
 0x4a5   : > { %6461 = vmatpush3.bf16.msra.mxu1 %v6460_v47  ;;  %6464 = vmatpush3.bf16.msra.mxu0 %v6463_v20  ;;  %v4652_v4 = vsel %vm4647_vm7, %v4644_v10, %v4646_v12 }
 0x4a6   : > { %6465 = vmatprep.subr.bf16.mxu0 %v6623_v6  ;;  %6121 = vmatprep.mubr.msk.f32.mxu0 %vm6624_vm6, %v6621_v39  ;;  %v4662_v27 = vmax.f32 %v8994_v45, %v4652_v4  ;;  %v5097_v45 = vld [vmem:[%s9290_s7 + $0x10] sm:$0xff] }
 0x4a7   : > { %6477 = vmatprep.subr.bf16.mxu1 %v6623_v6  ;;  %v6481_v58 = vpack.c.bf16 %v5098_v0, %v5097_v45 }
 0x4a8   : > { %6099 = vmatmul.mubr.msk.f32.vlgmr.msra.gmra.mrb[194].mxu1 %vm4684_vm8, %v4661_v35 }
 0x4a9   : > { %6467 = vmatpush3.bf16.msra.mxu0 %v6466_v49  ;;  %6154 = vmatprep.mubr.msk.f32.mxu1 %vm6624_vm6, %v6621_v39 }
 0x4aa   : > { %6468 = vmatprep.subr.bf16.mxu0 %v6623_v6  ;;  %6479 = vmatpush3.bf16.msra.mxu1 %v6478_v44 }
 0x4ab   : > { %6480 = vmatprep.subr.bf16.mxu1 %v6623_v6 }
 0x4ad   : > { %6470 = vmatpush3.bf16.msra.mxu0 %v6469_v52  ;;  %v5201_v52 = vld [vmem:[%s9292_s9 + $0x48] sm:$0xff] }
 0x4ae   : > { %6471 = vmatprep.subr.bf16.mxu0 %v6623_v6  ;;  %6482 = vmatpush3.bf16.msra.mxu1 %v6481_v58  ;;  %v6511_v3 = vpack.c.bf16 %v5201_v52, %v5200_v55 }
 0x4af   : > { %6483 = vmatprep.subr.bf16.mxu1 %v6623_v6 }
 0x4b1   : > { %6473 = vmatpush3.bf16.msra.mxu0 %v6472_v25  ;;  %v5917_v25 = vld [vmem:[%s9291_s8] ss:$0 sm:$0xff] }
 0x4b2   : > { %6474 = vmatprep.subr.bf16.mxu0 %v6623_v6  ;;  %6485 = vmatpush3.bf16.msra.mxu1 %v6484_v42 }
 0x4b3   : > { %6486 = vmatprep.subr.bf16.mxu1 %v6623_v6 }
 0x4b5   : > { %6476 = vmatpush3.bf16.msra.mxu0 %v6475_v17 }
 0x4b6   : > { %6498 = vmatprep.subr.bf16.mxu0 %v6623_v6  ;;  %6488 = vmatpush3.bf16.msra.mxu1 %v6487_v37 }
 0x4b7   : > { %6489 = vmatprep.subr.bf16.mxu1 %v6623_v6 }
 0x4b8   : > { %6122 = vmatmul.mubr.msk.f32.vlgmr.msra.gmra.mrb[192].mxu0 %vm4684_vm8, %v4662_v27 }
 0x4b9   : > { %6179 = vmatprep.mubr.msk.f32.mxu0 %vm6624_vm6, %v6621_v39  ;;  %6500 = vmatpush3.bf16.msra.mxu0 %v6499_v21 }
 0x4ba   : > { %6491 = vmatpush3.bf16.msra.mxu1 %v6490_v22  ;;  %6501 = vmatprep.subr.bf16.mxu0 %v6623_v6 }
 0x4bb   : > { %6492 = vmatprep.subr.bf16.mxu1 %v6623_v6 }
 0x4bd   : > { %6503 = vmatpush3.bf16.msra.mxu0 %v6502_v32 }
 0x4be   : > { %6494 = vmatpush3.bf16.msra.mxu1 %v6493_v41  ;;  %6504 = vmatprep.subr.bf16.mxu0 %v6623_v6 }
 0x4bf   : > { %6495 = vmatprep.subr.bf16.mxu1 %v6623_v6 }
 0x4c1   : > { %6506 = vmatpush3.bf16.msra.mxu0 %v6505_v40 }
 0x4c2   : > { %6497 = vmatpush3.bf16.msra.mxu1 %v6496_v19  ;;  %6507 = vmatprep.subr.bf16.mxu0 %v6623_v6 }
 0x4c3   : > { %6152 = vmatprep.subr.mxu1 %v6621_v39 }
 0x4c5   : > { %6509 = vmatpush3.bf16.msra.mxu0 %v6508_v33 }
 0x4c6   : > { %6153 = vmatpush3.msra.mxu1 %v5109_v51  ;;  %6510 = vmatprep.subr.bf16.mxu0 %v6623_v6 }
 0x4c9   : > { %6512 = vmatpush3.bf16.msra.mxu0 %v6511_v3 }
 0x4ca   : > { %6177 = vmatprep.subr.mxu0 %v6621_v39  ;;  %v5919_v39 = vld [vmem:[%s9293_s10] ss:$0 sm:$0xff] }
 0x4cd   : > { %6178 = vmatpush3.msk.msra.mxu0 %vm3514_vm2, %v5202_v13 }
 0x563   : > { %v4754_v24 = vpop.f32.mrb[188].mxu0 }
 0x564   : > { %v6031_v2 = vpop.f32.mrb[189].mxu0 }
 0x567   : > { %v4827_v56 = vpop.f32.mrb[192].mxu1 }
 0x568   : > { %v4828_v59 = vadd.f32 %v4827_v56, %v4754_v24  ;;  %v6054_v46 = vpop.f32.mrb[193].mxu1 }
 0x577   : > { %v4911_v54 = vpop.f32.mrb[190].mxu0 }
 0x578   : > { %v4915_v47 = vadd.f32 %v4911_v54, %v4828_v59  ;;  %v6077_v20 = vpop.f32.mrb[191].mxu0 }
 0x57b   : > { %v4996_v34 = vpop.f32.mrb[194].mxu1 }
 0x57c   : > { %v5000_v28 = vadd.f32 %v4996_v34, %v4915_v47  ;;  %v6100_v11 = vpop.f32.mrb[195].mxu1 }
 0x58b   : > { %v5081_v14 = vpop.f32.mrb[192].mxu0 }
 0x58c   : > { %v5085_v49 = vadd.f32 %v5081_v14, %v5000_v28  ;;  %v6123_v35 = vpop.f32.mrb[193].mxu0 }
 0x58e   : > { %v5093_v8 = vadd.f32 %v5916_v26, %v5085_v49 }
 0x590   : > { %v5094_v6 = vmax.f32 %v5093_v8, 0.0 }
 0x592   : > { %6155 = vmatmul.mubr.msk.f32.vlgmr.msra.gmra.mrb[196].mxu1 %vm5117_vm9, %v5094_v6 }
 0x665   : > { %v5187_v53 = vpop.f32.mrb[196].mxu1 }
 0x666   : > { %v5188_v61 = vadd.f32 %v5917_v25, %v5187_v53  ;;  %v6156_v12 = vpop.f32.mrb[197].mxu1 }
 0x668   : > { %v5191_v17 = vmax.f32 %v5188_v61, 0.0 }
 0x66a   : > { %6180 = vmatmul.mubr.msk.f32.vlgmr.msra.gmra.mrb[194].mxu0 %vm3483_vm4, %v5191_v17 }
 0x73d   : > { %v5282_v10 = vpop.f32.mrb[194].mxu0 }
 0x73e   : > { %v5283_v4 = vadd.f32 %v5919_v39, %v5282_v10  ;;  %v6181_v27 = vpop.f32.mrb[195].mxu0 }
 0x740   : > { %5287 = vst.msk [vmem:[%s542_s26] sm:$0xff] %vm5286_vm10, %v5283_v4 }
 0x741   : > { %6570 = shalt.err (!%p6567_p5)
}
 0x742   : > { %s6571_s29 = scalar_lea.hbm %s9239_s13, 128  ;;  %s6575_s26 = scalar_lea.hbm %s9294_s11, 256 }
 0x743   : > { %p6572_p7 = scmp.ne.s32.totalorder %s9239_s13, %s6571_s29  ;;  %p6576_p12 = scmp.lt.u32.totalorder %s9239_s13, %s9294_s11 }
 0x744   : > { %p6577_p13 = scmp.lt.u32.totalorder %s6575_s26, %s6571_s29  ;;  %p6579_p1 = scmp.lt.u32.totalorder %s6571_s29, %s9239_s13 }
 0x745   : > { %p6573_p10 = pnand %p6572_p7, %p6725_p6 }
 0x746   : > { %p6578_p0 = por %p6577_p13, %p6576_p12 }
 0x747   : > { %p6574_p11 = pneg %p6573_p10 }
 0x748   : > { %p6580_p2 = por %p6579_p1, %p6578_p0 }
 0x74a   : > { %p6581_p3 = pnand %p6580_p2, %p6574_p11 }
 0x74c   : > { %6584 = shalt.err (!%p6581_p3)
}
 0x74d   : > { %6513 = dma.vmem_to_hbm [thread:$0]  (%p6725_p6), %s9241_s12, 128, %s9239_s13, %s5289_s15  }
 0x74e PF: > { %s5314_s16 = sand.u32 1, %s6607_s17   ;;  %p6516_p4 = pnand %p5369_p9, %p6729_p8 }
 0x74f   : > { %s5315_s22 = scalar_lea.sflag [#allocation6], %s5314_s16 }
 0x750   : > { %6602 = dma.done.wait (!%p6516_p4), %s5315_s22, 128  }
 0x751   : > { %6604 = vsyncadd (!%p6516_p4), %s5315_s22, 4294967168  ;;  %s9302_s24 = sld [smem:[#allocation8_spill]]  ;;  %p21_p5 = scmp.ge.s32.totalorder %s6710_s23, 4  }
 0x752   : > { %s9303_s17 = smov %s6611_s18  ;;  %s9304_s18 = smov %s6615_s19 }
 0x753   : > { %s9306_s20 = smov %s6710_s23  ;;  %23 = sbr.rel (!%p21_p5) target bundleno = 5 (0x5), region = 158 }
 0x757   : > { %s9305_s19 = smov %s9302_s24 }
 0x75a   :  { %5320 = vsyncpa [#allocation6], 1 }
 0x75b   :  { %5322 = vsyncpa [#allocation6 + $0x1], 1 }

</bundles_post_ra>
